<compile_context>
chip_gen: v7x
topology: tpu7x:2x2x1
jax: 0.10.0
libtpu: 0.0.40
codegen_flags: <defaults>
</compile_context>

<pallas_src>
import jax
import jax.numpy as jnp
from jax.experimental import pallas as pl
from jax.experimental.pallas import tpu as pltpu

TM = 256  # row tile cap (sweep 256-512 on v6e/v7x for very large graphs)


def _pick_tm(m, cap=TM):
    """Row tile: multiple of 16 (bf16 sublane packing), capped, floored so the grid
    has >= 2 steps whenever possible (keeps both v7x TensorCores busy)."""
    half = -(-m // 2)            # cdiv(m, 2)
    tm = -(-half // 16) * 16     # round up to 16
    return int(max(16, min(cap, tm)))


# ----------------------------- Pallas kernel -------------------------------
def _make_fused_mlp_kernel(n_inputs, res_idx, emit_fold):
    """Fused merged-K Linear1 -> SiLU -> Linear2 -> SiLU -> Linear3 -> LayerNorm
    (+fused residual, +optional H->H/2 fold output).

    Ref layout:
      refs[:n]        row-tiled activation inputs (residual input is f32)
      refs[n]         W1  (sum(d_i), H) bf16   (single merged-K matrix)
      refs[n+1]       W2  (H, H) bf16
      refs[n+2]       W3  (H, H) bf16
      refs[n+3]       consts (5, H) f32 : b1, b2, b3, gamma, beta stacked
      refs[n+4:]      outputs: (fold_bf16, post_f32) if emit_fold else (post_f32,)
    """

    def kernel(*refs):
        ins = refs[:n_inputs]
        w1, w2, w3, c = refs[n_inputs:n_inputs + 4]
        outs = refs[n_inputs + 4:]

        consts = c[...]
        b1, b2, b3 = consts[0:1], consts[1:2], consts[2:3]
        gamma, beta = consts[3:4], consts[4:5]

        # --- Linear 1: lane-axis concat of bf16 tiles + ONE long-K bf16 matmul.
        # The MXU accumulates internally (in-place MRB on v7x); f32 result.
        a = jnp.concatenate([r[...].astype(jnp.bfloat16) for r in ins], axis=-1)
        h = jnp.dot(a, w1[...], preferred_element_type=jnp.float32) + b1
        h = h * jax.nn.sigmoid(h)                       # SiLU in f32 (EUP+VPU)

        # --- Linear 2 ---
        h = jnp.dot(h.astype(jnp.bfloat16), w2[...],
                    preferred_element_type=jnp.float32) + b2
        h = h * jax.nn.sigmoid(h)

        # --- Linear 3 ---
        y = jnp.dot(h.astype(jnp.bfloat16), w3[...],
                    preferred_element_type=jnp.float32) + b3

        # --- LayerNorm over last dim (f32, eps=1e-5 = PyTorch default), row-wise ---
        mu = jnp.mean(y, axis=-1, keepdims=True)
        var = jnp.mean(jnp.square(y - mu), axis=-1, keepdims=True)
        y = (y - mu) * jax.lax.rsqrt(var + 1e-5) * gamma + beta

        # --- fused residual: the residual tensor is one of the tiled f32 inputs ---
        res = y + ins[res_idx][...].astype(jnp.float32)

        if emit_fold:
            hh = y.shape[-1] // 2
            fold = 0.5 * (y[:, :hh] + y[:, hh:])        # fold BEFORE the scatter
            outs[0][...] = fold.astype(outs[0].dtype)   # (tm, H/2) bf16 -> aggregation
            outs[1][...] = res.astype(outs[1].dtype)    # (tm, H)   f32  -> block output
        else:
            outs[0][...] = res.astype(outs[0].dtype)

    return kernel


def fused_mlp_ln_res(inputs, res_idx, p, *, emit_fold=False, tm_cap=TM):
    """Row-tiled application of the fused MLP+LayerNorm(+residual) kernel.

    inputs:  list of (M, d_i) arrays, logically concatenated along the feature dim.
    res_idx: which input (f32) is added to the LayerNorm output.
    Returns post-residual (M, H) f32, or (fold (M, H/2) bf16, post (M, H) f32).
    """
    m = inputs[0].shape[0]
    hid = p["consts"].shape[1]
    tm = _pick_tm(m, tm_cap)
    grid = (pl.cdiv(m, tm),)               # partial last block handled by Pallas

    def row_spec(d):
        return pl.BlockSpec((tm, d), lambda i: (i, 0))

    def full_spec(arr):
        return pl.BlockSpec(arr.shape, lambda i: (0,) * arr.ndim)

    weights = [p["w1"], p["w2"], p["w3"], p["consts"]]
    in_specs = [row_spec(a.shape[1]) for a in inputs] + [full_spec(w) for w in weights]

    if emit_fold:
        out_shape = (jax.ShapeDtypeStruct((m, hid // 2), jnp.bfloat16),
                     jax.ShapeDtypeStruct((m, hid), jnp.float32))
        out_specs = (pl.BlockSpec((tm, hid // 2), lambda i: (i, 0)),
                     pl.BlockSpec((tm, hid), lambda i: (i, 0)))
    else:
        out_shape = jax.ShapeDtypeStruct((m, hid), jnp.float32)
        out_specs = pl.BlockSpec((tm, hid), lambda i: (i, 0))

    kernel = _make_fused_mlp_kernel(len(inputs), res_idx, emit_fold)
    return pl.pallas_call(
        kernel,
        out_shape=out_shape,
        grid=grid,
        in_specs=in_specs,
        out_specs=out_specs,
        compiler_params=pltpu.CompilerParams(dimension_semantics=("parallel",)),
    )(*inputs, *weights)


# ----------------------------- GnBlock forward ------------------------------
def gn_block_forward(x, edge_attr, edge_index, params):
    """
    x:          (N, H)   node features
    edge_attr:  (E, H)   edge features
    edge_index: (2, E)   int32 [senders; receivers]
    Returns (x_out, edge_attr_out) with the residual connections of GnBlock.forward.
    """
    senders, receivers = edge_index[0], edge_index[1]
    n = x.shape[0]

    # Endpoint-feature gather in bf16: these operands are cast to bf16 for the MXU
    # anyway, so gathering bf16 halves the gather's HBM write + kernel read bytes.
    # TODO(synk): fuse this gather into the edge kernel (pl.ANY x + prefetched
    # indices / vectorized in-VMEM gather) to remove the round-trip entirely.
    x_bf = x.astype(jnp.bfloat16)
    xs = x_bf[senders]
    xr = x_bf[receivers]

    # --- EdgeBlock: eb_input_dim = 3*H.  Residual fused; the H->H/2 fold of the
    # pre-residual edge features (needed by the node aggregation) is emitted by the
    # kernel in bf16, so the full (E, H) pre-residual tensor is never materialized.
    e_fold, e_post = fused_mlp_ln_res([xs, xr, edge_attr], res_idx=2,
                                      p=params["eb"], emit_fold=True)

    # --- NodeBlock: nb_input_dim = H + H/2.
    # TODO(synk): exact NodeBlock attention / graph_cell aggregation not in source;
    # standard GN edge->node segment-sum (f32 accumulation) used as a placeholder.
    agg_half = jax.ops.segment_sum(e_fold.astype(jnp.float32), receivers,
                                   num_segments=n)
    x_post = fused_mlp_ln_res([x, agg_half], res_idx=0, p=params["nb"])

    return x_post, e_post


# ----------------------------- parameter init -------------------------------
def _linear_params(key, fan_in, fan_out):
    kw, kb = jax.random.split(key)
    bound = 1.0 / jnp.sqrt(jnp.float32(fan_in))
    w = jax.random.uniform(kw, (fan_in, fan_out), jnp.float32, -bound, bound)
    b = jax.random.uniform(kb, (fan_out,), jnp.float32, -bound, bound)
    return w, b


def init_mlp_params(key, in_size, hidden):
    """W1 stored as one (in_size, H) bf16 matrix (merged-K dot); b1/b2/b3/gamma/beta
    packed into a single (5, H) f32 constant block."""
    k1, k2, k3 = jax.random.split(key, 3)
    w1, b1 = _linear_params(k1, in_size, hidden)
    w2, b2 = _linear_params(k2, hidden, hidden)
    w3, b3 = _linear_params(k3, hidden, hidden)
    consts = jnp.stack([b1, b2, b3,
                        jnp.ones((hidden,), jnp.float32),    # LayerNorm gamma
                        jnp.zeros((hidden,), jnp.float32)],  # LayerNorm beta
                       axis=0)
    return dict(w1=w1.astype(jnp.bfloat16),
                w2=w2.astype(jnp.bfloat16),
                w3=w3.astype(jnp.bfloat16),
                consts=consts)


# ---------------------------------- main -------------------------------------
if __name__ == "__main__":
    H = 128              # hidden_size (module default) -> 128-lane dense stores
    N, E = 200, 437      # non-multiples of the row tile -> exercises partial blocks

    key = jax.random.PRNGKey(0)
    k1, k2, k3, k4, k5, k6 = jax.random.split(key, 6)

    x = jax.random.normal(k1, (N, H), jnp.float32)
    edge_attr = jax.random.normal(k2, (E, H), jnp.float32)
    senders = jax.random.randint(k3, (E,), 0, N, jnp.int32)
    receivers = jax.random.randint(k4, (E,), 0, N, jnp.int32)
    edge_index = jnp.stack([senders, receivers])

    params = dict(
        eb=init_mlp_params(k5, 3 * H, H),        # eb_input_dim = 3 * hidden
        nb=init_mlp_params(k6, H + H // 2, H),   # nb_input_dim = hidden + hidden/2
    )

    fwd = jax.jit(gn_block_forward)
    x_out, e_out = fwd(x, edge_attr, edge_index, params)
    jax.block_until_ready((x_out, e_out))

    assert x_out.shape == (N, H) and e_out.shape == (E, H)
    assert bool(jnp.all(jnp.isfinite(x_out))) and bool(jnp.all(jnp.isfinite(e_out)))
    print("KERNEL_OK")
</pallas_src>

<mosaic_0001>
module attributes {stable_mosaic.version = 11 : i64} {
  func.func @kernel(%arg0: i32, %arg1: memref<224x128xbf16, #tpu.memory_space<vmem>>, %arg2: memref<224x128xbf16, #tpu.memory_space<vmem>>, %arg3: memref<224x128xf32, #tpu.memory_space<vmem>>, %arg4: memref<384x128xbf16, #tpu.memory_space<vmem>>, %arg5: memref<128x128xbf16, #tpu.memory_space<vmem>>, %arg6: memref<128x128xbf16, #tpu.memory_space<vmem>>, %arg7: memref<5x128xf32, #tpu.memory_space<vmem>>, %arg8: memref<224x64xbf16, #tpu.memory_space<vmem>>, %arg9: memref<224x128xf32, #tpu.memory_space<vmem>>) attributes {dimension_semantics = [#tpu.dimension_semantics<parallel>], iteration_bounds = array<i64: 2>, scalar_prefetch = 0 : i64, scratch_operands = 0 : i64, tpu.core_type = #tpu.core_type<tc>, window_params = [{transform_indices = @transform_0, window_bounds = array<i64: 224, 128>}, {transform_indices = @transform_1, window_bounds = array<i64: 224, 128>}, {transform_indices = @transform_2, window_bounds = array<i64: 224, 128>}, {pipeline_mode = #tpu.pipeline_mode<synchronous>, transform_indices = @transform_3, window_bounds = array<i64: 384, 128>}, {pipeline_mode = #tpu.pipeline_mode<synchronous>, transform_indices = @transform_4, window_bounds = array<i64: 128, 128>}, {pipeline_mode = #tpu.pipeline_mode<synchronous>, transform_indices = @transform_5, window_bounds = array<i64: 128, 128>}, {pipeline_mode = #tpu.pipeline_mode<synchronous>, transform_indices = @transform_6, window_bounds = array<i64: 5, 128>}, {transform_indices = @transform_7, window_bounds = array<i64: 224, 64>}, {transform_indices = @transform_8, window_bounds = array<i64: 224, 128>}]} {
    %c0 = arith.constant 0 : index
    %c0_0 = arith.constant 0 : index
    %0 = vector.load %arg7[%c0, %c0_0] : memref<5x128xf32, #tpu.memory_space<vmem>>, vector<5x128xf32>
    %1 = vector.extract_strided_slice %0 {offsets = [0, 0], sizes = [1, 128], strides = [1, 1]} : vector<5x128xf32> to vector<1x128xf32>
    %2 = vector.extract_strided_slice %0 {offsets = [1, 0], sizes = [1, 128], strides = [1, 1]} : vector<5x128xf32> to vector<1x128xf32>
    %3 = vector.extract_strided_slice %0 {offsets = [2, 0], sizes = [1, 128], strides = [1, 1]} : vector<5x128xf32> to vector<1x128xf32>
    %4 = vector.extract_strided_slice %0 {offsets = [3, 0], sizes = [1, 128], strides = [1, 1]} : vector<5x128xf32> to vector<1x128xf32>
    %5 = vector.extract_strided_slice %0 {offsets = [4, 0], sizes = [1, 128], strides = [1, 1]} : vector<5x128xf32> to vector<1x128xf32>
    %c0_1 = arith.constant 0 : index
    %c0_2 = arith.constant 0 : index
    %6 = vector.load %arg1[%c0_1, %c0_2] : memref<224x128xbf16, #tpu.memory_space<vmem>>, vector<224x128xbf16>
    %c0_3 = arith.constant 0 : index
    %c0_4 = arith.constant 0 : index
    %7 = vector.load %arg2[%c0_3, %c0_4] : memref<224x128xbf16, #tpu.memory_space<vmem>>, vector<224x128xbf16>
    %c0_5 = arith.constant 0 : index
    %c0_6 = arith.constant 0 : index
    %8 = vector.load %arg3[%c0_5, %c0_6] : memref<224x128xf32, #tpu.memory_space<vmem>>, vector<224x128xf32>
    %9 = arith.truncf %8 : vector<224x128xf32> to vector<224x128xbf16>
    %10 = tpu.concatenate %6, %7, %9 in 1 : vector<224x128xbf16>, vector<224x128xbf16>, vector<224x128xbf16> -> vector<224x384xbf16>
    %c0_7 = arith.constant 0 : index
    %c0_8 = arith.constant 0 : index
    %11 = vector.load %arg4[%c0_7, %c0_8] : memref<384x128xbf16, #tpu.memory_space<vmem>>, vector<384x128xbf16>
    %cst = arith.constant dense<0.000000e+00> : vector<224x128xf32>
    %12 = tpu.matmul %10, %11, %cst {dimension_numbers = #tpu.dot_dimension_numbers<[1], [0], [0], [1], [0, 0, 1, 1], [], []>} : vector<224x384xbf16>, vector<384x128xbf16>, vector<224x128xf32> -> vector<224x128xf32>
    %13 = vector.broadcast %1 : vector<1x128xf32> to vector<224x128xf32>
    %14 = arith.addf %12, %13 : vector<224x128xf32>
    %15 = arith.negf %14 : vector<224x128xf32>
    %16 = math.exp %15 : vector<224x128xf32>
    %cst_9 = arith.constant 1.000000e+00 : f32
    %17 = vector.broadcast %cst_9 : f32 to vector<224x128xf32>
    %18 = arith.addf %17, %16 : vector<224x128xf32>
    %19 = arith.divf %17, %18 : vector<224x128xf32>
    %20 = arith.mulf %14, %19 : vector<224x128xf32>
    %21 = arith.truncf %20 : vector<224x128xf32> to vector<224x128xbf16>
    %c0_10 = arith.constant 0 : index
    %c0_11 = arith.constant 0 : index
    %22 = vector.load %arg5[%c0_10, %c0_11] : memref<128x128xbf16, #tpu.memory_space<vmem>>, vector<128x128xbf16>
    %cst_12 = arith.constant dense<0.000000e+00> : vector<224x128xf32>
    %23 = tpu.matmul %21, %22, %cst_12 {dimension_numbers = #tpu.dot_dimension_numbers<[1], [0], [0], [1], [0, 0, 1, 1], [], []>} : vector<224x128xbf16>, vector<128x128xbf16>, vector<224x128xf32> -> vector<224x128xf32>
    %24 = vector.broadcast %2 : vector<1x128xf32> to vector<224x128xf32>
    %25 = arith.addf %23, %24 : vector<224x128xf32>
    %26 = arith.negf %25 : vector<224x128xf32>
    %27 = math.exp %26 : vector<224x128xf32>
    %cst_13 = arith.constant 1.000000e+00 : f32
    %28 = vector.broadcast %cst_13 : f32 to vector<224x128xf32>
    %29 = arith.addf %28, %27 : vector<224x128xf32>
    %30 = arith.divf %28, %29 : vector<224x128xf32>
    %31 = arith.mulf %25, %30 : vector<224x128xf32>
    %32 = arith.truncf %31 : vector<224x128xf32> to vector<224x128xbf16>
    %c0_14 = arith.constant 0 : index
    %c0_15 = arith.constant 0 : index
    %33 = vector.load %arg6[%c0_14, %c0_15] : memref<128x128xbf16, #tpu.memory_space<vmem>>, vector<128x128xbf16>
    %cst_16 = arith.constant dense<0.000000e+00> : vector<224x128xf32>
    %34 = tpu.matmul %32, %33, %cst_16 {dimension_numbers = #tpu.dot_dimension_numbers<[1], [0], [0], [1], [0, 0, 1, 1], [], []>} : vector<224x128xbf16>, vector<128x128xbf16>, vector<224x128xf32> -> vector<224x128xf32>
    %35 = vector.broadcast %3 : vector<1x128xf32> to vector<224x128xf32>
    %36 = arith.addf %34, %35 : vector<224x128xf32>
    %cst_17 = arith.constant dense<0.000000e+00> : vector<224xf32>
    %37 = vector.multi_reduction <add>, %36, %cst_17 [1] : vector<224x128xf32> to vector<224xf32>
    %38 = vector.shape_cast %37 : vector<224xf32> to vector<224x1xf32>
    %cst_18 = arith.constant 1.280000e+02 : f32
    %39 = vector.broadcast %cst_18 : f32 to vector<224x1xf32>
    %40 = arith.divf %38, %39 : vector<224x1xf32>
    %41 = vector.broadcast %40 : vector<224x1xf32> to vector<224x128xf32>
    %42 = arith.subf %36, %41 : vector<224x128xf32>
    %43 = arith.mulf %42, %42 : vector<224x128xf32>
    %cst_19 = arith.constant dense<0.000000e+00> : vector<224xf32>
    %44 = vector.multi_reduction <add>, %43, %cst_19 [1] : vector<224x128xf32> to vector<224xf32>
    %45 = vector.shape_cast %44 : vector<224xf32> to vector<224x1xf32>
    %cst_20 = arith.constant 1.280000e+02 : f32
    %46 = vector.broadcast %cst_20 : f32 to vector<224x1xf32>
    %47 = arith.divf %45, %46 : vector<224x1xf32>
    %48 = vector.broadcast %40 : vector<224x1xf32> to vector<224x128xf32>
    %49 = arith.subf %36, %48 : vector<224x128xf32>
    %cst_21 = arith.constant 9.99999974E-6 : f32
    %50 = vector.broadcast %cst_21 : f32 to vector<224x1xf32>
    %51 = arith.addf %47, %50 : vector<224x1xf32>
    %52 = math.rsqrt %51 : vector<224x1xf32>
    %53 = vector.broadcast %52 : vector<224x1xf32> to vector<224x128xf32>
    %54 = arith.mulf %49, %53 : vector<224x128xf32>
    %55 = vector.broadcast %4 : vector<1x128xf32> to vector<224x128xf32>
    %56 = arith.mulf %54, %55 : vector<224x128xf32>
    %57 = vector.broadcast %5 : vector<1x128xf32> to vector<224x128xf32>
    %58 = arith.addf %56, %57 : vector<224x128xf32>
    %c0_22 = arith.constant 0 : index
    %c0_23 = arith.constant 0 : index
    %59 = vector.load %arg3[%c0_22, %c0_23] : memref<224x128xf32, #tpu.memory_space<vmem>>, vector<224x128xf32>
    %60 = arith.addf %58, %59 : vector<224x128xf32>
    %61 = vector.extract_strided_slice %58 {offsets = [0, 0], sizes = [224, 64], strides = [1, 1]} : vector<224x128xf32> to vector<224x64xf32>
    %62 = vector.extract_strided_slice %58 {offsets = [0, 64], sizes = [224, 64], strides = [1, 1]} : vector<224x128xf32> to vector<224x64xf32>
    %63 = arith.addf %61, %62 : vector<224x64xf32>
    %cst_24 = arith.constant 5.000000e-01 : f32
    %64 = vector.broadcast %cst_24 : f32 to vector<224x64xf32>
    %65 = arith.mulf %64, %63 : vector<224x64xf32>
    %66 = arith.truncf %65 : vector<224x64xf32> to vector<224x64xbf16>
    %c0_25 = arith.constant 0 : index
    %c0_26 = arith.constant 0 : index
    %67 = vector.load %arg8[%c0_25, %c0_26] : memref<224x64xbf16, #tpu.memory_space<vmem>>, vector<224x64xbf16>
    tpu.vector_store %arg8[%c0_25, %c0_26], %66 {strides = array<i32>} : memref<224x64xbf16, #tpu.memory_space<vmem>>, vector<224x64xbf16>,
    %c0_27 = arith.constant 0 : index
    %c0_28 = arith.constant 0 : index
    %68 = vector.load %arg9[%c0_27, %c0_28] : memref<224x128xf32, #tpu.memory_space<vmem>>, vector<224x128xf32>
    tpu.vector_store %arg9[%c0_27, %c0_28], %60 {strides = array<i32>} : memref<224x128xf32, #tpu.memory_space<vmem>>, vector<224x128xf32>,
    return
  }
  func.func @transform_0(%arg0: i32) -> (i32, i32) {
    %c0_i32 = arith.constant 0 : i32
    %c0_i32_0 = arith.constant 0 : i32
    return %arg0, %c0_i32 : i32, i32
  }
  func.func @transform_1(%arg0: i32) -> (i32, i32) {
    %c0_i32 = arith.constant 0 : i32
    %c0_i32_0 = arith.constant 0 : i32
    return %arg0, %c0_i32 : i32, i32
  }
  func.func @transform_2(%arg0: i32) -> (i32, i32) {
    %c0_i32 = arith.constant 0 : i32
    %c0_i32_0 = arith.constant 0 : i32
    return %arg0, %c0_i32 : i32, i32
  }
  func.func @transform_3(%arg0: i32) -> (i32, i32) {
    %c0_i32 = arith.constant 0 : i32
    %c0_i32_0 = arith.constant 0 : i32
    %c0_i32_1 = arith.constant 0 : i32
    return %c0_i32, %c0_i32_0 : i32, i32
  }
  func.func @transform_4(%arg0: i32) -> (i32, i32) {
    %c0_i32 = arith.constant 0 : i32
    %c0_i32_0 = arith.constant 0 : i32
    %c0_i32_1 = arith.constant 0 : i32
    return %c0_i32, %c0_i32_0 : i32, i32
  }
  func.func @transform_5(%arg0: i32) -> (i32, i32) {
    %c0_i32 = arith.constant 0 : i32
    %c0_i32_0 = arith.constant 0 : i32
    %c0_i32_1 = arith.constant 0 : i32
    return %c0_i32, %c0_i32_0 : i32, i32
  }
  func.func @transform_6(%arg0: i32) -> (i32, i32) {
    %c0_i32 = arith.constant 0 : i32
    %c0_i32_0 = arith.constant 0 : i32
    %c0_i32_1 = arith.constant 0 : i32
    return %c0_i32, %c0_i32_0 : i32, i32
  }
  func.func @transform_7(%arg0: i32) -> (i32, i32) {
    %c0_i32 = arith.constant 0 : i32
    %c0_i32_0 = arith.constant 0 : i32
    return %arg0, %c0_i32 : i32, i32
  }
  func.func @transform_8(%arg0: i32) -> (i32, i32) {
    %c0_i32 = arith.constant 0 : i32
    %c0_i32_0 = arith.constant 0 : i32
    return %arg0, %c0_i32 : i32, i32
  }
}

module attributes {stable_mosaic.version = 11 : i64} {
  func.func @kernel(%arg0: i32, %arg1: memref<112x128xf32, #tpu.memory_space<vmem>>, %arg2: memref<112x64xf32, #tpu.memory_space<vmem>>, %arg3: memref<192x128xbf16, #tpu.memory_space<vmem>>, %arg4: memref<128x128xbf16, #tpu.memory_space<vmem>>, %arg5: memref<128x128xbf16, #tpu.memory_space<vmem>>, %arg6: memref<5x128xf32, #tpu.memory_space<vmem>>, %arg7: memref<112x128xf32, #tpu.memory_space<vmem>>) attributes {dimension_semantics = [#tpu.dimension_semantics<parallel>], iteration_bounds = array<i64: 2>, scalar_prefetch = 0 : i64, scratch_operands = 0 : i64, tpu.core_type = #tpu.core_type<tc>, window_params = [{transform_indices = @transform_0, window_bounds = array<i64: 112, 128>}, {transform_indices = @transform_1, window_bounds = array<i64: 112, 64>}, {pipeline_mode = #tpu.pipeline_mode<synchronous>, transform_indices = @transform_2, window_bounds = array<i64: 192, 128>}, {pipeline_mode = #tpu.pipeline_mode<synchronous>, transform_indices = @transform_3, window_bounds = array<i64: 128, 128>}, {pipeline_mode = #tpu.pipeline_mode<synchronous>, transform_indices = @transform_4, window_bounds = array<i64: 128, 128>}, {pipeline_mode = #tpu.pipeline_mode<synchronous>, transform_indices = @transform_5, window_bounds = array<i64: 5, 128>}, {transform_indices = @transform_6, window_bounds = array<i64: 112, 128>}]} {
    %c0 = arith.constant 0 : index
    %c0_0 = arith.constant 0 : index
    %0 = vector.load %arg6[%c0, %c0_0] : memref<5x128xf32, #tpu.memory_space<vmem>>, vector<5x128xf32>
    %1 = vector.extract_strided_slice %0 {offsets = [0, 0], sizes = [1, 128], strides = [1, 1]} : vector<5x128xf32> to vector<1x128xf32>
    %2 = vector.extract_strided_slice %0 {offsets = [1, 0], sizes = [1, 128], strides = [1, 1]} : vector<5x128xf32> to vector<1x128xf32>
    %3 = vector.extract_strided_slice %0 {offsets = [2, 0], sizes = [1, 128], strides = [1, 1]} : vector<5x128xf32> to vector<1x128xf32>
    %4 = vector.extract_strided_slice %0 {offsets = [3, 0], sizes = [1, 128], strides = [1, 1]} : vector<5x128xf32> to vector<1x128xf32>
    %5 = vector.extract_strided_slice %0 {offsets = [4, 0], sizes = [1, 128], strides = [1, 1]} : vector<5x128xf32> to vector<1x128xf32>
    %c0_1 = arith.constant 0 : index
    %c0_2 = arith.constant 0 : index
    %6 = vector.load %arg1[%c0_1, %c0_2] : memref<112x128xf32, #tpu.memory_space<vmem>>, vector<112x128xf32>
    %7 = arith.truncf %6 : vector<112x128xf32> to vector<112x128xbf16>
    %c0_3 = arith.constant 0 : index
    %c0_4 = arith.constant 0 : index
    %8 = vector.load %arg2[%c0_3, %c0_4] : memref<112x64xf32, #tpu.memory_space<vmem>>, vector<112x64xf32>
    %9 = arith.truncf %8 : vector<112x64xf32> to vector<112x64xbf16>
    %10 = tpu.concatenate %7, %9 in 1 : vector<112x128xbf16>, vector<112x64xbf16> -> vector<112x192xbf16>
    %c0_5 = arith.constant 0 : index
    %c0_6 = arith.constant 0 : index
    %11 = vector.load %arg3[%c0_5, %c0_6] : memref<192x128xbf16, #tpu.memory_space<vmem>>, vector<192x128xbf16>
    %cst = arith.constant dense<0.000000e+00> : vector<112x128xf32>
    %12 = tpu.matmul %10, %11, %cst {dimension_numbers = #tpu.dot_dimension_numbers<[1], [0], [0], [1], [0, 0, 1, 1], [], []>} : vector<112x192xbf16>, vector<192x128xbf16>, vector<112x128xf32> -> vector<112x128xf32>
    %13 = vector.broadcast %1 : vector<1x128xf32> to vector<112x128xf32>
    %14 = arith.addf %12, %13 : vector<112x128xf32>
    %15 = arith.negf %14 : vector<112x128xf32>
    %16 = math.exp %15 : vector<112x128xf32>
    %cst_7 = arith.constant 1.000000e+00 : f32
    %17 = vector.broadcast %cst_7 : f32 to vector<112x128xf32>
    %18 = arith.addf %17, %16 : vector<112x128xf32>
    %19 = arith.divf %17, %18 : vector<112x128xf32>
    %20 = arith.mulf %14, %19 : vector<112x128xf32>
    %21 = arith.truncf %20 : vector<112x128xf32> to vector<112x128xbf16>
    %c0_8 = arith.constant 0 : index
    %c0_9 = arith.constant 0 : index
    %22 = vector.load %arg4[%c0_8, %c0_9] : memref<128x128xbf16, #tpu.memory_space<vmem>>, vector<128x128xbf16>
    %cst_10 = arith.constant dense<0.000000e+00> : vector<112x128xf32>
    %23 = tpu.matmul %21, %22, %cst_10 {dimension_numbers = #tpu.dot_dimension_numbers<[1], [0], [0], [1], [0, 0, 1, 1], [], []>} : vector<112x128xbf16>, vector<128x128xbf16>, vector<112x128xf32> -> vector<112x128xf32>
    %24 = vector.broadcast %2 : vector<1x128xf32> to vector<112x128xf32>
    %25 = arith.addf %23, %24 : vector<112x128xf32>
    %26 = arith.negf %25 : vector<112x128xf32>
    %27 = math.exp %26 : vector<112x128xf32>
    %cst_11 = arith.constant 1.000000e+00 : f32
    %28 = vector.broadcast %cst_11 : f32 to vector<112x128xf32>
    %29 = arith.addf %28, %27 : vector<112x128xf32>
    %30 = arith.divf %28, %29 : vector<112x128xf32>
    %31 = arith.mulf %25, %30 : vector<112x128xf32>
    %32 = arith.truncf %31 : vector<112x128xf32> to vector<112x128xbf16>
    %c0_12 = arith.constant 0 : index
    %c0_13 = arith.constant 0 : index
    %33 = vector.load %arg5[%c0_12, %c0_13] : memref<128x128xbf16, #tpu.memory_space<vmem>>, vector<128x128xbf16>
    %cst_14 = arith.constant dense<0.000000e+00> : vector<112x128xf32>
    %34 = tpu.matmul %32, %33, %cst_14 {dimension_numbers = #tpu.dot_dimension_numbers<[1], [0], [0], [1], [0, 0, 1, 1], [], []>} : vector<112x128xbf16>, vector<128x128xbf16>, vector<112x128xf32> -> vector<112x128xf32>
    %35 = vector.broadcast %3 : vector<1x128xf32> to vector<112x128xf32>
    %36 = arith.addf %34, %35 : vector<112x128xf32>
    %cst_15 = arith.constant dense<0.000000e+00> : vector<112xf32>
    %37 = vector.multi_reduction <add>, %36, %cst_15 [1] : vector<112x128xf32> to vector<112xf32>
    %38 = vector.shape_cast %37 : vector<112xf32> to vector<112x1xf32>
    %cst_16 = arith.constant 1.280000e+02 : f32
    %39 = vector.broadcast %cst_16 : f32 to vector<112x1xf32>
    %40 = arith.divf %38, %39 : vector<112x1xf32>
    %41 = vector.broadcast %40 : vector<112x1xf32> to vector<112x128xf32>
    %42 = arith.subf %36, %41 : vector<112x128xf32>
    %43 = arith.mulf %42, %42 : vector<112x128xf32>
    %cst_17 = arith.constant dense<0.000000e+00> : vector<112xf32>
    %44 = vector.multi_reduction <add>, %43, %cst_17 [1] : vector<112x128xf32> to vector<112xf32>
    %45 = vector.shape_cast %44 : vector<112xf32> to vector<112x1xf32>
    %cst_18 = arith.constant 1.280000e+02 : f32
    %46 = vector.broadcast %cst_18 : f32 to vector<112x1xf32>
    %47 = arith.divf %45, %46 : vector<112x1xf32>
    %48 = vector.broadcast %40 : vector<112x1xf32> to vector<112x128xf32>
    %49 = arith.subf %36, %48 : vector<112x128xf32>
    %cst_19 = arith.constant 9.99999974E-6 : f32
    %50 = vector.broadcast %cst_19 : f32 to vector<112x1xf32>
    %51 = arith.addf %47, %50 : vector<112x1xf32>
    %52 = math.rsqrt %51 : vector<112x1xf32>
    %53 = vector.broadcast %52 : vector<112x1xf32> to vector<112x128xf32>
    %54 = arith.mulf %49, %53 : vector<112x128xf32>
    %55 = vector.broadcast %4 : vector<1x128xf32> to vector<112x128xf32>
    %56 = arith.mulf %54, %55 : vector<112x128xf32>
    %57 = vector.broadcast %5 : vector<1x128xf32> to vector<112x128xf32>
    %58 = arith.addf %56, %57 : vector<112x128xf32>
    %c0_20 = arith.constant 0 : index
    %c0_21 = arith.constant 0 : index
    %59 = vector.load %arg1[%c0_20, %c0_21] : memref<112x128xf32, #tpu.memory_space<vmem>>, vector<112x128xf32>
    %60 = arith.addf %58, %59 : vector<112x128xf32>
    %c0_22 = arith.constant 0 : index
    %c0_23 = arith.constant 0 : index
    %61 = vector.load %arg7[%c0_22, %c0_23] : memref<112x128xf32, #tpu.memory_space<vmem>>, vector<112x128xf32>
    tpu.vector_store %arg7[%c0_22, %c0_23], %60 {strides = array<i32>} : memref<112x128xf32, #tpu.memory_space<vmem>>, vector<112x128xf32>,
    return
  }
  func.func @transform_0(%arg0: i32) -> (i32, i32) {
    %c0_i32 = arith.constant 0 : i32
    %c0_i32_0 = arith.constant 0 : i32
    return %arg0, %c0_i32 : i32, i32
  }
  func.func @transform_1(%arg0: i32) -> (i32, i32) {
    %c0_i32 = arith.constant 0 : i32
    %c0_i32_0 = arith.constant 0 : i32
    return %arg0, %c0_i32 : i32, i32
  }
  func.func @transform_2(%arg0: i32) -> (i32, i32) {
    %c0_i32 = arith.constant 0 : i32
    %c0_i32_0 = arith.constant 0 : i32
    %c0_i32_1 = arith.constant 0 : i32
    return %c0_i32, %c0_i32_0 : i32, i32
  }
  func.func @transform_3(%arg0: i32) -> (i32, i32) {
    %c0_i32 = arith.constant 0 : i32
    %c0_i32_0 = arith.constant 0 : i32
    %c0_i32_1 = arith.constant 0 : i32
    return %c0_i32, %c0_i32_0 : i32, i32
  }
  func.func @transform_4(%arg0: i32) -> (i32, i32) {
    %c0_i32 = arith.constant 0 : i32
    %c0_i32_0 = arith.constant 0 : i32
    %c0_i32_1 = arith.constant 0 : i32
    return %c0_i32, %c0_i32_0 : i32, i32
  }
  func.func @transform_5(%arg0: i32) -> (i32, i32) {
    %c0_i32 = arith.constant 0 : i32
    %c0_i32_0 = arith.constant 0 : i32
    %c0_i32_1 = arith.constant 0 : i32
    return %c0_i32, %c0_i32_0 : i32, i32
  }
  func.func @transform_6(%arg0: i32) -> (i32, i32) {
    %c0_i32 = arith.constant 0 : i32
    %c0_i32_0 = arith.constant 0 : i32
    return %arg0, %c0_i32 : i32, i32
  }
}

</mosaic_0001>

<bundles_post_ra>
// kernel: gn_block_forward.3
= control target key start
LH: loop header
LB: loop body
LE: loop exit
PB: predicated region body
PF: predicated region fallthrough
CT: control target
= control target key end

     0   :  { %11 = vsyncpa [#allocation3], 0  ;;  %s2545_s0 = inlined_call_operand.vmem [shape: f32[200,128], index: 0, kind: input, shape index: {}]   ;;  %s2546_s1 = inlined_call_operand.vmem [shape: f32[200,64], index: 1, kind: input, shape index: {}]   ;;  %s2547_s2 = inlined_call_operand.vmem [shape: bf16[192,128], index: 2, kind: input, shape index: {}]   ;;  %s2548_s3 = inlined_call_operand.vmem [shape: bf16[128,128], index: 3, kind: input, shape index: {}]   ;;  %s2549_s4 = inlined_call_operand.vmem [shape: bf16[128,128], index: 4, kind: input, shape index: {}]   ;;  %s2550_s5 = inlined_call_operand.vmem [shape: f32[5,128], index: 5, kind: input, shape index: {}]   ;;  %s2551_s6 = inlined_call_operand.hbm [shape: f32[200,128], index: 6, kind: output, shape index: {}]  }
   0x1   :  { %13 = vsyncpa [#allocation3 + $0x1], 0  ;;  %s1953_s21 = smov 0   ;;  %s1955_s22 = smov 0  }
   0x2   :  { %s1957_s23 = smov 0   ;;  %s1959_s24 = smov 0  }
   0x3 LB: > { %s1974_s25 = sadd.s32 4294967295, %s1910_s24   ;;  %s1411_s26 = sadd.s32 4294967294, %s1910_s24   ;;  %s1910_s24 = sphi %s1959_s24, %s2557_s24   ;;  %s1906_s23 = sphi %s1957_s23, %s2556_s23   ;;  %s1902_s22 = sphi %s1955_s22, %s2555_s22   ;;  %s1898_s21 = sphi %s1953_s21, %s2554_s21  }
   0x4   : > { %s1978_s27 = sadd.s32 1, %s1910_s24   ;;  %s162_s28 = sadd.s32 1, %s1906_s23 }
   0x5   : > { %s159_s29 = ssub.s32 %s1910_s24, %s1978_s27  ;;  %p172_p0 = scmp.ne.s32.totalorder %s1906_s23, %s1902_s22 }
   0x6   : > { %p160_p1 = scmp.eq.s32.totalorder %s159_s29, 0  ;;  %p173_p2 = scmp.eq.s32.totalorder %s1974_s25, 1 }
   0x7   : > { %p178_p3 = scmp.ne.s32.totalorder %s1902_s22, %s1898_s21  ;;  %p179_p4 = scmp.eq.s32.totalorder %s1411_s26, 1 }
   0x8   : > { %s1989_s30 = scalar_select %p160_p1, %s1906_s23, %s162_s28  }
   0x9   : > { %p1991_p5 = por %p173_p2, %p172_p0  ;;  %p1995_p6 = por %p179_p4, %p178_p3 }
   0xa   : > { %p1414_p7 = scmp.ge.s32.totalorder %s1910_s24, 1  ;;  %p243_p8 = scmp.lt.s32.totalorder %s1910_s24, 3 }
   0xc   : > { %p244_p9 = pnand %p1414_p7, %p243_p8 }
   0xd   : > { %v1666_v0 = vld [vmem:[%s2547_s2] sm:$0xff] (!%p244_p9)   ;;  %v1912_v1 = vmov (!%p244_p9), 0   ;;  %s2005_s11 = smul.u32 (!%p244_p9), 14, %s1974_s25  ;;  %v1667_v2 = vld [vmem:[%s2547_s2 + $0x8] sm:$0xff] (!%p244_p9)   ;;  %v1913_v3 = vmov (!%p244_p9), 0.0   ;;  %v1668_v4 = vld [vmem:[%s2547_s2 + $0x10] sm:$0xff] (!%p244_p9)  }
   0xe   : > { %247 = sbr.rel (%p244_p9) target bundleno = 1160 (0x488), region = 44  ;;  %485 = vmatprep.subr.bf16.mxu0 (!%p244_p9), %v1912_v1  ;;  %1606 = vmatprep.subr.bf16.mxu1 (!%p244_p9), %v1913_v3  ;;  %v1669_v5 = vld [vmem:[%s2547_s2 + $0x18] sm:$0xff] (!%p244_p9)   ;;  %vm463_vm0 = vcmask (!%p244_p9), 523264   ;;  %v1670_v9 = vld [vmem:[%s2547_s2 + $0x20] sm:$0xff] (!%p244_p9)   ;;  %v1671_v10 = vld [vmem:[%s2547_s2 + $0x28] sm:$0xff] (!%p244_p9)   ;;  %vm1914_vm1 = vmmov (!%p244_p9), 0  }
   0xf   : > { %486 = vmatpush1.bf16.msra.mxu0 (!%p244_p9), %v1666_v0  ;;  %p291_p10 = scmp.lt.s32.totalorder (!%p244_p9), %s2005_s11, 24  ;;  %v1672_v11 = vld [vmem:[%s2547_s2 + $0x30] sm:$0xff] (!%p244_p9)   ;;  %v1678_v12 = vld [vmem:[%s2548_s3] sm:$0xff] (!%p244_p9)   ;;  %v1673_v13 = vld [vmem:[%s2547_s2 + $0x38] sm:$0xff] (!%p244_p9)   ;;  %1546 = vmatprep.mubr.msk.bf16.mxu1 (!%p244_p9), %vm1914_vm1, %v1913_v3  ;;  %v387_v0 = vlaneseq (!%p244_p9) }
  0x10   : > { %487 = vmatprep.subr.bf16.mxu0 (!%p244_p9), %v1912_v1  ;;  %v1679_v14 = vld [vmem:[%s2548_s3 + $0x8] sm:$0xff] (!%p244_p9)   ;;  %1614 = vmatpush3.bf16.msra.mxu1 (!%p244_p9), %v1678_v12  ;;  %v1674_v15 = vld [vmem:[%s2547_s2 + $0x40] sm:$0xff] (!%p244_p9)   ;;  %v1680_v16 = vld [vmem:[%s2548_s3 + $0x10] sm:$0xff] (!%p244_p9)  }
  0x11   : > { %1607 = vmatprep.subr.bf16.mxu1 (!%p244_p9), %v1913_v3  ;;  %v1675_v17 = vld [vmem:[%s2547_s2 + $0x48] sm:$0xff] (!%p244_p9)   ;;  %v1676_v18 = vld [vmem:[%s2547_s2 + $0x50] sm:$0xff] (!%p244_p9)   ;;  %v1677_v19 = vld [vmem:[%s2547_s2 + $0x58] sm:$0xff] (!%p244_p9)  }
  0x12   : > { %v1681_v59 = vld [vmem:[%s2548_s3 + $0x18] sm:$0xff] (!%p244_p9)   ;;  %v1682_v60 = vld [vmem:[%s2548_s3 + $0x20] sm:$0xff] (!%p244_p9)   ;;  %v1683_v61 = vld [vmem:[%s2548_s3 + $0x28] sm:$0xff] (!%p244_p9)  }
  0x13   : > { %488 = vmatpush1.bf16.msra.mxu0 (!%p244_p9), %v1667_v2  ;;  %v1684_v62 = vld [vmem:[%s2548_s3 + $0x30] sm:$0xff] (!%p244_p9)   ;;  %v1685_v63 = vld [vmem:[%s2548_s3 + $0x38] sm:$0xff] (!%p244_p9)  }
  0x14   : > { %489 = vmatprep.subr.bf16.mxu0 (!%p244_p9), %v1912_v1  ;;  %1615 = vmatpush3.bf16.msra.mxu1 (!%p244_p9), %v1679_v14 }
  0x15   : > { %s2012_s14 = scalar_select %p291_p10, %s2005_s11, 24  ;;  %1608 = vmatprep.subr.bf16.mxu1 %v1913_v3 }
  0x16   : > { %s1326_s16 = ssub.s32 (%p1991_p5), 25, %s2005_s11 }
  0x17   : > { %s1415_s17 = sshll.u32 %s2012_s14, 3  ;;  %490 = vmatpush1.bf16.msra.mxu0 %v1668_v4  ;;  %v2145_v4 = vld [vmem:[%s2550_s5] sm:$0x1f]  ;;  %p1327_p11 = scmp.lt.s32.totalorder (%p1991_p5), %s1326_s16, 14 }
  0x18   : > { %s2024_s20 = scalar_lea.vmem %s2546_s1, %s1415_s17  ;;  %491 = vmatprep.subr.bf16.mxu0 %v1912_v1  ;;  %1616 = vmatpush3.bf16.msra.mxu1 %v1680_v16  ;;  %s2070_s29 = scalar_lea.vmem %s2545_s0, %s1415_s17 }
  0x19   : > { %v342_v6 = vld [vmem:[%s2024_s20] sm:$0xff]  ;;  %v343_v7 = vld [vmem:[%s2024_s20 + $0x8] sm:$0xff]  ;;  %1609 = vmatprep.subr.bf16.mxu1 %v1913_v3  ;;  %v344_v22 = vld [vmem:[%s2024_s20 + $0x10] sm:$0xff] }
  0x1a   : > { %v356_v8 = vpack.c.bf16 %v343_v7, %v342_v6  ;;  %v321_v20 = vld [vmem:[%s2070_s29] sm:$0xff]  ;;  %v322_v21 = vld [vmem:[%s2070_s29 + $0x8] sm:$0xff]  ;;  %v345_v23 = vld [vmem:[%s2024_s20 + $0x18] sm:$0xff] }
  0x1b   : > { %492 = vmatpush1.bf16.msra.mxu0 %v1669_v5  ;;  %v335_v24 = vpack.c.bf16 %v322_v21, %v321_v20  ;;  %v357_v25 = vpack.c.bf16 %v345_v23, %v344_v22  ;;  %v323_v26 = vld [vmem:[%s2070_s29 + $0x10] sm:$0xff]  ;;  %v324_v27 = vld [vmem:[%s2070_s29 + $0x18] sm:$0xff]  ;;  %v346_v28 = vld [vmem:[%s2024_s20 + $0x20] sm:$0xff] }
  0x1c   : > { %493 = vmatprep.subr.bf16.mxu0 %v1912_v1  ;;  %1429 = vmatprep.mubr.msk.bf16.mxu0 %vm463_vm0, %v356_v8  ;;  %v347_v29 = vld [vmem:[%s2024_s20 + $0x28] sm:$0xff]  ;;  %v336_v30 = vpack.c.bf16 %v324_v27, %v323_v26  ;;  %v325_v32 = vld [vmem:[%s2070_s29 + $0x20] sm:$0xff]  ;;  %v348_v34 = vld [vmem:[%s2024_s20 + $0x30] sm:$0xff] }
  0x1d   : > { %v358_v31 = vpack.c.bf16 %v347_v29, %v346_v28  ;;  %v326_v33 = vld [vmem:[%s2070_s29 + $0x28] sm:$0xff]  ;;  %v349_v35 = vld [vmem:[%s2024_s20 + $0x38] sm:$0xff]  ;;  %v327_v38 = vld [vmem:[%s2070_s29 + $0x30] sm:$0xff]  ;;  %1617 = vmatpush3.bf16.msra.mxu1 %v1681_v59 }
  0x1e   : > { %v337_v36 = vpack.c.bf16 %v326_v33, %v325_v32  ;;  %v359_v37 = vpack.c.bf16 %v349_v35, %v348_v34  ;;  %v328_v39 = vld [vmem:[%s2070_s29 + $0x38] sm:$0xff]  ;;  %v350_v40 = vld [vmem:[%s2024_s20 + $0x40] sm:$0xff]  ;;  %v351_v41 = vld [vmem:[%s2024_s20 + $0x48] sm:$0xff]  ;;  %1610 = vmatprep.subr.bf16.mxu1 %v1913_v3 }
  0x1f   : > { %494 = vmatpush1.bf16.msra.mxu0 %v1670_v9  ;;  %v338_v42 = vpack.c.bf16 %v328_v39, %v327_v38  ;;  %v360_v43 = vpack.c.bf16 %v351_v41, %v350_v40  ;;  %v329_v44 = vld [vmem:[%s2070_s29 + $0x40] sm:$0xff]  ;;  %v330_v45 = vld [vmem:[%s2070_s29 + $0x48] sm:$0xff]  ;;  %v352_v46 = vld [vmem:[%s2024_s20 + $0x50] sm:$0xff] }
  0x20   : > { %495 = vmatprep.subr.bf16.mxu0 %v1912_v1  ;;  %v353_v47 = vld [vmem:[%s2024_s20 + $0x58] sm:$0xff]  ;;  %v339_v48 = vpack.c.bf16 %v330_v45, %v329_v44  ;;  %v331_v50 = vld [vmem:[%s2070_s29 + $0x50] sm:$0xff]  ;;  %v354_v52 = vld [vmem:[%s2024_s20 + $0x60] sm:$0xff] }
  0x21   : > { %v361_v49 = vpack.c.bf16 %v353_v47, %v352_v46  ;;  %v332_v51 = vld [vmem:[%s2070_s29 + $0x58] sm:$0xff]  ;;  %v355_v53 = vld [vmem:[%s2024_s20 + $0x68] sm:$0xff]  ;;  %v333_v56 = vld [vmem:[%s2070_s29 + $0x60] sm:$0xff]  ;;  %1618 = vmatpush3.bf16.msra.mxu1 %v1682_v60  ;;  %s283_s20 = sand.u32 1, %s1902_s22  }
  0x22   : > { %v340_v54 = vpack.c.bf16 %v332_v51, %v331_v50  ;;  %v362_v55 = vpack.c.bf16 %v355_v53, %v354_v52  ;;  %v334_v57 = vld [vmem:[%s2070_s29 + $0x68] sm:$0xff]  ;;  %1611 = vmatprep.subr.bf16.mxu1 %v1913_v3  ;;  %s1622_s12 = smul.u32 112, %s283_s20  ;;  %s2484_s15 = scalar_lea.sflag [#allocation3], %s283_s20 }
  0x23   : > { %496 = vmatpush1.bf16.msra.mxu0 %v1671_v10  ;;  %v341_v58 = vpack.c.bf16 %v334_v57, %v333_v56 }
  0x24   : > { %497 = vmatprep.subr.bf16.mxu0 %v1912_v1  ;;  %s2416_s13 = scalar_lea.vmem [#allocation2], %s1622_s12 }
  0x25   : > { %1619 = vmatpush3.bf16.msra.mxu1 %v1683_v61 }
  0x26   : > { %1612 = vmatprep.subr.bf16.mxu1 %v1913_v3 }
  0x27   : > { %498 = vmatpush1.bf16.msra.mxu0 %v1672_v11 }
  0x28   : > { %499 = vmatprep.subr.bf16.mxu0 %v1912_v1 }
  0x29   : > { %1620 = vmatpush3.bf16.msra.mxu1 %v1684_v62 }
  0x2a   : > { %1613 = vmatprep.subr.bf16.mxu1 %v1913_v3 }
  0x2b   : > { %500 = vmatpush1.bf16.msra.mxu0 %v1673_v13 }
  0x2c   : > { %501 = vmatprep.subr.bf16.mxu0 %v1912_v1 }
  0x2d   : > { %1621 = vmatpush3.bf16.msra.mxu1 %v1685_v63 }
  0x2e   : > { %1562 = vmatprep.subr.bf16.mxu1 %v1913_v3 }
  0x2f   : > { %502 = vmatpush1.bf16.msra.mxu0 %v1674_v15 }
  0x30   : > { %503 = vmatprep.subr.bf16.mxu0 %v1912_v1 }
  0x33   : > { %504 = vmatpush1.bf16.msra.mxu0 %v1675_v17 }
  0x34   : > { %505 = vmatprep.subr.bf16.mxu0 %v1912_v1 }
  0x37   : > { %506 = vmatpush1.bf16.msra.mxu0 %v1676_v18 }
  0x38   : > { %507 = vmatprep.subr.bf16.mxu0 %v1912_v1  ;;  %v2139_v1 = vshrl.u32 %v387_v0, 7 }
  0x3a   : > { %v389_v2 = vsub.s32 0, %v2139_v1 }
  0x3b   : > { %508 = vmatpush1.bf16.msra.mxu0 %v1677_v19 }
  0x3c   : > { %1518 = vmatprep.subr.bf16.mxu0 %v1913_v3  ;;  %v2148_v5 = vrot.slane %v2145_v4, %v389_v2 }
  0x3e   : > { %518 = vmatmul.mubr.bf16.vlgmr.msra.gmra.mrb[0].mxu0 %v335_v24 }
  0x3f   : > { %1430 = vmatprep.mubr.msk.bf16.mxu0 %vm463_vm0, %v357_v25  ;;  %1519 = vmatpush3.bf16.msra.mxu0 %v1678_v12 }
  0x40   : > { %1520 = vmatprep.subr.bf16.mxu0 %v1913_v3 }
  0x43   : > { %1521 = vmatpush3.bf16.msra.mxu0 %v1679_v14 }
  0x44   : > { %1522 = vmatprep.subr.bf16.mxu0 %v1913_v3 }
  0x46   : > { %526 = vmatmul.mubr.bf16.gmra.mrb[4].mxu0 %v336_v30 }
  0x47   : > { %1431 = vmatprep.mubr.msk.bf16.mxu0 %vm463_vm0, %v358_v31  ;;  %1523 = vmatpush3.bf16.msra.mxu0 %v1680_v16 }
  0x48   : > { %1524 = vmatprep.subr.bf16.mxu0 %v1913_v3 }
  0x4b   : > { %1525 = vmatpush3.bf16.msra.mxu0 %v1681_v59 }
  0x4c   : > { %1526 = vmatprep.subr.bf16.mxu0 %v1913_v3 }
  0x4e   : > { %534 = vmatmul.mubr.bf16.gmra.mrb[8].mxu0 %v337_v36 }
  0x4f   : > { %1432 = vmatprep.mubr.msk.bf16.mxu0 %vm463_vm0, %v359_v37  ;;  %1527 = vmatpush3.bf16.msra.mxu0 %v1682_v60 }
  0x50   : > { %1528 = vmatprep.subr.bf16.mxu0 %v1913_v3 }
  0x53   : > { %1529 = vmatpush3.bf16.msra.mxu0 %v1683_v61 }
  0x54   : > { %1530 = vmatprep.subr.bf16.mxu0 %v1913_v3 }
  0x56   : > { %542 = vmatmul.mubr.bf16.gmra.mrb[12].mxu0 %v338_v42 }
  0x57   : > { %1433 = vmatprep.mubr.msk.bf16.mxu0 %vm463_vm0, %v360_v43  ;;  %1531 = vmatpush3.bf16.msra.mxu0 %v1684_v62 }
  0x58   : > { %1532 = vmatprep.subr.bf16.mxu0 %v1913_v3 }
  0x5b   : > { %1533 = vmatpush3.bf16.msra.mxu0 %v1685_v63 }
  0x5e   : > { %550 = vmatmul.mubr.bf16.gmra.mrb[16].mxu0 %v339_v48 }
  0x5f   : > { %1434 = vmatprep.mubr.msk.bf16.mxu0 %vm463_vm0, %v361_v49 }
  0x66   : > { %558 = vmatmul.mubr.bf16.gmra.mrb[20].mxu0 %v340_v54 }
  0x67   : > { %1435 = vmatprep.mubr.msk.bf16.mxu0 %vm463_vm0, %v362_v55 }
  0x6e   : > { %566 = vmatmul.mubr.bf16.gmra.mrb[24].mxu0 %v341_v58 }
  0x6f   : > { %1534 = vmatprep.mubr.msk.bf16.mxu0 %vm1914_vm1, %v1913_v3 }
 0x111   : > { %v519_v6 = vpop.f32.mrb[0].mxu0 }
 0x112   : > { %v520_v7 = vadd.f32 %v519_v6, %v2148_v5  ;;  %v521_v8 = vpop.f32.mrb[1].mxu0 }
 0x113   : > { %v522_v9 = vpop.f32.mrb[2].mxu0 }
 0x114   : > { %v1436_v10 = vmul.f32 -1.442695, %v520_v7  ;;  %v523_v11 = vadd.f32 %v522_v9, %v2148_v5  ;;  %v524_v12 = vpop.f32.mrb[3].mxu0 }
 0x116   : > { %1694 = vpow2.f32 %v1436_v10  ;;  %v1437_v13 = vmul.f32 -1.442695, %v523_v11 }
 0x118   : > { %1696 = vpow2.f32 %v1437_v13 }
 0x119   : > { %v527_v14 = vpop.f32.mrb[4].mxu0 }
 0x11a   : > { %v2153_v15 = vadd.f32 %v527_v14, %v2148_v5  ;;  %v529_v16 = vpop.f32.mrb[5].mxu0 }
 0x11b   : > { %v530_v17 = vpop.f32.mrb[6].mxu0 }
 0x11c   : > { %v1438_v18 = vmul.f32 -1.442695, %v2153_v15  ;;  %v2157_v19 = vadd.f32 %v530_v17, %v2148_v5  ;;  %v532_v20 = vpop.f32.mrb[7].mxu0 }
 0x11e   : > { %1698 = vpow2.f32 %v1438_v18  ;;  %v1439_v21 = vmul.f32 -1.442695, %v2157_v19 }
 0x120   : > { %v1695_v22 = vpop.eup %1694  ;;  %1700 = vpow2.f32 %v1439_v21 }
 0x121   : > { %v616_v23 = vadd.f32 1.0, %v1695_v22  ;;  %v535_v24 = vpop.f32.mrb[8].mxu0 }
 0x122   : > { %v1697_v25 = vpop.eup %1696  ;;  %v2161_v26 = vadd.f32 %v535_v24, %v2148_v5  ;;  %v537_v27 = vpop.f32.mrb[9].mxu0 }
 0x123   : > { %1702 = vrcp.f32 %v616_v23  ;;  %v617_v28 = vadd.f32 1.0, %v1697_v25  ;;  %v538_v29 = vpop.f32.mrb[10].mxu0 }
 0x124   : > { %v1440_v30 = vmul.f32 -1.442695, %v2161_v26  ;;  %v2165_v31 = vadd.f32 %v538_v29, %v2148_v5  ;;  %v540_v32 = vpop.f32.mrb[11].mxu0 }
 0x125   : > { %1704 = vrcp.f32 %v617_v28 }
 0x126   : > { %1706 = vpow2.f32 %v1440_v30  ;;  %v1441_v33 = vmul.f32 -1.442695, %v2165_v31 }
 0x128   : > { %v1699_v34 = vpop.eup %1698  ;;  %1708 = vpow2.f32 %v1441_v33 }
 0x129   : > { %v618_v35 = vadd.f32 1.0, %v1699_v34  ;;  %v543_v36 = vpop.f32.mrb[12].mxu0 }
 0x12a   : > { %v1701_v37 = vpop.eup %1700  ;;  %v2169_v38 = vadd.f32 %v543_v36, %v2148_v5  ;;  %v545_v39 = vpop.f32.mrb[13].mxu0 }
 0x12b   : > { %1710 = vrcp.f32 %v618_v35  ;;  %v619_v40 = vadd.f32 1.0, %v1701_v37  ;;  %v546_v41 = vpop.f32.mrb[14].mxu0 }
 0x12c   : > { %v1442_v42 = vmul.f32 -1.442695, %v2169_v38  ;;  %v2173_v43 = vadd.f32 %v546_v41, %v2148_v5  ;;  %v548_v44 = vpop.f32.mrb[15].mxu0 }
 0x12d   : > { %v1703_v45 = vpop.eup %1702  ;;  %1712 = vrcp.f32 %v619_v40 }
 0x12e   : > { %1714 = vpow2.f32 %v1442_v42  ;;  %v1443_v46 = vmul.f32 -1.442695, %v2173_v43  ;;  %v658_v49 = vmul.f32 %v1703_v45, %v520_v7 }
 0x12f   : > { %v1705_v47 = vpop.eup %1704 }
 0x130   : > { %v1707_v48 = vpop.eup %1706  ;;  %v659_v50 = vmul.f32 %v1705_v47, %v523_v11  ;;  %1716 = vpow2.f32 %v1443_v46 }
 0x131   : > { %v620_v51 = vadd.f32 1.0, %v1707_v48  ;;  %v551_v52 = vpop.f32.mrb[16].mxu0 }
 0x132   : > { %v1709_v53 = vpop.eup %1708  ;;  %v672_v54 = vpack.c.bf16 %v659_v50, %v658_v49  ;;  %v2177_v55 = vadd.f32 %v551_v52, %v2148_v5  ;;  %v553_v56 = vpop.f32.mrb[17].mxu0 }
 0x133   : > { %1718 = vrcp.f32 %v620_v51  ;;  %v621_v57 = vadd.f32 1.0, %v1709_v53  ;;  %v554_v58 = vpop.f32.mrb[18].mxu0 }
 0x134   : > { %v1444_v59 = vmul.f32 -1.442695, %v2177_v55  ;;  %v2181_v60 = vadd.f32 %v554_v58, %v2148_v5  ;;  %v556_v61 = vpop.f32.mrb[19].mxu0  ;;  %1535 = vmatmul.mubr.bf16.vlgmr.msra.gmra.mrb[28].mxu0 %v672_v54 }
 0x135   : > { %v1711_v62 = vpop.eup %1710  ;;  %1720 = vrcp.f32 %v621_v57  ;;  %1538 = vmatprep.mubr.msk.bf16.mxu0 %vm1914_vm1, %v1913_v3 }
 0x136   : > { %1722 = vpow2.f32 %v1444_v59  ;;  %v1445_v63 = vmul.f32 -1.442695, %v2181_v60  ;;  %v660_v6 = vmul.f32 %v1711_v62, %v2153_v15 }
 0x137   : > { %v1713_v0 = vpop.eup %1712 }
 0x138   : > { %v1715_v2 = vpop.eup %1714  ;;  %v661_v7 = vmul.f32 %v1713_v0, %v2157_v19  ;;  %1724 = vpow2.f32 %v1445_v63  ;;  %v1686_v0 = vld [vmem:[%s2549_s4] sm:$0xff]  }
 0x139   : > { %v622_v8 = vadd.f32 1.0, %v1715_v2  ;;  %v559_v9 = vpop.f32.mrb[20].mxu0  ;;  %v1687_v2 = vld [vmem:[%s2549_s4 + $0x8] sm:$0xff]  }
 0x13a   : > { %v1717_v10 = vpop.eup %1716  ;;  %v2189_v11 = vadd.f32 %v559_v9, %v2148_v5  ;;  %v561_v12 = vpop.f32.mrb[21].mxu0  ;;  %v673_v13 = vpack.c.bf16 %v661_v7, %v660_v6  ;;  %v1688_v6 = vld [vmem:[%s2549_s4 + $0x10] sm:$0xff]   ;;  %v1689_v7 = vld [vmem:[%s2549_s4 + $0x18] sm:$0xff]   ;;  %v1691_v9 = vld [vmem:[%s2549_s4 + $0x28] sm:$0xff]  }
 0x13b   : > { %1726 = vrcp.f32 %v622_v8  ;;  %v623_v14 = vadd.f32 1.0, %v1717_v10  ;;  %v562_v16 = vpop.f32.mrb[22].mxu0  ;;  %v1690_v8 = vld [vmem:[%s2549_s4 + $0x20] sm:$0xff]   ;;  %v1692_v10 = vld [vmem:[%s2549_s4 + $0x30] sm:$0xff]   ;;  %v697_v12 = vsub.s32 1, %v2139_v1 }
 0x13c   : > { %v1446_v17 = vmul.f32 -1.442695, %v2189_v11  ;;  %v563_v18 = vadd.f32 %v562_v16, %v2148_v5  ;;  %v564_v20 = vpop.f32.mrb[23].mxu0  ;;  %1539 = vmatmul.mubr.bf16.gmra.mrb[32].mxu0 %v673_v13 }
 0x13d   : > { %v1719_v15 = vpop.eup %1718  ;;  %1728 = vrcp.f32 %v623_v14  ;;  %1542 = vmatprep.mubr.msk.bf16.mxu0 %vm1914_vm1, %v1913_v3  ;;  %v2245_v13 = vrot.slane %v2145_v4, %v697_v12 }
 0x13e   : > { %1730 = vpow2.f32 %v1446_v17  ;;  %v1447_v19 = vmul.f32 -1.442695, %v563_v18  ;;  %v662_v23 = vmul.f32 %v1719_v15, %v2161_v26 }
 0x13f   : > { %v1721_v21 = vpop.eup %1720 }
 0x140   : > { %v1723_v22 = vpop.eup %1722  ;;  %v663_v24 = vmul.f32 %v1721_v21, %v2165_v31  ;;  %1732 = vpow2.f32 %v1447_v19 }
 0x141   : > { %v624_v25 = vadd.f32 1.0, %v1723_v22  ;;  %v567_v27 = vpop.f32.mrb[24].mxu0 }
 0x142   : > { %v1725_v28 = vpop.eup %1724  ;;  %v568_v29 = vadd.f32 %v567_v27, %v2148_v5  ;;  %v569_v30 = vpop.f32.mrb[25].mxu0  ;;  %v674_v32 = vpack.c.bf16 %v663_v24, %v662_v23 }
 0x143   : > { %1734 = vrcp.f32 %v624_v25  ;;  %v625_v33 = vadd.f32 1.0, %v1725_v28  ;;  %v570_v34 = vpop.f32.mrb[26].mxu0 }
 0x144   : > { %v1448_v35 = vmul.f32 -1.442695, %v568_v29  ;;  %v571_v36 = vadd.f32 %v570_v34, %v2148_v5  ;;  %v572_v37 = vpop.f32.mrb[27].mxu0  ;;  %1543 = vmatmul.mubr.bf16.gmra.mrb[36].mxu0 %v674_v32 }
 0x145   : > { %v1727_v39 = vpop.eup %1726  ;;  %1736 = vrcp.f32 %v625_v33 }
 0x146   : > { %1738 = vpow2.f32 %v1448_v35  ;;  %v1449_v26 = vmul.f32 -1.442695, %v571_v36  ;;  %v664_v41 = vmul.f32 %v1727_v39, %v2169_v38 }
 0x147   : > { %v1729_v31 = vpop.eup %1728 }
 0x148   : > { %v1731_v40 = vpop.eup %1730  ;;  %v665_v42 = vmul.f32 %v1729_v31, %v2173_v43  ;;  %1740 = vpow2.f32 %v1449_v26 }
 0x149   : > { %v626_v44 = vadd.f32 1.0, %v1731_v40 }
 0x14a   : > { %v1733_v45 = vpop.eup %1732  ;;  %v675_v46 = vpack.c.bf16 %v665_v42, %v664_v41 }
 0x14b   : > { %1742 = vrcp.f32 %v626_v44  ;;  %v627_v47 = vadd.f32 1.0, %v1733_v45 }
 0x14c   : > { %1547 = vmatmul.mubr.bf16.vlgmr.msra.gmra.mrb[0].mxu1 %v675_v46 }
 0x14d   : > { %v1735_v5 = vpop.eup %1734  ;;  %1744 = vrcp.f32 %v627_v47  ;;  %1550 = vmatprep.mubr.msk.bf16.mxu1 %vm1914_vm1, %v1913_v3  ;;  %1563 = vmatpush3.bf16.msra.mxu1 %v1686_v0 }
 0x14e   : > { %v666_v50 = vmul.f32 %v1735_v5, %v2177_v55  ;;  %1564 = vmatprep.subr.bf16.mxu1 %v1913_v3 }
 0x14f   : > { %v1737_v48 = vpop.eup %1736 }
 0x150   : > { %v1739_v49 = vpop.eup %1738  ;;  %v667_v38 = vmul.f32 %v1737_v48, %v2181_v60 }
 0x151   : > { %v628_v51 = vadd.f32 1.0, %v1739_v49  ;;  %1565 = vmatpush3.bf16.msra.mxu1 %v1687_v2 }
 0x152   : > { %v1741_v43 = vpop.eup %1740  ;;  %v676_v52 = vpack.c.bf16 %v667_v38, %v666_v50  ;;  %1566 = vmatprep.subr.bf16.mxu1 %v1913_v3 }
 0x153   : > { %1746 = vrcp.f32 %v628_v51  ;;  %v629_v53 = vadd.f32 1.0, %v1741_v43 }
 0x154   : > { %1551 = vmatmul.mubr.bf16.gmra.mrb[4].mxu1 %v676_v52 }
 0x155   : > { %v1743_v54 = vpop.eup %1742  ;;  %1748 = vrcp.f32 %v629_v53  ;;  %1554 = vmatprep.mubr.msk.bf16.mxu1 %vm1914_vm1, %v1913_v3  ;;  %1567 = vmatpush3.bf16.msra.mxu1 %v1688_v6 }
 0x156   : > { %v668_v57 = vmul.f32 %v1743_v54, %v2189_v11  ;;  %1568 = vmatprep.subr.bf16.mxu1 %v1913_v3  ;;  %v1693_v11 = vld [vmem:[%s2549_s4 + $0x38] sm:$0xff]  }
 0x157   : > { %v1745_v56 = vpop.eup %1744 }
 0x158   : > { %v669_v58 = vmul.f32 %v1745_v56, %v563_v18 }
 0x159   : > { %1569 = vmatpush3.bf16.msra.mxu1 %v1689_v7 }
 0x15a   : > { %v677_v59 = vpack.c.bf16 %v669_v58, %v668_v57  ;;  %1570 = vmatprep.subr.bf16.mxu1 %v1913_v3 }
 0x15c   : > { %1555 = vmatmul.mubr.bf16.gmra.mrb[8].mxu1 %v677_v59 }
 0x15d   : > { %v1747_v55 = vpop.eup %1746  ;;  %1558 = vmatprep.mubr.msk.bf16.mxu1 %vm1914_vm1, %v1913_v3  ;;  %1571 = vmatpush3.bf16.msra.mxu1 %v1690_v8 }
 0x15e   : > { %v670_v61 = vmul.f32 %v1747_v55, %v568_v29  ;;  %1572 = vmatprep.subr.bf16.mxu1 %v1913_v3 }
 0x15f   : > { %v1749_v60 = vpop.eup %1748 }
 0x160   : > { %v671_v62 = vmul.f32 %v1749_v60, %v571_v36 }
 0x161   : > { %1573 = vmatpush3.bf16.msra.mxu1 %v1691_v9 }
 0x162   : > { %v678_v63 = vpack.c.bf16 %v671_v62, %v670_v61  ;;  %1574 = vmatprep.subr.bf16.mxu1 %v1913_v3 }
 0x164   : > { %1559 = vmatmul.mubr.bf16.gmra.mrb[12].mxu1 %v678_v63 }
 0x165   : > { %1578 = vmatprep.mubr.msk.bf16.mxu1 %vm1914_vm1, %v1913_v3  ;;  %1575 = vmatpush3.bf16.msra.mxu1 %v1692_v10 }
 0x166   : > { %1576 = vmatprep.subr.bf16.mxu1 %v1913_v3 }
 0x169   : > { %1577 = vmatpush3.bf16.msra.mxu1 %v1693_v11 }
 0x207   : > { %v781_v14 = vpop.f32.mrb[28].mxu0 }
 0x208   : > { %v782_v16 = vadd.f32 %v781_v14, %v2245_v13  ;;  %v1536_v17 = vpop.f32.mrb[29].mxu0 }
 0x209   : > { %v784_v18 = vpop.f32.mrb[30].mxu0 }
 0x20a   : > { %v1458_v20 = vmul.f32 -1.442695, %v782_v16  ;;  %v785_v15 = vadd.f32 %v784_v18, %v2245_v13  ;;  %v1537_v19 = vpop.f32.mrb[31].mxu0 }
 0x20c   : > { %1750 = vpow2.f32 %v1458_v20  ;;  %v1459_v21 = vmul.f32 -1.442695, %v785_v15 }
 0x20e   : > { %1752 = vpow2.f32 %v1459_v21 }
 0x20f   : > { %v789_v22 = vpop.f32.mrb[32].mxu0 }
 0x210   : > { %v2250_v23 = vadd.f32 %v789_v22, %v2245_v13  ;;  %v1540_v24 = vpop.f32.mrb[33].mxu0 }
 0x211   : > { %v792_v25 = vpop.f32.mrb[34].mxu0 }
 0x212   : > { %v1460_v27 = vmul.f32 -1.442695, %v2250_v23  ;;  %v2254_v28 = vadd.f32 %v792_v25, %v2245_v13  ;;  %v1541_v29 = vpop.f32.mrb[35].mxu0 }
 0x214   : > { %1754 = vpow2.f32 %v1460_v27  ;;  %v1461_v30 = vmul.f32 -1.442695, %v2254_v28 }
 0x216   : > { %v1751_v32 = vpop.eup %1750  ;;  %1756 = vpow2.f32 %v1461_v30 }
 0x217   : > { %v878_v33 = vadd.f32 1.0, %v1751_v32  ;;  %v797_v34 = vpop.f32.mrb[36].mxu0 }
 0x218   : > { %v1753_v35 = vpop.eup %1752  ;;  %v2258_v36 = vadd.f32 %v797_v34, %v2245_v13  ;;  %v1544_v37 = vpop.f32.mrb[37].mxu0 }
 0x219   : > { %1758 = vrcp.f32 %v878_v33  ;;  %v879_v39 = vadd.f32 1.0, %v1753_v35  ;;  %v800_v26 = vpop.f32.mrb[38].mxu0 }
 0x21a   : > { %v1462_v31 = vmul.f32 -1.442695, %v2258_v36  ;;  %v2262_v40 = vadd.f32 %v800_v26, %v2245_v13  ;;  %v1545_v41 = vpop.f32.mrb[39].mxu0 }
 0x21b   : > { %1760 = vrcp.f32 %v879_v39 }
 0x21c   : > { %1762 = vpow2.f32 %v1462_v31  ;;  %v1463_v42 = vmul.f32 -1.442695, %v2262_v40 }
 0x21e   : > { %v1755_v44 = vpop.eup %1754  ;;  %1764 = vpow2.f32 %v1463_v42 }
 0x21f   : > { %v880_v45 = vadd.f32 1.0, %v1755_v44  ;;  %v805_v46 = vpop.f32.mrb[0].mxu1 }
 0x220   : > { %v1757_v47 = vpop.eup %1756  ;;  %v2266_v5 = vadd.f32 %v805_v46, %v2245_v13  ;;  %v1548_v48 = vpop.f32.mrb[1].mxu1 }
 0x221   : > { %1766 = vrcp.f32 %v880_v45  ;;  %v881_v49 = vadd.f32 1.0, %v1757_v47  ;;  %v808_v50 = vpop.f32.mrb[2].mxu1 }
 0x222   : > { %v1464_v38 = vmul.f32 -1.442695, %v2266_v5  ;;  %v2270_v51 = vadd.f32 %v808_v50, %v2245_v13  ;;  %v1549_v43 = vpop.f32.mrb[3].mxu1 }
 0x223   : > { %v1759_v52 = vpop.eup %1758  ;;  %1768 = vrcp.f32 %v881_v49 }
 0x224   : > { %1770 = vpow2.f32 %v1464_v38  ;;  %v1465_v53 = vmul.f32 -1.442695, %v2270_v51  ;;  %v920_v57 = vmul.f32 %v1759_v52, %v782_v16 }
 0x225   : > { %v1761_v54 = vpop.eup %1760 }
 0x226   : > { %v1763_v56 = vpop.eup %1762  ;;  %v921_v58 = vmul.f32 %v1761_v54, %v785_v15  ;;  %1772 = vpow2.f32 %v1465_v53 }
 0x227   : > { %v882_v59 = vadd.f32 1.0, %v1763_v56  ;;  %v813_v55 = vpop.f32.mrb[4].mxu1 }
 0x228   : > { %v1765_v60 = vpop.eup %1764  ;;  %v934_v61 = vpack.c.bf16 %v921_v58, %v920_v57  ;;  %v2274_v62 = vadd.f32 %v813_v55, %v2245_v13  ;;  %v1552_v63 = vpop.f32.mrb[5].mxu1 }
 0x229   : > { %1774 = vrcp.f32 %v882_v59  ;;  %v883_v0 = vadd.f32 1.0, %v1765_v60  ;;  %v816_v2 = vpop.f32.mrb[6].mxu1 }
 0x22a   : > { %v1466_v6 = vmul.f32 -1.442695, %v2274_v62  ;;  %v2278_v7 = vadd.f32 %v816_v2, %v2245_v13  ;;  %v1553_v8 = vpop.f32.mrb[7].mxu1  ;;  %1579 = vmatmul.mubr.bf16.vlgmr.msra.gmra.mrb[16].mxu1 %v934_v61 }
 0x22b   : > { %v1767_v9 = vpop.eup %1766  ;;  %1776 = vrcp.f32 %v883_v0  ;;  %1582 = vmatprep.mubr.msk.bf16.mxu1 %vm1914_vm1, %v1913_v3 }
 0x22c   : > { %1778 = vpow2.f32 %v1466_v6  ;;  %v1467_v10 = vmul.f32 -1.442695, %v2278_v7  ;;  %v922_v14 = vmul.f32 %v1767_v9, %v2250_v23 }
 0x22d   : > { %v1769_v11 = vpop.eup %1768 }
 0x22e   : > { %v1771_v12 = vpop.eup %1770  ;;  %v923_v16 = vmul.f32 %v1769_v11, %v2254_v28  ;;  %1780 = vpow2.f32 %v1467_v10  ;;  %v959_v11 = vsub.s32 2, %v2139_v1 }
 0x22f   : > { %v884_v17 = vadd.f32 1.0, %v1771_v12  ;;  %v821_v18 = vpop.f32.mrb[8].mxu1 }
 0x230   : > { %v1773_v20 = vpop.eup %1772  ;;  %v2286_v15 = vadd.f32 %v821_v18, %v2245_v13  ;;  %v1556_v19 = vpop.f32.mrb[9].mxu1  ;;  %v935_v21 = vpack.c.bf16 %v923_v16, %v922_v14  ;;  %v960_v12 = vrot.slane %v2145_v4, %v959_v11 }
 0x231   : > { %1782 = vrcp.f32 %v884_v17  ;;  %v885_v22 = vadd.f32 1.0, %v1773_v20  ;;  %v824_v24 = vpop.f32.mrb[10].mxu1 }
 0x232   : > { %v1468_v25 = vmul.f32 -1.442695, %v2286_v15  ;;  %v825_v27 = vadd.f32 %v824_v24, %v2245_v13  ;;  %v1557_v29 = vpop.f32.mrb[11].mxu1  ;;  %1583 = vmatmul.mubr.bf16.gmra.mrb[20].mxu1 %v935_v21 }
 0x233   : > { %v1775_v23 = vpop.eup %1774  ;;  %1784 = vrcp.f32 %v885_v22  ;;  %1586 = vmatprep.mubr.msk.bf16.mxu1 %vm1914_vm1, %v1913_v3 }
 0x234   : > { %1786 = vpow2.f32 %v1468_v25  ;;  %v1469_v28 = vmul.f32 -1.442695, %v825_v27  ;;  %v924_v33 = vmul.f32 %v1775_v23, %v2258_v36 }
 0x235   : > { %v1777_v30 = vpop.eup %1776 }
 0x236   : > { %v1779_v32 = vpop.eup %1778  ;;  %v925_v34 = vmul.f32 %v1777_v30, %v2262_v40  ;;  %1788 = vpow2.f32 %v1469_v28 }
 0x237   : > { %v886_v35 = vadd.f32 1.0, %v1779_v32  ;;  %v829_v37 = vpop.f32.mrb[12].mxu1 }
 0x238   : > { %v1781_v39 = vpop.eup %1780  ;;  %v830_v26 = vadd.f32 %v829_v37, %v2245_v13  ;;  %v1560_v31 = vpop.f32.mrb[13].mxu1  ;;  %v936_v41 = vpack.c.bf16 %v925_v34, %v924_v33 }
 0x239   : > { %1790 = vrcp.f32 %v886_v35  ;;  %v887_v42 = vadd.f32 1.0, %v1781_v39  ;;  %v832_v44 = vpop.f32.mrb[14].mxu1 }
 0x23a   : > { %v1470_v45 = vmul.f32 -1.442695, %v830_v26  ;;  %v833_v46 = vadd.f32 %v832_v44, %v2245_v13  ;;  %v1561_v47 = vpop.f32.mrb[15].mxu1  ;;  %1587 = vmatmul.mubr.bf16.gmra.mrb[24].mxu1 %v936_v41 }
 0x23b   : > { %v1783_v48 = vpop.eup %1782  ;;  %1792 = vrcp.f32 %v887_v42  ;;  %1590 = vmatprep.mubr.msk.bf16.mxu1 %vm1914_vm1, %v1913_v3 }
 0x23c   : > { %1794 = vpow2.f32 %v1470_v45  ;;  %v1471_v36 = vmul.f32 -1.442695, %v833_v46  ;;  %v926_v50 = vmul.f32 %v1783_v48, %v2266_v5 }
 0x23d   : > { %v1785_v40 = vpop.eup %1784 }
 0x23e   : > { %v1787_v49 = vpop.eup %1786  ;;  %v927_v38 = vmul.f32 %v1785_v40, %v2270_v51  ;;  %1796 = vpow2.f32 %v1471_v36 }
 0x23f   : > { %v888_v43 = vadd.f32 1.0, %v1787_v49 }
 0x240   : > { %v1789_v52 = vpop.eup %1788  ;;  %v937_v53 = vpack.c.bf16 %v927_v38, %v926_v50 }
 0x241   : > { %1798 = vrcp.f32 %v888_v43  ;;  %v889_v13 = vadd.f32 1.0, %v1789_v52 }
 0x242   : > { %1591 = vmatmul.mubr.bf16.gmra.mrb[28].mxu1 %v937_v53 }
 0x243   : > { %v1791_v54 = vpop.eup %1790  ;;  %1800 = vrcp.f32 %v889_v13  ;;  %1594 = vmatprep.mubr.msk.bf16.mxu1 %vm1914_vm1, %v1913_v3 }
 0x244   : > { %v928_v58 = vmul.f32 %v1791_v54, %v2274_v62 }
 0x245   : > { %v1793_v56 = vpop.eup %1792 }
 0x246   : > { %v1795_v57 = vpop.eup %1794  ;;  %v929_v5 = vmul.f32 %v1793_v56, %v2278_v7 }
 0x247   : > { %v890_v59 = vadd.f32 1.0, %v1795_v57 }
 0x248   : > { %v1797_v51 = vpop.eup %1796  ;;  %v938_v55 = vpack.c.bf16 %v929_v5, %v928_v58 }
 0x249   : > { %1802 = vrcp.f32 %v890_v59  ;;  %v891_v60 = vadd.f32 1.0, %v1797_v51 }
 0x24a   : > { %1595 = vmatmul.mubr.bf16.gmra.mrb[32].mxu1 %v938_v55 }
 0x24b   : > { %v1799_v61 = vpop.eup %1798  ;;  %1804 = vrcp.f32 %v891_v60  ;;  %1598 = vmatprep.mubr.msk.bf16.mxu1 %vm1914_vm1, %v1913_v3 }
 0x24c   : > { %v930_v0 = vmul.f32 %v1799_v61, %v2286_v15 }
 0x24d   : > { %v1801_v63 = vpop.eup %1800 }
 0x24e   : > { %v931_v2 = vmul.f32 %v1801_v63, %v825_v27 }
 0x250   : > { %v939_v6 = vpack.c.bf16 %v931_v2, %v930_v0 }
 0x252   : > { %1599 = vmatmul.mubr.bf16.gmra.mrb[36].mxu1 %v939_v6 }
 0x253   : > { %v1803_v62 = vpop.eup %1802  ;;  %1602 = vmatprep.mubr.msk.bf16.mxu1 %vm1914_vm1, %v1913_v3 }
 0x254   : > { %v932_v8 = vmul.f32 %v1803_v62, %v830_v26 }
 0x255   : > { %v1805_v7 = vpop.eup %1804 }
 0x256   : > { %v933_v9 = vmul.f32 %v1805_v7, %v833_v46 }
 0x258   : > { %v940_v10 = vpack.c.bf16 %v933_v9, %v932_v8 }
 0x25a   : > { %1603 = vmatmul.mubr.bf16.gmra.mrb[40].mxu1 %v940_v10 }
 0x2fd   : > { %v1043_v14 = vpop.f32.mrb[16].mxu1 }
 0x2fe   : > { %v1044_v16 = vadd.f32 %v1043_v14, %v960_v12  ;;  %v1580_v17 = vpop.f32.mrb[17].mxu1 }
 0x2ff   : > { %v1046_v18 = vpop.f32.mrb[18].mxu1 }
 0x300   : > { %1098 = vadd.xlane.f32.xlu0 %v1044_v16  ;;  %v1581_v20 = vpop.f32.mrb[19].mxu1  ;;  %v1047_v15 = vadd.f32 %v1046_v18, %v960_v12 }
 0x304   : > { %1100 = vadd.xlane.f32.xlu0 %v1047_v15 }
 0x305   : > { %v1051_v19 = vpop.f32.mrb[20].mxu1 }
 0x306   : > { %v1052_v21 = vadd.f32 %v1051_v19, %v960_v12  ;;  %v1584_v3 = vpop.f32.mrb[21].mxu1 }
 0x307   : > { %v1054_v22 = vpop.f32.mrb[22].mxu1 }
 0x308   : > { %1102 = vadd.xlane.f32.xlu1 %v1052_v21  ;;  %v1585_v24 = vpop.f32.mrb[23].mxu1  ;;  %v1055_v25 = vadd.f32 %v1054_v22, %v960_v12 }
 0x30c   : > { %1104 = vadd.xlane.f32.xlu1 %v1055_v25 }
 0x30d   : > { %v1059_v27 = vpop.f32.mrb[24].mxu1 }
 0x30e   : > { %v1060_v29 = vadd.f32 %v1059_v27, %v960_v12  ;;  %v1588_v23 = vpop.f32.mrb[25].mxu1 }
 0x30f   : > { %v1062_v28 = vpop.f32.mrb[26].mxu1 }
 0x310   : > { %v1063_v30 = vadd.f32 %v1062_v28, %v960_v12  ;;  %1106 = vadd.xlane.f32.xlu0 %v1060_v29  ;;  %v1589_v32 = vpop.f32.mrb[27].mxu1 }
 0x312   : > { %1108 = vadd.xlane.f32.xlu1 %v1063_v30 }
 0x315   : > { %v1067_v33 = vpop.f32.mrb[28].mxu1 }
 0x316   : > { %v2311_v34 = vadd.f32 %v1067_v33, %v960_v12  ;;  %v1592_v35 = vpop.f32.mrb[29].mxu1 }
 0x317   : > { %v1070_v37 = vpop.f32.mrb[30].mxu1 }
 0x318   : > { %v2313_v39 = vadd.f32 %v1070_v37, %v960_v12  ;;  %1110 = vadd.xlane.f32.xlu0 %v2311_v34  ;;  %v1593_v26 = vpop.f32.mrb[31].mxu1 }
 0x31a   : > { %1112 = vadd.xlane.f32.xlu1 %v2313_v39 }
 0x31d   : > { %v1075_v31 = vpop.f32.mrb[32].mxu1 }
 0x31e   : > { %v2317_v41 = vadd.f32 %v1075_v31, %v960_v12  ;;  %v1596_v42 = vpop.f32.mrb[33].mxu1 }
 0x31f   : > { %v1078_v44 = vpop.f32.mrb[34].mxu1 }
 0x320   : > { %v2319_v45 = vadd.f32 %v1078_v44, %v960_v12  ;;  %1114 = vadd.xlane.f32.xlu0 %v2317_v41  ;;  %v1597_v46 = vpop.f32.mrb[35].mxu1 }
 0x322   : > { %1116 = vadd.xlane.f32.xlu1 %v2319_v45 }
 0x325   : > { %v1083_v47 = vpop.f32.mrb[36].mxu1 }
 0x326   : > { %v2323_v48 = vadd.f32 %v1083_v47, %v960_v12  ;;  %v1600_v36 = vpop.f32.mrb[37].mxu1 }
 0x327   : > { %v1086_v40 = vpop.f32.mrb[38].mxu1 }
 0x328   : > { %v2325_v49 = vadd.f32 %v1086_v40, %v960_v12  ;;  %1118 = vadd.xlane.f32.xlu0 %v2323_v48  ;;  %v1601_v50 = vpop.f32.mrb[39].mxu1 }
 0x32a   : > { %1120 = vadd.xlane.f32.xlu1 %v2325_v49 }
 0x32d   : > { %v1091_v38 = vpop.f32.mrb[40].mxu1 }
 0x32e   : > { %v2329_v43 = vadd.f32 %v1091_v38, %v960_v12  ;;  %v1604_v52 = vpop.f32.mrb[41].mxu1 }
 0x32f   : > { %v1094_v53 = vpop.f32.mrb[42].mxu1 }
 0x330   : > { %v2331_v13 = vadd.f32 %v1094_v53, %v960_v12  ;;  %1122 = vadd.xlane.f32.xlu0 %v2329_v43  ;;  %v1605_v54 = vpop.f32.mrb[43].mxu1 }
 0x332   : > { %1124 = vadd.xlane.f32.xlu1 %v2331_v13 }
 0x38d   : > { %v1099_v56 = vpop.xlane.xlu0 %1098 }
 0x38e   : > { %v1127_v57 = vmul.f32 0.0078125, %v1099_v56 }
 0x390   : > { %v2335_v58 = vsub.f32 %v1044_v16, %v1127_v57 }
 0x391   : > { %v1101_v5 = vpop.xlane.xlu0 %1100 }
 0x392   : > { %v1128_v59 = vmul.f32 0.0078125, %v1101_v5  ;;  %v1155_v51 = vmul.f32 %v2335_v58, %v2335_v58  ;;  %v1255_v5 = vsub.s32 3, %v2139_v1 }
 0x394   : > { %v2339_v55 = vsub.f32 %v1047_v15, %v1128_v59  ;;  %1169 = vadd.xlane.f32.xlu0 %v1155_v51  ;;  %v1273_v51 = vsub.s32 4, %v2139_v1 }
 0x395   : > { %v1103_v60 = vpop.xlane.xlu1 %1102 }
 0x396   : > { %v1129_v61 = vmul.f32 0.0078125, %v1103_v60  ;;  %v1156_v63 = vmul.f32 %v2339_v55, %v2339_v55 }
 0x398   : > { %v2343_v0 = vsub.f32 %v1052_v21, %v1129_v61  ;;  %1171 = vadd.xlane.f32.xlu1 %v1156_v63  ;;  %v2403_v63 = vrot.slane %v2145_v4, %v1255_v5 }
 0x399   : > { %v1105_v2 = vpop.xlane.xlu1 %1104 }
 0x39a   : > { %v1130_v6 = vmul.f32 0.0078125, %v1105_v2  ;;  %v1157_v62 = vmul.f32 %v2343_v0, %v2343_v0 }
 0x39c   : > { %v2347_v7 = vsub.f32 %v1055_v25, %v1130_v6  ;;  %1173 = vadd.xlane.f32.xlu0 %v1157_v62  ;;  %v2406_v62 = vrot.slane %v2145_v4, %v1273_v51  ;;  %v1838_v51 = vld [vmem:[%s2070_s29 + $0x20] sm:$0xff] }
 0x39d   : > { %v1107_v8 = vpop.xlane.xlu0 %1106 }
 0x39e   : > { %v1131_v9 = vmul.f32 0.0078125, %v1107_v8  ;;  %v1158_v10 = vmul.f32 %v2347_v7, %v2347_v7 }
 0x39f   : > { %v1109_v11 = vpop.xlane.xlu1 %1108 }
 0x3a0   : > { %v2351_v12 = vsub.f32 %v1060_v29, %v1131_v9  ;;  %v1132_v14 = vmul.f32 0.0078125, %v1109_v11  ;;  %1175 = vadd.xlane.f32.xlu1 %v1158_v10 }
 0x3a2   : > { %v2353_v16 = vsub.f32 %v1063_v30, %v1132_v14  ;;  %v1159_v17 = vmul.f32 %v2351_v12, %v2351_v12 }
 0x3a4   : > { %1177 = vadd.xlane.f32.xlu0 %v1159_v17  ;;  %v1160_v18 = vmul.f32 %v2353_v16, %v2353_v16 }
 0x3a5   : > { %v1111_v20 = vpop.xlane.xlu0 %1110 }
 0x3a6   : > { %v1133_v15 = vmul.f32 0.0078125, %v1111_v20  ;;  %1179 = vadd.xlane.f32.xlu1 %v1160_v18 }
 0x3a7   : > { %v1113_v19 = vpop.xlane.xlu1 %1112 }
 0x3a8   : > { %v2360_v21 = vsub.f32 %v2311_v34, %v1133_v15  ;;  %v1134_v3 = vmul.f32 0.0078125, %v1113_v19  ;;  %v1834_v19 = vld [vmem:[%s2070_s29] sm:$0xff] }
 0x3aa   : > { %v2363_v22 = vsub.f32 %v2313_v39, %v1134_v3  ;;  %v1161_v24 = vmul.f32 %v2360_v21, %v2360_v21 }
 0x3ac   : > { %1181 = vadd.xlane.f32.xlu0 %v1161_v24  ;;  %v1162_v25 = vmul.f32 %v2363_v22, %v2363_v22 }
 0x3ad   : > { %v1115_v27 = vpop.xlane.xlu0 %1114 }
 0x3ae   : > { %v1135_v29 = vmul.f32 0.0078125, %v1115_v27  ;;  %1183 = vadd.xlane.f32.xlu1 %v1162_v25 }
 0x3af   : > { %v1117_v23 = vpop.xlane.xlu1 %1116 }
 0x3b0   : > { %v2370_v28 = vsub.f32 %v2317_v41, %v1135_v29  ;;  %v1136_v30 = vmul.f32 0.0078125, %v1117_v23  ;;  %v1835_v23 = vld [vmem:[%s2070_s29 + $0x8] sm:$0xff] }
 0x3b2   : > { %v2373_v32 = vsub.f32 %v2319_v45, %v1136_v30  ;;  %v1163_v33 = vmul.f32 %v2370_v28, %v2370_v28 }
 0x3b4   : > { %1185 = vadd.xlane.f32.xlu0 %v1163_v33  ;;  %v1164_v34 = vmul.f32 %v2373_v32, %v2373_v32 }
 0x3b5   : > { %v1119_v35 = vpop.xlane.xlu0 %1118 }
 0x3b6   : > { %v1137_v37 = vmul.f32 0.0078125, %v1119_v35  ;;  %1187 = vadd.xlane.f32.xlu1 %v1164_v34 }
 0x3b7   : > { %v1121_v39 = vpop.xlane.xlu1 %1120 }
 0x3b8   : > { %v2380_v26 = vsub.f32 %v2323_v48, %v1137_v37  ;;  %v1138_v31 = vmul.f32 0.0078125, %v1121_v39 }
 0x3ba   : > { %v2384_v41 = vsub.f32 %v2325_v49, %v1138_v31  ;;  %v1165_v42 = vmul.f32 %v2380_v26, %v2380_v26 }
 0x3bc   : > { %1189 = vadd.xlane.f32.xlu0 %v1165_v42  ;;  %v1166_v44 = vmul.f32 %v2384_v41, %v2384_v41 }
 0x3bd   : > { %v1123_v45 = vpop.xlane.xlu0 %1122 }
 0x3be   : > { %v1139_v46 = vmul.f32 0.0078125, %v1123_v45  ;;  %1191 = vadd.xlane.f32.xlu1 %v1166_v44 }
 0x3bf   : > { %v1125_v47 = vpop.xlane.xlu1 %1124 }
 0x3c0   : > { %v2391_v36 = vsub.f32 %v2329_v43, %v1139_v46  ;;  %v1140_v48 = vmul.f32 0.0078125, %v1125_v47 }
 0x3c2   : > { %v2394_v40 = vsub.f32 %v2331_v13, %v1140_v48  ;;  %v1167_v49 = vmul.f32 %v2391_v36, %v2391_v36 }
 0x3c4   : > { %1193 = vadd.xlane.f32.xlu0 %v1167_v49  ;;  %v1168_v50 = vmul.f32 %v2394_v40, %v2394_v40 }
 0x3c6   : > { %1195 = vadd.xlane.f32.xlu1 %v1168_v50 }
 0x421   : > { %v1170_v38 = vpop.xlane.xlu0 %1169 }
 0x422   : > { %v1197_v52 = vmul.f32 0.0078125, %v1170_v38 }
 0x424   : > { %v1211_v53 = vadd.f32 1e-05, %v1197_v52 }
 0x425   : > { %v1172_v54 = vpop.xlane.xlu1 %1171 }
 0x426   : > { %1806 = vrsqrt.f32 %v1211_v53  ;;  %v1198_v56 = vmul.f32 0.0078125, %v1172_v54  ;;  %v1837_v53 = vld [vmem:[%s2070_s29 + $0x18] sm:$0xff] }
 0x428   : > { %v1212_v43 = vadd.f32 1e-05, %v1198_v56 }
 0x429   : > { %v1174_v57 = vpop.xlane.xlu0 %1173 }
 0x42a   : > { %1808 = vrsqrt.f32 %v1212_v43  ;;  %v1199_v13 = vmul.f32 0.0078125, %v1174_v57 }
 0x42c   : > { %v1213_v59 = vadd.f32 1e-05, %v1199_v13 }
 0x42d   : > { %v1176_v60 = vpop.xlane.xlu1 %1175 }
 0x42e   : > { %1810 = vrsqrt.f32 %v1213_v59  ;;  %v1200_v61 = vmul.f32 0.0078125, %v1176_v60 }
 0x430   : > { %v1807_v2 = vpop.eup %1806  ;;  %v1214_v6 = vadd.f32 1e-05, %v1200_v61 }
 0x431   : > { %v1239_v8 = vmul.f32 %v1807_v2, %v2335_v58  ;;  %v1178_v9 = vpop.xlane.xlu0 %1177 }
 0x432   : > { %1812 = vrsqrt.f32 %v1214_v6  ;;  %v1201_v10 = vmul.f32 0.0078125, %v1178_v9  ;;  %v1839_v6 = vld [vmem:[%s2070_s29 + $0x28] sm:$0xff] }
 0x433   : > { %v1257_v1 = vmul.f32 %v2403_v63, %v1239_v8  ;;  %v1180_v11 = vpop.xlane.xlu1 %1179 }
 0x434   : > { %v1809_v14 = vpop.eup %1808  ;;  %v1215_v17 = vadd.f32 1e-05, %v1201_v10  ;;  %v1202_v18 = vmul.f32 0.0078125, %v1180_v11 }
 0x435   : > { %v1275_v20 = vadd.f32 %v2406_v62, %v1257_v1  ;;  %v1240_v15 = vmul.f32 %v1809_v14, %v2339_v55 }
 0x436   : > { %1814 = vrsqrt.f32 %v1215_v17  ;;  %v1216_v4 = vadd.f32 1e-05, %v1202_v18 }
 0x437   : > { %v1289_v58 = vadd.f32 %v1834_v19, %v1275_v20  ;;  %v1258_v3 = vmul.f32 %v2403_v63, %v1240_v15  ;;  %v1840_v19 = vld [vmem:[%s2070_s29 + $0x30] sm:$0xff] }
 0x438   : > { %v1811_v24 = vpop.eup %1810  ;;  %1816 = vrsqrt.f32 %v1216_v4 }
 0x439   : > { %1303 = vst [vmem:[%s2416_s13] sm:$0xff] %v1289_v58  ;;  %v1276_v25 = vadd.f32 %v2406_v62, %v1258_v3  ;;  %v1241_v27 = vmul.f32 %v1811_v24, %v2343_v0  ;;  %v1182_v29 = vpop.xlane.xlu0 %1181  ;;  %v1836_v0 = vld [vmem:[%s2070_s29 + $0x10] sm:$0xff] }
 0x43a   : > { %v1203_v55 = vmul.f32 0.0078125, %v1182_v29 }
 0x43b   : > { %v1290_v30 = vadd.f32 %v1835_v23, %v1276_v25  ;;  %v1259_v33 = vmul.f32 %v2403_v63, %v1241_v27  ;;  %v1184_v34 = vpop.xlane.xlu1 %1183  ;;  %v1841_v25 = vld [vmem:[%s2070_s29 + $0x38] sm:$0xff] }
 0x43c   : > { %v1813_v35 = vpop.eup %1812  ;;  %v1217_v37 = vadd.f32 1e-05, %v1203_v55  ;;  %v1204_v39 = vmul.f32 0.0078125, %v1184_v34 }
 0x43d   : > { %1304 = vst [vmem:[%s2416_s13 + $0x8] sm:$0xff] %v1290_v30  ;;  %v1277_v31 = vadd.f32 %v2406_v62, %v1259_v33  ;;  %v1242_v42 = vmul.f32 %v1813_v35, %v2347_v7 }
 0x43e   : > { %1818 = vrsqrt.f32 %v1217_v37  ;;  %v1218_v44 = vadd.f32 1e-05, %v1204_v39 }
 0x43f   : > { %v1291_v45 = vadd.f32 %v1836_v0, %v1277_v31  ;;  %v1260_v46 = vmul.f32 %v2403_v63, %v1242_v42  ;;  %v1842_v42 = vld [vmem:[%s2070_s29 + $0x40] sm:$0xff] }
 0x440   : > { %v1815_v47 = vpop.eup %1814  ;;  %1820 = vrsqrt.f32 %v1218_v44 }
 0x441   : > { %1305 = vst [vmem:[%s2416_s13 + $0x10] sm:$0xff] %v1291_v45  ;;  %v1278_v48 = vadd.f32 %v2406_v62, %v1260_v46  ;;  %v1243_v49 = vmul.f32 %v1815_v47, %v2351_v12  ;;  %v1186_v50 = vpop.xlane.xlu0 %1185 }
 0x442   : > { %v1817_v38 = vpop.eup %1816  ;;  %v1205_v52 = vmul.f32 0.0078125, %v1186_v50 }
 0x443   : > { %v1292_v7 = vadd.f32 %v1837_v53, %v1278_v48  ;;  %v1261_v54 = vmul.f32 %v2403_v63, %v1243_v49  ;;  %v1244_v56 = vmul.f32 %v1817_v38, %v2353_v16  ;;  %v1188_v43 = vpop.xlane.xlu1 %1187  ;;  %v1844_v53 = vld [vmem:[%s2070_s29 + $0x50] sm:$0xff] }
 0x444   : > { %v1219_v57 = vadd.f32 1e-05, %v1205_v52  ;;  %v1206_v13 = vmul.f32 0.0078125, %v1188_v43 }
 0x445   : > { %1306 = vst [vmem:[%s2416_s13 + $0x18] sm:$0xff] %v1292_v7  ;;  %v1279_v5 = vadd.f32 %v2406_v62, %v1261_v54  ;;  %v1262_v12 = vmul.f32 %v2403_v63, %v1244_v56 }
 0x446   : > { %1822 = vrsqrt.f32 %v1219_v57  ;;  %v1220_v59 = vadd.f32 1e-05, %v1206_v13 }
 0x447   : > { %v1293_v60 = vadd.f32 %v1838_v51, %v1279_v5  ;;  %v1280_v61 = vadd.f32 %v2406_v62, %v1262_v12  ;;  %v1846_v51 = vld [vmem:[%s2070_s29 + $0x60] sm:$0xff] }
 0x448   : > { %v1819_v2 = vpop.eup %1818  ;;  %1824 = vrsqrt.f32 %v1220_v59 }
 0x449   : > { %1307 = vst [vmem:[%s2416_s13 + $0x20] sm:$0xff] %v1293_v60  ;;  %v1294_v16 = vadd.f32 %v1839_v6, %v1280_v61  ;;  %v1245_v8 = vmul.f32 %v1819_v2, %v2360_v21  ;;  %v1190_v9 = vpop.xlane.xlu0 %1189  ;;  %v1847_v2 = vld [vmem:[%s2070_s29 + $0x68] sm:$0xff] }
 0x44a   : > { %v1821_v10 = vpop.eup %1820  ;;  %v1207_v1 = vmul.f32 0.0078125, %v1190_v9 }
 0x44b   : > { %1308 = vst [vmem:[%s2416_s13 + $0x28] sm:$0xff] %v1294_v16  ;;  %v1263_v11 = vmul.f32 %v2403_v63, %v1245_v8  ;;  %v1246_v14 = vmul.f32 %v1821_v10, %v2363_v22  ;;  %v1192_v17 = vpop.xlane.xlu1 %1191 }
 0x44c   : > { %v1221_v18 = vadd.f32 1e-05, %v1207_v1  ;;  %v1208_v20 = vmul.f32 0.0078125, %v1192_v17 }
 0x44d   : > { %v1281_v15 = vadd.f32 %v2406_v62, %v1263_v11  ;;  %v1264_v4 = vmul.f32 %v2403_v63, %v1246_v14 }
 0x44e   : > { %1826 = vrsqrt.f32 %v1221_v18  ;;  %v1222_v21 = vadd.f32 1e-05, %v1208_v20 }
 0x44f   : > { %v1295_v58 = vadd.f32 %v1840_v19, %v1281_v15  ;;  %v1282_v3 = vadd.f32 %v2406_v62, %v1264_v4 }
 0x450   : > { %v1823_v24 = vpop.eup %1822  ;;  %1828 = vrsqrt.f32 %v1222_v21 }
 0x451   : > { %1309 = vst [vmem:[%s2416_s13 + $0x30] sm:$0xff] %v1295_v58  ;;  %v1296_v22 = vadd.f32 %v1841_v25, %v1282_v3  ;;  %v1247_v27 = vmul.f32 %v1823_v24, %v2370_v28  ;;  %v1194_v29 = vpop.xlane.xlu0 %1193 }
 0x452   : > { %v1825_v55 = vpop.eup %1824  ;;  %v1209_v23 = vmul.f32 0.0078125, %v1194_v29 }
 0x453   : > { %1310 = vst [vmem:[%s2416_s13 + $0x38] sm:$0xff] %v1296_v22  ;;  %v1265_v30 = vmul.f32 %v2403_v63, %v1247_v27  ;;  %v1248_v33 = vmul.f32 %v1825_v55, %v2373_v32  ;;  %v1196_v34 = vpop.xlane.xlu1 %1195  ;;  %v1843_v32 = vld [vmem:[%s2070_s29 + $0x48] sm:$0xff] }
 0x454   : > { %v1223_v35 = vadd.f32 1e-05, %v1209_v23  ;;  %v1210_v37 = vmul.f32 0.0078125, %v1196_v34 }
 0x455   : > { %v1283_v39 = vadd.f32 %v2406_v62, %v1265_v30  ;;  %v1266_v31 = vmul.f32 %v2403_v63, %v1248_v33 }
 0x456   : > { %1830 = vrsqrt.f32 %v1223_v35  ;;  %v1224_v28 = vadd.f32 1e-05, %v1210_v37 }
 0x457   : > { %v1297_v44 = vadd.f32 %v1842_v42, %v1283_v39  ;;  %v1284_v0 = vadd.f32 %v2406_v62, %v1266_v31 }
 0x458   : > { %v1827_v45 = vpop.eup %1826  ;;  %1832 = vrsqrt.f32 %v1224_v28 }
 0x459   : > { %1311 = vst [vmem:[%s2416_s13 + $0x40] sm:$0xff] %v1297_v44  ;;  %v1298_v46 = vadd.f32 %v1843_v32, %v1284_v0  ;;  %v1249_v47 = vmul.f32 %v1827_v45, %v2380_v26  ;;  %v1845_v26 = vld [vmem:[%s2070_s29 + $0x58] sm:$0xff] }
 0x45a   : > { %v1829_v48 = vpop.eup %1828 }
 0x45b   : > { %1312 = vst [vmem:[%s2416_s13 + $0x48] sm:$0xff] %v1298_v46  ;;  %v1267_v49 = vmul.f32 %v2403_v63, %v1249_v47  ;;  %v1250_v50 = vmul.f32 %v1829_v48, %v2384_v41 }
 0x45d   : > { %v1285_v38 = vadd.f32 %v2406_v62, %v1267_v49  ;;  %v1268_v52 = vmul.f32 %v2403_v63, %v1250_v50 }
 0x45f   : > { %v1299_v7 = vadd.f32 %v1844_v53, %v1285_v38  ;;  %v1286_v54 = vadd.f32 %v2406_v62, %v1268_v52 }
 0x460   : > { %v1831_v56 = vpop.eup %1830 }
 0x461   : > { %1313 = vst [vmem:[%s2416_s13 + $0x50] sm:$0xff] %v1299_v7  ;;  %v1300_v43 = vadd.f32 %v1845_v26, %v1286_v54  ;;  %v1251_v57 = vmul.f32 %v1831_v56, %v2391_v36 }
 0x462   : > { %v1833_v41 = vpop.eup %1832 }
 0x463   : > { %1314 = vst [vmem:[%s2416_s13 + $0x58] sm:$0xff] %v1300_v43  ;;  %v1269_v13 = vmul.f32 %v2403_v63, %v1251_v57  ;;  %v1252_v5 = vmul.f32 %v1833_v41, %v2394_v40 }
 0x465   : > { %v1287_v12 = vadd.f32 %v2406_v62, %v1269_v13  ;;  %v1270_v59 = vmul.f32 %v2403_v63, %v1252_v5  ;;  %1324 = sbr.rel (!%p1991_p5) target bundleno = 1160 (0x488), region = 48 }
 0x467   : > { %v1301_v60 = vadd.f32 %v1846_v51, %v1287_v12  ;;  %v1288_v61 = vadd.f32 %v2406_v62, %v1270_v59 }
 0x469   : > { %1315 = vst [vmem:[%s2416_s13 + $0x60] sm:$0xff] %v1301_v60  ;;  %v1302_v6 = vadd.f32 %v1847_v2, %v1288_v61 }
 0x46b   : > { %1316 = vst [vmem:[%s2416_s13 + $0x68] sm:$0xff] %v1302_v6 }
 0x46c   : > { %s2559_s16 = smov (!%p1327_p11, %s1326_s16), 14 }
 0x46d   : > { %s2489_s18 = sshll.u32 %s2559_s16, 7 }
 0x46e   : > { %s1331_s19 = ssub.s32 1792, %s2489_s18 }
 0x46f   : > { %1332 = vsyncadd %s2484_s15, %s1331_s19  ;;  %p1481_p12 = scmp.ne.s32.totalorder %s2489_s18, 0  ;;  %s1487_s29 = smul.u32 1792, %s1974_s25 }
 0x470   : > { %s1337_s26 = sshll.u32 %s2416_s13, 4  ;;  %s1915_s10 = smov [#allocation2]   ;;  %s2501_s26 = int_to_ptr.vmem [resolvable:$true] %s1337_s26 }
 0x471   : > { %s2499_s9 = scalar_lea.hbm %s2551_s6, %s1487_s29  ;;  %s1848_s11 = scalar_lea.vmem %s2501_s26, %s2489_s18 }
 0x472   : > { %p1849_p13 = scmp.ne.s32.totalorder %s2501_s26, %s1848_s11  ;;  %s1852_s14 = sshll.u32 %s1915_s10, 4  ;;  %s1853_s14 = int_to_ptr.vmem [resolvable:$false] %s1852_s14 }
 0x473   : > { %s1854_s25 = scalar_lea.vmem %s1853_s14, 3584  ;;  %p1855_p2 = scmp.lt.s32.totalorder %s2501_s26, %s1853_s14 }
 0x474   : > { %p1850_p0 = pnand %p1849_p13, %p1481_p12  ;;  %p1856_p3 = scmp.lt.s32.totalorder %s1854_s25, %s1848_s11 }
 0x476   : > { %p1851_p1 = pneg %p1850_p0  ;;  %p1857_p4 = por %p1856_p3, %p1855_p2 }
 0x478   : > { %p1858_p5 = pnand %p1857_p4, %p1851_p1 }
 0x47a   : > { %1861 = shalt.err (!%p1858_p5)
}
 0x47b   : > { %s1862_s17 = scalar_lea.hbm %s2499_s9, %s2489_s18  ;;  %s1866_s13 = scalar_lea.hbm %s2551_s6, 3200 }
 0x47c   : > { %p1863_p7 = scmp.ne.s32.totalorder %s2499_s9, %s1862_s17  ;;  %p1867_p10 = scmp.lt.u32.totalorder %s2499_s9, %s2551_s6 }
 0x47d   : > { %p1868_p11 = scmp.lt.u32.totalorder %s1866_s13, %s1862_s17  ;;  %p1870_p0 = scmp.lt.u32.totalorder %s1862_s17, %s2499_s9 }
 0x47e   : > { %p1864_p8 = pnand %p1863_p7, %p1481_p12 }
 0x47f   : > { %p1869_p13 = por %p1868_p11, %p1867_p10 }
 0x480   : > { %p1865_p9 = pneg %p1864_p8 }
 0x481   : > { %p1871_p1 = por %p1870_p0, %p1869_p13 }
 0x483   : > { %p1872_p2 = pnand %p1871_p1, %p1865_p9 }
 0x485   : > { %1875 = shalt.err (!%p1872_p2)
}
 0x486   : > { %s1916_s29 = smov 128   ;;  %s1917_s7 = smov 8  }
 0x487   : > { %1343 = dma.vmem_to_hbm [thread:$0]  (%p1481_p12), %s2501_s26, %s2489_s18, %s2499_s9, %s2484_s15, %s1916_s29, %s1916_s29, %s1917_s7  }
 0x488 PF: > { %p1628_p3 = scmp.ge.s32.totalorder %s1910_s24, 2  ;;  %s1352_s28 = sand.u32 1, %s1898_s21  }
 0x489   : > { %s1353_s11 = scalar_lea.sflag [#allocation3], %s1352_s28 }
 0x48a   : > { %p1625_p4 = pnand %p1628_p3, %p1995_p6 }
 0x48c   : > { %1893 = dma.done.wait (!%p1625_p4), %s1353_s11, 1792  }
 0x48d   : > { %1895 = vsyncadd (!%p1625_p4), %s1353_s11, 4294965504  ;;  %p16_p5 = scmp.ge.s32.totalorder %s1978_s27, 4   ;;  %s2554_s21 = smov %s1902_s22 }
 0x48e   : > { %s2555_s22 = smov %s1906_s23  ;;  %s2556_s23 = smov %s1989_s30 }
 0x48f   : > { %s2557_s24 = smov %s1978_s27  ;;  %18 = sbr.rel (!%p16_p5) target bundleno = 3 (0x3), region = 82 }
 0x496   :  { %1358 = vsyncpa [#allocation3], 1 }
 0x497   :  { %1360 = vsyncpa [#allocation3 + $0x1], 1 }

// kernel: gn_block_forward.2
= control target key start
LH: loop header
LB: loop body
LE: loop exit
PB: predicated region body
PF: predicated region fallthrough
CT: control target
= control target key end

     0   :  { %s5729_s0 = inlined_call_operand.vmem [shape: bf16[437,128], index: 0, kind: input, shape index: {}]   ;;  %s5730_s1 = inlined_call_operand.vmem [shape: bf16[437,128], index: 1, kind: input, shape index: {}]   ;;  %s5731_s2 = inlined_call_operand.vmem [shape: f32[437,128], index: 2, kind: input, shape index: {}]   ;;  %s5732_s3 = inlined_call_operand.vmem [shape: bf16[384,128], index: 3, kind: input, shape index: {}]   ;;  %s5733_s4 = inlined_call_operand.vmem [shape: bf16[128,128], index: 4, kind: input, shape index: {}]   ;;  %s5734_s5 = inlined_call_operand.vmem [shape: bf16[128,128], index: 5, kind: input, shape index: {}]   ;;  %s5735_s6 = inlined_call_operand.vmem [shape: f32[5,128], index: 6, kind: input, shape index: {}]   ;;  %s5736_s7 = inlined_call_operand.vmem [shape: bf16[437,64], index: 7, kind: output, shape index: {0}]   ;;  %s5737_s8 = inlined_call_operand.hbm [shape: f32[437,128], index: 8, kind: output, shape index: {1}]  }
   0x1   :  { %5738 = sst [smem:[#allocation7_spill]] %s5729_s0 }
   0x2   :  { %5739 = sst [smem:[#allocation8_spill]] %s5730_s1 }
   0x3   :  { %5740 = sst [smem:[#allocation9_spill]] %s5731_s2 }
   0x4   :  { %5741 = sst [smem:[#allocation10_spill]] %s5732_s3 }
   0x5   :  { %5742 = sst [smem:[#allocation11_spill]] %s5733_s4 }
   0x6   :  { %5743 = sst [smem:[#allocation12_spill]] %s5734_s5 }
   0x7   :  { %14 = vsyncpa [#allocation4], 0 }
   0x8   :  { %16 = vsyncpa [#allocation4 + $0x1], 0  ;;  %s4358_s27 = smov 0   ;;  %s4360_s28 = smov 0  }
   0x9   :  { %s4362_s29 = smov 0   ;;  %s4364_s30 = smov 0  }
   0xa LB: > { %s4379_s9 = sadd.s32 4294967295, %s4275_s30   ;;  %s3172_s10 = sadd.s32 4294967294, %s4275_s30   ;;  %s4275_s30 = sphi %s4364_s30, %s5762_s30   ;;  %s4271_s29 = sphi %s4362_s29, %s5761_s29   ;;  %s4267_s28 = sphi %s4360_s28, %s5760_s28   ;;  %s4263_s27 = sphi %s4358_s27, %s5759_s27  }
   0xb   : > { %s4383_s11 = sadd.s32 1, %s4275_s30   ;;  %s191_s12 = sadd.s32 1, %s4271_s29 }
   0xc   : > { %s188_s13 = ssub.s32 %s4275_s30, %s4383_s11  ;;  %p201_p0 = scmp.ne.s32.totalorder %s4271_s29, %s4267_s28 }
   0xd   : > { %p189_p1 = scmp.eq.s32.totalorder %s188_s13, 0  ;;  %p202_p2 = scmp.eq.s32.totalorder %s4379_s9, 1 }
   0xe   : > { %p233_p3 = scmp.ne.s32.totalorder %s4267_s28, %s4263_s27  ;;  %p234_p4 = scmp.eq.s32.totalorder %s3172_s10, 1 }
   0xf   : > { %s4394_s14 = scalar_select %p189_p1, %s4271_s29, %s191_s12  }
  0x10   : > { %p4396_p5 = por %p202_p2, %p201_p0  ;;  %p4400_p6 = por %p234_p4, %p233_p3 }
  0x11   : > { %5744 = sst [smem:[#allocation6_spill]] %s4394_s14  ;;  %p3175_p7 = scmp.ge.s32.totalorder %s4275_s30, 1 }
  0x12   : > { %p315_p8 = scmp.lt.s32.totalorder %s4275_s30, 3 }
  0x14   : > { %p316_p9 = pnand %p3175_p7, %p315_p8 }
  0x15   : > { %s5747_s3 = sld [smem:[#allocation10_spill]] (!%p316_p9)  ;;  %s4425_s13 = smul.u32 (!%p316_p9), 28, %s4379_s9  ;;  %vm2708_vm0 = vcmask (!%p316_p9), 519168  }
  0x16   : > { %319 = sbr.rel (%p316_p9) target bundleno = 1436 (0x59c), region = 48  ;;  %s5748_s1 = sld [smem:[#allocation8_spill]] (!%p316_p9) }
  0x17   : > { %p380_p10 = scmp.lt.s32.totalorder (!%p316_p9), %s4425_s13, 54  ;;  %s5749_s0 = sld [smem:[#allocation7_spill]] (!%p316_p9) }
  0x18   : > { %s5750_s2 = sld [smem:[#allocation9_spill]] (!%p316_p9)  ;;  %s5751_s4 = sld [smem:[#allocation11_spill]] (!%p316_p9) }
  0x19   : > { %s5752_s5 = sld [smem:[#allocation12_spill]] (!%p316_p9)  ;;  %s5180_s18 = sand.u32 (!%p316_p9), 1, %s4267_s28  }
  0x1a   : > { %s3693_s20 = smul.u32 (!%p316_p9), 224, %s5180_s18  ;;  %s4309_s22 = smov (!%p316_p9), 64  }
  0x1b   : > { %v3800_v0 = vld [vmem:[%s5747_s3 + $0x40] sm:$0xff] (!%p316_p9)   ;;  %v3802_v2 = vld [vmem:[%s5747_s3 + $0x48] sm:$0xff] (!%p316_p9)   ;;  %v3805_v5 = vld [vmem:[%s5747_s3 + $0x50] sm:$0xff] (!%p316_p9)   ;;  %s3692_s14 = smul.u32 (!%p316_p9), 112, %s5180_s18 }
  0x1c   : > { %v3801_v1 = vld [vmem:[%s5747_s3] sm:$0xff] (!%p316_p9)   ;;  %3378 = vmatprep.subr.bf16.mxu0 (!%p316_p9), %v3800_v0  ;;  %v3804_v4 = vld [vmem:[%s5747_s3 + $0x8] sm:$0xff] (!%p316_p9)   ;;  %v3807_v7 = vld [vmem:[%s5747_s3 + $0x10] sm:$0xff] (!%p316_p9)  }
  0x1d   : > { %3379 = vmatpush3.bf16.msra.mxu0 %v3801_v1  ;;  %v3803_v3 = vld [vmem:[%s5747_s3 + $0x80] sm:$0xff]   ;;  %v3806_v6 = vld [vmem:[%s5747_s3 + $0x88] sm:$0xff]   ;;  %v3808_v8 = vld [vmem:[%s5747_s3 + $0x58] sm:$0xff]   ;;  %s381_s19 = scalar_select %p380_p10, %s4425_s13, 54 }
  0x1e   : > { %3380 = vmatprep.subr.bf16.mxu0 %v3802_v2  ;;  %3544 = vmatprep.subr.bf16.mxu1 %v3803_v3  ;;  %v3809_v9 = vld [vmem:[%s5747_s3 + $0x90] sm:$0xff]   ;;  %v3810_v10 = vld [vmem:[%s5747_s3 + $0x18] sm:$0xff]   ;;  %v3811_v11 = vld [vmem:[%s5747_s3 + $0x60] sm:$0xff]  }
  0x1f   : > { %3545 = vmatpush3.bf16.msra.mxu1 %v3803_v3  ;;  %v3812_v12 = vld [vmem:[%s5747_s3 + $0x98] sm:$0xff]   ;;  %v3813_v13 = vld [vmem:[%s5747_s3 + $0x20] sm:$0xff]   ;;  %v3814_v15 = vld [vmem:[%s5747_s3 + $0x68] sm:$0xff]   ;;  %s3176_s26 = sshll.u32 %s381_s19, 2  ;;  %s3178_s25 = sshll.u32 %s381_s19, 3 }
  0x20   : > { %3546 = vmatprep.subr.bf16.mxu1 %v3806_v6  ;;  %v3815_v14 = vld [vmem:[%s5747_s3 + $0xa0] sm:$0xff]   ;;  %v3816_v16 = vld [vmem:[%s5747_s3 + $0x28] sm:$0xff]   ;;  %v3817_v18 = vld [vmem:[%s5747_s3 + $0x70] sm:$0xff]   ;;  %s4471_s24 = scalar_lea.vmem %s5748_s1, %s3176_s26  ;;  %s4482_s21 = scalar_lea.vmem %s5749_s0, %s3176_s26 }
  0x21   : > { %3381 = vmatpush3.bf16.msra.mxu0 %v3804_v4  ;;  %v3818_v17 = vld [vmem:[%s5747_s3 + $0xa8] sm:$0xff]   ;;  %v3819_v19 = vld [vmem:[%s5747_s3 + $0x30] sm:$0xff]   ;;  %v3823_v21 = vld [vmem:[%s4471_s24] sm:$0xff]   ;;  %s4488_s23 = scalar_lea.vmem %s5750_s2, %s3178_s25  ;;  %s5199_s19 = scalar_lea.vmem [#allocation3], %s3693_s20 }
  0x22   : > { %3382 = vmatprep.subr.bf16.mxu0 %v3805_v5  ;;  %v3821_v20 = vld [vmem:[%s5747_s3 + $0xb0] sm:$0xff]   ;;  %v3820_v22 = vld [vmem:[%s5747_s3 + $0x78] sm:$0xff]   ;;  %923 = vmatprep.mubr.bf16.mxu0 %v3823_v21  ;;  %v485_v24 = vld [vmem:[%s4488_s23] sm:$0xff]  ;;  %s3376_s26 = smul.u32 (%p4396_p5), 112, %s4379_s9 }
  0x23   : > { %3547 = vmatpush3.bf16.msra.mxu1 %v3806_v6  ;;  %v3822_v23 = vld [vmem:[%s5747_s3 + $0x38] sm:$0xff]   ;;  %v486_v25 = vld [vmem:[%s4488_s23 + $0x8] sm:$0xff]  ;;  %v3824_v28 = vld [vmem:[%s4482_s21] sm:$0xff]  }
  0x24   : > { %3548 = vmatprep.subr.bf16.mxu1 %v3809_v9  ;;  %v3825_v26 = vld [vmem:[%s5747_s3 + $0xb8] sm:$0xff]   ;;  %v513_v27 = vpack.c.bf16 %v486_v25, %v485_v24  ;;  %v487_v29 = vld [vmem:[%s4488_s23 + $0x10] sm:$0xff]  ;;  %v3826_v31 = vld [vmem:[%s4471_s24 + $0x8] sm:$0xff]   ;;  %s5563_s25 = scalar_lea.vmem (%p4396_p5), %s5736_s7, %s3376_s26  }
  0x25   : > { %3383 = vmatpush3.bf16.msra.mxu0 %v3807_v7  ;;  %v488_v30 = vld [vmem:[%s4488_s23 + $0x18] sm:$0xff]  ;;  %v489_v32 = vld [vmem:[%s4488_s23 + $0x20] sm:$0xff]  ;;  %v490_v33 = vld [vmem:[%s4488_s23 + $0x28] sm:$0xff] }
  0x26   : > { %3384 = vmatprep.subr.bf16.mxu0 %v3808_v8  ;;  %3560 = vmatprep.mubr.bf16.mxu1 %v513_v27  ;;  %v514_v34 = vpack.c.bf16 %v488_v30, %v487_v29  ;;  %v515_v35 = vpack.c.bf16 %v490_v33, %v489_v32  ;;  %v3827_v36 = vld [vmem:[%s4482_s21 + $0x8] sm:$0xff]   ;;  %v3828_v37 = vld [vmem:[%s4471_s24 + $0x10] sm:$0xff]   ;;  %v492_v39 = vld [vmem:[%s4488_s23 + $0x38] sm:$0xff] }
  0x27   : > { %3549 = vmatpush3.bf16.msra.mxu1 %v3809_v9  ;;  %v491_v38 = vld [vmem:[%s4488_s23 + $0x30] sm:$0xff]  ;;  %v493_v40 = vld [vmem:[%s4488_s23 + $0x40] sm:$0xff]  ;;  %v494_v41 = vld [vmem:[%s4488_s23 + $0x48] sm:$0xff] }
  0x28   : > { %3550 = vmatprep.subr.bf16.mxu1 %v3812_v12  ;;  %v516_v42 = vpack.c.bf16 %v492_v39, %v491_v38  ;;  %v517_v43 = vpack.c.bf16 %v494_v41, %v493_v40  ;;  %v3829_v44 = vld [vmem:[%s4482_s21 + $0x10] sm:$0xff]   ;;  %v496_v46 = vld [vmem:[%s4488_s23 + $0x58] sm:$0xff]  ;;  %v497_v48 = vld [vmem:[%s4488_s23 + $0x60] sm:$0xff]  ;;  %v743_v38 = vlaneseq }
  0x29   : > { %3385 = vmatpush3.bf16.msra.mxu0 %v3810_v10  ;;  %v495_v45 = vld [vmem:[%s4488_s23 + $0x50] sm:$0xff]  ;;  %v3830_v47 = vld [vmem:[%s4471_s24 + $0x18] sm:$0xff]   ;;  %v498_v49 = vld [vmem:[%s4488_s23 + $0x68] sm:$0xff] }
  0x2a   : > { %3386 = vmatprep.subr.bf16.mxu0 %v3811_v11  ;;  %v518_v50 = vpack.c.bf16 %v496_v46, %v495_v45  ;;  %v519_v51 = vpack.c.bf16 %v498_v49, %v497_v48  ;;  %v3831_v52 = vld [vmem:[%s4482_s21 + $0x18] sm:$0xff]   ;;  %v3832_v53 = vld [vmem:[%s4471_s24 + $0x20] sm:$0xff]   ;;  %v499_v54 = vld [vmem:[%s4488_s23 + $0x70] sm:$0xff]  ;;  %v4578_v39 = vshrl.u32 %v743_v38, 7 }
  0x2b   : > { %3551 = vmatpush3.bf16.msra.mxu1 %v3812_v12  ;;  %v500_v55 = vld [vmem:[%s4488_s23 + $0x78] sm:$0xff]  ;;  %v501_v56 = vld [vmem:[%s4488_s23 + $0x80] sm:$0xff]  ;;  %v502_v57 = vld [vmem:[%s4488_s23 + $0x88] sm:$0xff] }
  0x2c   : > { %3552 = vmatprep.subr.bf16.mxu1 %v3815_v14  ;;  %v520_v58 = vpack.c.bf16 %v500_v55, %v499_v54  ;;  %v521_v59 = vpack.c.bf16 %v502_v57, %v501_v56  ;;  %v3833_v60 = vld [vmem:[%s4482_s21 + $0x20] sm:$0xff]   ;;  %v503_v61 = vld [vmem:[%s4488_s23 + $0x90] sm:$0xff]  ;;  %v504_v62 = vld [vmem:[%s4488_s23 + $0x98] sm:$0xff]  ;;  %v745_v40 = vsub.s32 0, %v4578_v39 }
  0x2d   : > { %3387 = vmatpush3.bf16.msra.mxu0 %v3813_v13  ;;  %v3834_v63 = vld [vmem:[%s4471_s24 + $0x28] sm:$0xff]   ;;  %v505_v0 = vld [vmem:[%s4488_s23 + $0xa0] sm:$0xff]  ;;  %v522_v2 = vpack.c.bf16 %v504_v62, %v503_v61  ;;  %v507_v5 = vld [vmem:[%s4488_s23 + $0xb0] sm:$0xff] }
  0x2e   : > { %3388 = vmatprep.subr.bf16.mxu0 %v3814_v15  ;;  %v506_v1 = vld [vmem:[%s4488_s23 + $0xa8] sm:$0xff]  ;;  %v508_v6 = vld [vmem:[%s4488_s23 + $0xb8] sm:$0xff]  ;;  %v3836_v7 = vld [vmem:[%s4471_s24 + $0x30] sm:$0xff]  }
  0x2f   : > { %3553 = vmatpush3.bf16.msra.mxu1 %v3815_v14  ;;  %v523_v3 = vpack.c.bf16 %v506_v1, %v505_v0  ;;  %v3835_v4 = vld [vmem:[%s4482_s21 + $0x28] sm:$0xff]   ;;  %v509_v8 = vld [vmem:[%s4488_s23 + $0xc0] sm:$0xff]  ;;  %v524_v10 = vpack.c.bf16 %v508_v6, %v507_v5  ;;  %v3837_v12 = vld [vmem:[%s4482_s21 + $0x30] sm:$0xff]  }
  0x30   : > { %3554 = vmatprep.subr.bf16.mxu1 %v3818_v17  ;;  %v510_v9 = vld [vmem:[%s4488_s23 + $0xc8] sm:$0xff]  ;;  %v511_v13 = vld [vmem:[%s4488_s23 + $0xd0] sm:$0xff]  ;;  %v512_v14 = vld [vmem:[%s4488_s23 + $0xd8] sm:$0xff] }
  0x31   : > { %3389 = vmatpush3.bf16.msra.mxu0 %v3816_v16  ;;  %v525_v11 = vpack.c.bf16 %v510_v9, %v509_v8  ;;  %v3838_v15 = vld [vmem:[%s4471_s24 + $0x38] sm:$0xff]   ;;  %v526_v16 = vpack.c.bf16 %v512_v14, %v511_v13  ;;  %v3843_v21 = vld [vmem:[%s4482_s21 + $0x48] sm:$0xff]   ;;  %v3849_v27 = vld [vmem:[%s4482_s21 + $0x60] sm:$0xff]  }
  0x32   : > { %3390 = vmatprep.subr.bf16.mxu0 %v3817_v18  ;;  %v3840_v18 = vld [vmem:[%s4471_s24 + $0x40] sm:$0xff]   ;;  %v3846_v24 = vld [vmem:[%s4471_s24 + $0x58] sm:$0xff]   ;;  %v3851_v30 = vld [vmem:[%s4482_s21 + $0x68] sm:$0xff]  }
  0x33   : > { %3555 = vmatpush3.bf16.msra.mxu1 %v3818_v17  ;;  %v3839_v17 = vld [vmem:[%s4482_s21 + $0x38] sm:$0xff]   ;;  %v3852_v29 = vld [vmem:[%s5751_s4] sm:$0xff]   ;;  %v3854_v32 = vld [vmem:[%s5751_s4 + $0x10] sm:$0xff]  }
  0x34   : > { %3556 = vmatprep.subr.bf16.mxu1 %v3821_v20  ;;  %v3847_v25 = vld [vmem:[%s4482_s21 + $0x58] sm:$0xff]   ;;  %v4584_v41 = vld [vmem:[%s5735_s6] sm:$0x1f] }
  0x35   : > { %3391 = vmatpush3.bf16.msra.mxu0 %v3819_v19  ;;  %v3841_v19 = vld [vmem:[%s4482_s21 + $0x40] sm:$0xff]   ;;  %v3855_v33 = vld [vmem:[%s5751_s4 + $0x18] sm:$0xff]  }
  0x36   : > { %3392 = vmatprep.subr.bf16.mxu0 %v3820_v22  ;;  %v3844_v22 = vld [vmem:[%s4471_s24 + $0x50] sm:$0xff]  }
  0x37   : > { %3557 = vmatpush3.bf16.msra.mxu1 %v3821_v20  ;;  %v3842_v20 = vld [vmem:[%s4471_s24 + $0x48] sm:$0xff]  }
  0x38   : > { %3558 = vmatprep.subr.bf16.mxu1 %v3825_v26 }
  0x39   : > { %3393 = vmatpush3.bf16.msra.mxu0 %v3822_v23  ;;  %v3845_v23 = vld [vmem:[%s4482_s21 + $0x50] sm:$0xff]  }
  0x3b   : > { %3559 = vmatpush3.bf16.msra.mxu1 %v3825_v26  ;;  %v3848_v26 = vld [vmem:[%s4471_s24 + $0x60] sm:$0xff]  }
  0x3c   : > { %924 = vmatmul.mubr.bf16.vlgmr.msra.gmra.mrb[0].mxu0 %v3824_v28  ;;  %v3850_v28 = vld [vmem:[%s4471_s24 + $0x68] sm:$0xff]   ;;  %3588 = vmatprep.subr.bf16.mxu1 %v3852_v29  ;;  %s2778_s24 = ssub.s32 (%p4396_p5), 55, %s4425_s13 }
  0x3d   : > { %931 = vmatprep.mubr.bf16.mxu0 %v3826_v31  ;;  %v3853_v31 = vld [vmem:[%s5751_s4 + $0x8] sm:$0xff]   ;;  %p2779_p11 = scmp.lt.s32.totalorder (%p4396_p5), %s2778_s24, 28 }
  0x3e   : > { %3561 = vmatmul.mubr.bf16.vlgmr.msra.gmra.mrb[0].mxu1 %v514_v34  ;;  %v3856_v34 = vld [vmem:[%s5751_s4 + $0x20] sm:$0xff]  }
  0x3f   : > { %3564 = vmatprep.mubr.bf16.mxu1 %v515_v35  ;;  %3589 = vmatpush3.bf16.msra.mxu1 %v3852_v29  ;;  %v3857_v35 = vld [vmem:[%s5751_s4 + $0x28] sm:$0xff]  }
  0x40   : > { %3590 = vmatprep.subr.bf16.mxu1 %v3853_v31 }
  0x43   : > { %3591 = vmatpush3.bf16.msra.mxu1 %v3853_v31 }
  0x44   : > { %932 = vmatmul.mubr.bf16.gmra.mrb[4].mxu0 %v3827_v36  ;;  %3592 = vmatprep.subr.bf16.mxu1 %v3854_v32  ;;  %v3858_v36 = vld [vmem:[%s5751_s4 + $0x30] sm:$0xff]  }
  0x45   : > { %939 = vmatprep.mubr.bf16.mxu0 %v3828_v37  ;;  %v3859_v37 = vld [vmem:[%s5751_s4 + $0x38] sm:$0xff]  }
  0x46   : > { %3565 = vmatmul.mubr.bf16.gmra.mrb[4].mxu1 %v516_v42 }
  0x47   : > { %3568 = vmatprep.mubr.bf16.mxu1 %v517_v43  ;;  %3593 = vmatpush3.bf16.msra.mxu1 %v3854_v32  ;;  %v4587_v43 = vrot.slane %v4584_v41, %v745_v40 }
  0x48   : > { %3594 = vmatprep.subr.bf16.mxu1 %v3855_v33 }
  0x4b   : > { %3595 = vmatpush3.bf16.msra.mxu1 %v3855_v33 }
  0x4c   : > { %940 = vmatmul.mubr.bf16.gmra.mrb[8].mxu0 %v3829_v44  ;;  %3596 = vmatprep.subr.bf16.mxu1 %v3856_v34 }
  0x4d   : > { %947 = vmatprep.mubr.bf16.mxu0 %v3830_v47 }
  0x4e   : > { %3569 = vmatmul.mubr.bf16.gmra.mrb[8].mxu1 %v518_v50 }
  0x4f   : > { %3572 = vmatprep.mubr.bf16.mxu1 %v519_v51  ;;  %3597 = vmatpush3.bf16.msra.mxu1 %v3856_v34 }
  0x50   : > { %3598 = vmatprep.subr.bf16.mxu1 %v3857_v35 }
  0x53   : > { %3599 = vmatpush3.bf16.msra.mxu1 %v3857_v35 }
  0x54   : > { %948 = vmatmul.mubr.bf16.gmra.mrb[12].mxu0 %v3831_v52  ;;  %3600 = vmatprep.subr.bf16.mxu1 %v3858_v36 }
  0x55   : > { %955 = vmatprep.mubr.bf16.mxu0 %v3832_v53 }
  0x56   : > { %3573 = vmatmul.mubr.bf16.gmra.mrb[12].mxu1 %v520_v58 }
  0x57   : > { %3576 = vmatprep.mubr.bf16.mxu1 %v521_v59  ;;  %3601 = vmatpush3.bf16.msra.mxu1 %v3858_v36 }
  0x58   : > { %3602 = vmatprep.subr.bf16.mxu1 %v3859_v37 }
  0x5b   : > { %3603 = vmatpush3.bf16.msra.mxu1 %v3859_v37 }
  0x5c   : > { %956 = vmatmul.mubr.bf16.gmra.mrb[16].mxu0 %v3833_v60 }
  0x5d   : > { %963 = vmatprep.mubr.bf16.mxu0 %v3834_v63 }
  0x5e   : > { %3577 = vmatmul.mubr.bf16.gmra.mrb[16].mxu1 %v522_v2 }
  0x5f   : > { %3580 = vmatprep.mubr.bf16.mxu1 %v523_v3 }
  0x64   : > { %964 = vmatmul.mubr.bf16.gmra.mrb[20].mxu0 %v3835_v4 }
  0x65   : > { %971 = vmatprep.mubr.bf16.mxu0 %v3836_v7 }
  0x66   : > { %3581 = vmatmul.mubr.bf16.gmra.mrb[20].mxu1 %v524_v10 }
  0x67   : > { %3584 = vmatprep.mubr.bf16.mxu1 %v525_v11  ;;  %v4607_v11 = vld [vmem:[%s5752_s5] sm:$0xff]  }
  0x68   : > { %3632 = vmatprep.subr.bf16.mxu0 %v4607_v11  ;;  %3676 = vmatprep.subr.bf16.mxu1 %v4607_v11 }
  0x69   : > { %3633 = vmatpush3.bf16.msra.mxu0 %v4607_v11 }
  0x6c   : > { %972 = vmatmul.mubr.bf16.gmra.mrb[24].mxu0 %v3837_v12  ;;  %v4612_v12 = vld [vmem:[%s5752_s5 + $0x8] sm:$0xff]  }
  0x6d   : > { %979 = vmatprep.mubr.bf16.mxu0 %v3838_v15  ;;  %3634 = vmatprep.subr.bf16.mxu0 %v4612_v12 }
  0x6e   : > { %3585 = vmatmul.mubr.bf16.gmra.mrb[24].mxu1 %v526_v16  ;;  %3635 = vmatpush3.bf16.msra.mxu0 %v4612_v12 }
  0x74   : > { %980 = vmatmul.mubr.bf16.gmra.mrb[28].mxu0 %v3839_v17 }
  0x75   : > { %987 = vmatprep.mubr.bf16.mxu0 %v3840_v18 }
  0x7c   : > { %988 = vmatmul.mubr.bf16.gmra.mrb[32].mxu0 %v3841_v19 }
  0x7d   : > { %995 = vmatprep.mubr.bf16.mxu0 %v3842_v20 }
  0x84   : > { %996 = vmatmul.mubr.bf16.gmra.mrb[36].mxu0 %v3843_v21 }
  0x85   : > { %1003 = vmatprep.mubr.bf16.mxu0 %v3844_v22 }
  0x8c   : > { %1004 = vmatmul.mubr.bf16.gmra.mrb[40].mxu0 %v3845_v23  ;;  %v4625_v23 = vld [vmem:[%s5752_s5 + $0x10] sm:$0xff]  }
  0x8d   : > { %1011 = vmatprep.mubr.bf16.mxu0 %v3846_v24  ;;  %3636 = vmatprep.subr.bf16.mxu0 %v4625_v23 }
  0x8e   : > { %3637 = vmatpush3.bf16.msra.mxu0 %v4625_v23 }
  0x94   : > { %1012 = vmatmul.mubr.bf16.gmra.mrb[44].mxu0 %v3847_v25 }
  0x95   : > { %1019 = vmatprep.mubr.bf16.mxu0 %v3848_v26 }
  0x9c   : > { %1020 = vmatmul.mubr.bf16.gmra.mrb[48].mxu0 %v3849_v27 }
  0x9d   : > { %1027 = vmatprep.mubr.bf16.mxu0 %v3850_v28 }
  0xa4   : > { %1028 = vmatmul.mubr.bf16.gmra.mrb[52].mxu0 %v3851_v30 }
 0x10f   : > { %v3394_v42 = vpop.f32.mrb[0].mxu0 }
 0x110   : > { %v3395_v44 = vpop.f32.mrb[1].mxu0 }
 0x111   : > { %v3396_v45 = vadd.f32 %v3395_v44, %v3394_v42  ;;  %v3397_v46 = vpop.f32.mrb[2].mxu0  ;;  %v3562_v48 = vpop.f32.mrb[0].mxu1 }
 0x112   : > { %v3398_v47 = vpop.f32.mrb[3].mxu0  ;;  %v1070_v51 = vpop.f32.mrb[1].mxu1 }
 0x113   : > { %v3399_v49 = vadd.f32 %v3398_v47, %v3397_v46  ;;  %v926_v50 = vadd.f32 %v3396_v45, %v4587_v43  ;;  %v3563_v52 = vpop.f32.mrb[2].mxu1 }
 0x114   : > { %v1073_v55 = vpop.f32.mrb[3].mxu1 }
 0x115   : > { %v4590_v53 = vadd.f32 %v1070_v51, %v926_v50  ;;  %v929_v54 = vadd.f32 %v3399_v49, %v4587_v43 }
 0x117   : > { %v3231_v56 = vmul.f32 -1.442695, %v4590_v53  ;;  %v4594_v57 = vadd.f32 %v1073_v55, %v929_v54  ;;  %v3400_v58 = vpop.f32.mrb[4].mxu0 }
 0x118   : > { %v3401_v59 = vpop.f32.mrb[5].mxu0 }
 0x119   : > { %3868 = vpow2.f32 %v3231_v56  ;;  %v3232_v60 = vmul.f32 -1.442695, %v4594_v57  ;;  %v3402_v61 = vadd.f32 %v3401_v59, %v3400_v58  ;;  %v3403_v62 = vpop.f32.mrb[6].mxu0  ;;  %v3566_v0 = vpop.f32.mrb[4].mxu1 }
 0x11a   : > { %v3404_v63 = vpop.f32.mrb[7].mxu0  ;;  %v1086_v3 = vpop.f32.mrb[5].mxu1 }
 0x11b   : > { %3870 = vpow2.f32 %v3232_v60  ;;  %v934_v1 = vadd.f32 %v3402_v61, %v4587_v43  ;;  %v3405_v2 = vadd.f32 %v3404_v63, %v3403_v62  ;;  %v3567_v4 = vpop.f32.mrb[6].mxu1 }
 0x11c   : > { %v1089_v7 = vpop.f32.mrb[7].mxu1 }
 0x11d   : > { %v4598_v5 = vadd.f32 %v3562_v48, %v934_v1  ;;  %v937_v6 = vadd.f32 %v3405_v2, %v4587_v43 }
 0x11f   : > { %v3233_v8 = vmul.f32 -1.442695, %v4598_v5  ;;  %v4602_v9 = vadd.f32 %v3563_v52, %v937_v6  ;;  %v3406_v10 = vpop.f32.mrb[8].mxu0 }
 0x120   : > { %v3407_v13 = vpop.f32.mrb[9].mxu0 }
 0x121   : > { %3872 = vpow2.f32 %v3233_v8  ;;  %v3234_v14 = vmul.f32 -1.442695, %v4602_v9  ;;  %v3408_v15 = vadd.f32 %v3407_v13, %v3406_v10  ;;  %v3409_v16 = vpop.f32.mrb[10].mxu0  ;;  %v4617_v18 = vpop.f32.mrb[8].mxu1 }
 0x122   : > { %v3410_v17 = vpop.f32.mrb[11].mxu0  ;;  %v1102_v22 = vpop.f32.mrb[9].mxu1 }
 0x123   : > { %v3869_v19 = vpop.eup %3868  ;;  %3874 = vpow2.f32 %v3234_v14  ;;  %v3411_v20 = vadd.f32 %v3410_v17, %v3409_v16  ;;  %v942_v21 = vadd.f32 %v3408_v15, %v4587_v43  ;;  %v4627_v25 = vpop.f32.mrb[10].mxu1 }
 0x124   : > { %v1265_v24 = vadd.f32 1.0, %v3869_v19  ;;  %v1105_v29 = vpop.f32.mrb[11].mxu1 }
 0x125   : > { %v3871_v26 = vpop.eup %3870  ;;  %v4629_v27 = vadd.f32 %v1086_v3, %v942_v21  ;;  %v945_v28 = vadd.f32 %v3411_v20, %v4587_v43 }
 0x126   : > { %3876 = vrcp.f32 %v1265_v24  ;;  %v1266_v30 = vadd.f32 1.0, %v3871_v26 }
 0x127   : > { %v3235_v31 = vmul.f32 -1.442695, %v4629_v27  ;;  %v4634_v32 = vadd.f32 %v1089_v7, %v945_v28  ;;  %v3412_v33 = vpop.f32.mrb[12].mxu0 }
 0x128   : > { %3878 = vrcp.f32 %v1266_v30  ;;  %v3413_v34 = vpop.f32.mrb[13].mxu0 }
 0x129   : > { %3880 = vpow2.f32 %v3235_v31  ;;  %v3236_v35 = vmul.f32 -1.442695, %v4634_v32  ;;  %v3414_v36 = vadd.f32 %v3413_v34, %v3412_v33  ;;  %v3415_v37 = vpop.f32.mrb[14].mxu0  ;;  %v4638_v40 = vpop.f32.mrb[12].mxu1 }
 0x12a   : > { %v3416_v38 = vpop.f32.mrb[15].mxu0  ;;  %v4642_v46 = vpop.f32.mrb[13].mxu1 }
 0x12b   : > { %v3873_v42 = vpop.eup %3872  ;;  %3882 = vpow2.f32 %v3236_v35  ;;  %v950_v44 = vadd.f32 %v3414_v36, %v4587_v43  ;;  %v3417_v45 = vadd.f32 %v3416_v38, %v3415_v37  ;;  %v4644_v48 = vpop.f32.mrb[14].mxu1 }
 0x12c   : > { %v1267_v47 = vadd.f32 1.0, %v3873_v42  ;;  %v4649_v52 = vpop.f32.mrb[15].mxu1 }
 0x12d   : > { %v3875_v49 = vpop.eup %3874  ;;  %v4646_v50 = vadd.f32 %v3566_v0, %v950_v44  ;;  %v953_v51 = vadd.f32 %v3417_v45, %v4587_v43 }
 0x12e   : > { %3884 = vrcp.f32 %v1267_v47  ;;  %v1268_v54 = vadd.f32 1.0, %v3875_v49 }
 0x12f   : > { %v3237_v55 = vmul.f32 -1.442695, %v4646_v50  ;;  %v4652_v56 = vadd.f32 %v3567_v4, %v953_v51  ;;  %v3418_v58 = vpop.f32.mrb[16].mxu0 }
 0x130   : > { %v3877_v59 = vpop.eup %3876  ;;  %3886 = vrcp.f32 %v1268_v54  ;;  %v3419_v60 = vpop.f32.mrb[17].mxu0 }
 0x131   : > { %3888 = vpow2.f32 %v3237_v55  ;;  %v3238_v61 = vmul.f32 -1.442695, %v4652_v56  ;;  %v3420_v62 = vadd.f32 %v3419_v60, %v3418_v58  ;;  %v3421_v63 = vpop.f32.mrb[18].mxu0  ;;  %v1349_v1 = vmul.f32 %v3877_v59, %v4590_v53  ;;  %v4656_v3 = vpop.f32.mrb[16].mxu1 }
 0x132   : > { %v3879_v0 = vpop.eup %3878  ;;  %v3422_v2 = vpop.f32.mrb[19].mxu0 }
 0x133   : > { %v3881_v6 = vpop.eup %3880  ;;  %v1350_v7 = vmul.f32 %v3879_v0, %v4594_v57  ;;  %3890 = vpow2.f32 %v3238_v61  ;;  %v3423_v4 = vadd.f32 %v3422_v2, %v3421_v63  ;;  %v958_v8 = vadd.f32 %v3420_v62, %v4587_v43  ;;  %v4660_v10 = vpop.f32.mrb[17].mxu1 }
 0x134   : > { %v1269_v13 = vadd.f32 1.0, %v3881_v6  ;;  %v4662_v14 = vpop.f32.mrb[18].mxu1 }
 0x135   : > { %v3883_v15 = vpop.eup %3882  ;;  %v4664_v16 = vadd.f32 %v1102_v22, %v958_v8  ;;  %v961_v53 = vadd.f32 %v3423_v4, %v4587_v43  ;;  %v1377_v17 = vpack.c.bf16 %v1350_v7, %v1349_v1  ;;  %v4667_v19 = vpop.f32.mrb[19].mxu1 }
 0x136   : > { %3892 = vrcp.f32 %v1269_v13  ;;  %v1270_v20 = vadd.f32 1.0, %v3883_v15 }
 0x137   : > { %v3239_v57 = vmul.f32 -1.442695, %v4664_v16  ;;  %v4670_v21 = vadd.f32 %v1105_v29, %v961_v53  ;;  %v3424_v24 = vpop.f32.mrb[20].mxu0  ;;  %3604 = vmatprep.mubr.bf16.mxu1 %v1377_v17 }
 0x138   : > { %v3885_v26 = vpop.eup %3884  ;;  %3894 = vrcp.f32 %v1270_v20  ;;  %v3425_v28 = vpop.f32.mrb[21].mxu0 }
 0x139   : > { %3896 = vpow2.f32 %v3239_v57  ;;  %v3240_v22 = vmul.f32 -1.442695, %v4670_v21  ;;  %v3426_v30 = vadd.f32 %v3425_v28, %v3424_v24  ;;  %v3427_v31 = vpop.f32.mrb[22].mxu0  ;;  %v1351_v34 = vmul.f32 %v3885_v26, %v4598_v5  ;;  %v4674_v36 = vpop.f32.mrb[20].mxu1 }
 0x13a   : > { %v3887_v33 = vpop.eup %3886  ;;  %v3428_v35 = vpop.f32.mrb[23].mxu0 }
 0x13b   : > { %v3889_v37 = vpop.eup %3888  ;;  %v1352_v29 = vmul.f32 %v3887_v33, %v4602_v9  ;;  %3898 = vpow2.f32 %v3240_v22  ;;  %v966_v38 = vadd.f32 %v3426_v30, %v4587_v43  ;;  %v3429_v42 = vadd.f32 %v3428_v35, %v3427_v31  ;;  %v4678_v44 = vpop.f32.mrb[21].mxu1 }
 0x13c   : > { %v1271_v45 = vadd.f32 1.0, %v3889_v37  ;;  %v4680_v47 = vpop.f32.mrb[22].mxu1 }
 0x13d   : > { %v3891_v49 = vpop.eup %3890  ;;  %v1378_v51 = vpack.c.bf16 %v1352_v29, %v1351_v34  ;;  %v4683_v54 = vadd.f32 %v4617_v18, %v966_v38  ;;  %v969_v5 = vadd.f32 %v3429_v42, %v4587_v43  ;;  %v4686_v55 = vpop.f32.mrb[23].mxu1 }
 0x13e   : > { %3900 = vrcp.f32 %v1271_v45  ;;  %v1272_v9 = vadd.f32 1.0, %v3891_v49 }
 0x13f   : > { %v3241_v58 = vmul.f32 -1.442695, %v4683_v54  ;;  %v4690_v59 = vadd.f32 %v4627_v25, %v969_v5  ;;  %v3430_v60 = vpop.f32.mrb[24].mxu0  ;;  %3605 = vmatmul.mubr.bf16.vlgmr.msra.gmra.mrb[28].mxu1 %v1378_v51 }
 0x140   : > { %v3893_v61 = vpop.eup %3892  ;;  %3902 = vrcp.f32 %v1272_v9  ;;  %v3431_v62 = vpop.f32.mrb[25].mxu0  ;;  %3684 = vmatpush3.bf16.msra.mxu1 %v4607_v11 }
 0x141   : > { %3904 = vpow2.f32 %v3241_v58  ;;  %v3242_v18 = vmul.f32 -1.442695, %v4690_v59  ;;  %v3432_v63 = vadd.f32 %v3431_v62, %v3430_v60  ;;  %v3433_v0 = vpop.f32.mrb[26].mxu0  ;;  %3677 = vmatprep.subr.bf16.mxu1 %v4612_v12  ;;  %v1353_v2 = vmul.f32 %v3893_v61, %v4629_v27  ;;  %v4696_v25 = vpop.f32.mrb[24].mxu1 }
 0x142   : > { %v3895_v1 = vpop.eup %3894  ;;  %v3434_v6 = vpop.f32.mrb[27].mxu0 }
 0x143   : > { %v3897_v7 = vpop.eup %3896  ;;  %v1354_v4 = vmul.f32 %v3895_v1, %v4634_v32  ;;  %3906 = vpow2.f32 %v3242_v18  ;;  %v3435_v8 = vadd.f32 %v3434_v6, %v3433_v0  ;;  %v974_v11 = vadd.f32 %v3432_v63, %v4587_v43  ;;  %v4700_v13 = vpop.f32.mrb[25].mxu1 }
 0x144   : > { %v1273_v15 = vadd.f32 1.0, %v3897_v7  ;;  %v4702_v53 = vpop.f32.mrb[26].mxu1  ;;  %3685 = vmatpush3.bf16.msra.mxu1 %v4612_v12 }
 0x145   : > { %v3899_v17 = vpop.eup %3898  ;;  %v4706_v27 = vadd.f32 %v4642_v46, %v974_v11  ;;  %v977_v20 = vadd.f32 %v3435_v8, %v4587_v43  ;;  %v1379_v57 = vpack.c.bf16 %v1354_v4, %v1353_v2  ;;  %v4709_v24 = vpop.f32.mrb[27].mxu1  ;;  %3678 = vmatprep.subr.bf16.mxu1 %v4625_v23 }
 0x146   : > { %3908 = vrcp.f32 %v1273_v15  ;;  %v1274_v32 = vadd.f32 1.0, %v3899_v17 }
 0x147   : > { %v3243_v26 = vmul.f32 -1.442695, %v4706_v27  ;;  %v4714_v28 = vadd.f32 %v4649_v52, %v977_v20  ;;  %v3436_v22 = vpop.f32.mrb[28].mxu0  ;;  %3608 = vmatprep.mubr.bf16.mxu1 %v1379_v57 }
 0x148   : > { %v3901_v12 = vpop.eup %3900  ;;  %3910 = vrcp.f32 %v1274_v32  ;;  %v3437_v46 = vpop.f32.mrb[29].mxu0  ;;  %3686 = vmatpush3.bf16.msra.mxu1 %v4625_v23 }
 0x149   : > { %3912 = vpow2.f32 %v3243_v26  ;;  %v3244_v30 = vmul.f32 -1.442695, %v4714_v28  ;;  %v3438_v31 = vadd.f32 %v3437_v46, %v3436_v22  ;;  %v3439_v33 = vpop.f32.mrb[30].mxu0  ;;  %v1355_v37 = vmul.f32 %v3901_v12, %v4646_v50 }
 0x14a   : > { %v3903_v34 = vpop.eup %3902  ;;  %v3440_v35 = vpop.f32.mrb[31].mxu0 }
 0x14b   : > { %v3905_v29 = vpop.eup %3904  ;;  %3914 = vpow2.f32 %v3244_v30  ;;  %v982_v52 = vadd.f32 %v3438_v31, %v4587_v43  ;;  %v3441_v38 = vadd.f32 %v3440_v35, %v3439_v33  ;;  %v1356_v42 = vmul.f32 %v3903_v34, %v4652_v56 }
 0x14c   : > { %v1275_v45 = vadd.f32 1.0, %v3905_v29 }
 0x14d   : > { %v3907_v49 = vpop.eup %3906  ;;  %v4722_v23 = vadd.f32 %v4638_v40, %v982_v52  ;;  %v985_v51 = vadd.f32 %v3441_v38, %v4587_v43  ;;  %v1380_v5 = vpack.c.bf16 %v1356_v42, %v1355_v37 }
 0x14e   : > { %3916 = vrcp.f32 %v1275_v45  ;;  %v1276_v9 = vadd.f32 1.0, %v3907_v49 }
 0x14f   : > { %v3245_v58 = vmul.f32 -1.442695, %v4722_v23  ;;  %v4727_v50 = vadd.f32 %v4644_v48, %v985_v51  ;;  %v3442_v60 = vpop.f32.mrb[32].mxu0  ;;  %3609 = vmatmul.mubr.bf16.gmra.mrb[32].mxu1 %v1380_v5 }
 0x150   : > { %v3909_v61 = vpop.eup %3908  ;;  %3918 = vrcp.f32 %v1276_v9  ;;  %v3443_v56 = vpop.f32.mrb[33].mxu0 }
 0x151   : > { %3920 = vpow2.f32 %v3245_v58  ;;  %v3246_v62 = vmul.f32 -1.442695, %v4727_v50  ;;  %v3444_v40 = vadd.f32 %v3443_v56, %v3442_v60  ;;  %v3445_v18 = vpop.f32.mrb[34].mxu0  ;;  %v1357_v0 = vmul.f32 %v3909_v61, %v4664_v16 }
 0x152   : > { %v3911_v63 = vpop.eup %3910  ;;  %v3446_v1 = vpop.f32.mrb[35].mxu0 }
 0x153   : > { %v3913_v2 = vpop.eup %3912  ;;  %v1358_v6 = vmul.f32 %v3911_v63, %v4670_v21  ;;  %3922 = vpow2.f32 %v3246_v62  ;;  %v3447_v48 = vadd.f32 %v3446_v1, %v3445_v18  ;;  %v990_v7 = vadd.f32 %v3444_v40, %v4587_v43 }
 0x154   : > { %v1277_v4 = vadd.f32 1.0, %v3913_v2 }
 0x155   : > { %v3915_v8 = vpop.eup %3914  ;;  %v4734_v11 = vadd.f32 %v4660_v10, %v990_v7  ;;  %v993_v15 = vadd.f32 %v3447_v48, %v4587_v43  ;;  %v1381_v17 = vpack.c.bf16 %v1358_v6, %v1357_v0 }
 0x156   : > { %3924 = vrcp.f32 %v1277_v4  ;;  %v1278_v20 = vadd.f32 1.0, %v3915_v8 }
 0x157   : > { %v3247_v16 = vmul.f32 -1.442695, %v4734_v11  ;;  %v4739_v57 = vadd.f32 %v4667_v19, %v993_v15  ;;  %v3448_v21 = vpop.f32.mrb[36].mxu0  ;;  %3612 = vmatprep.mubr.bf16.mxu1 %v1381_v17 }
 0x158   : > { %v3917_v32 = vpop.eup %3916  ;;  %3926 = vrcp.f32 %v1278_v20  ;;  %v3449_v26 = vpop.f32.mrb[37].mxu0 }
 0x159   : > { %3928 = vpow2.f32 %v3247_v16  ;;  %v3248_v22 = vmul.f32 -1.442695, %v4739_v57  ;;  %v3450_v10 = vadd.f32 %v3449_v26, %v3448_v21  ;;  %v3451_v12 = vpop.f32.mrb[38].mxu0  ;;  %v1359_v31 = vmul.f32 %v3917_v32, %v4683_v54 }
 0x15a   : > { %v3919_v46 = vpop.eup %3918  ;;  %v3452_v30 = vpop.f32.mrb[39].mxu0 }
 0x15b   : > { %v3921_v33 = vpop.eup %3920  ;;  %3930 = vpow2.f32 %v3248_v22  ;;  %v998_v34 = vadd.f32 %v3450_v10, %v4587_v43  ;;  %v3453_v19 = vadd.f32 %v3452_v30, %v3451_v12  ;;  %v1360_v35 = vmul.f32 %v3919_v46, %v4690_v59 }
 0x15c   : > { %v1279_v37 = vadd.f32 1.0, %v3921_v33 }
 0x15d   : > { %v3923_v29 = vpop.eup %3922  ;;  %v4746_v52 = vadd.f32 %v4656_v3, %v998_v34  ;;  %v1001_v38 = vadd.f32 %v3453_v19, %v4587_v43  ;;  %v1382_v42 = vpack.c.bf16 %v1360_v35, %v1359_v31 }
 0x15e   : > { %3932 = vrcp.f32 %v1279_v37  ;;  %v1280_v45 = vadd.f32 1.0, %v3923_v29 }
 0x15f   : > { %v3249_v49 = vmul.f32 -1.442695, %v4746_v52  ;;  %v4751_v54 = vadd.f32 %v4662_v14, %v1001_v38  ;;  %v3454_v51 = vpop.f32.mrb[40].mxu0  ;;  %3613 = vmatmul.mubr.bf16.gmra.mrb[36].mxu1 %v1382_v42 }
 0x160   : > { %v3925_v5 = vpop.eup %3924  ;;  %3934 = vrcp.f32 %v1280_v45  ;;  %v3455_v59 = vpop.f32.mrb[41].mxu0 }
 0x161   : > { %3936 = vpow2.f32 %v3249_v49  ;;  %v3250_v9 = vmul.f32 -1.442695, %v4751_v54  ;;  %v3456_v3 = vadd.f32 %v3455_v59, %v3454_v51  ;;  %v3457_v58 = vpop.f32.mrb[42].mxu0  ;;  %v1361_v61 = vmul.f32 %v3925_v5, %v4706_v27 }
 0x162   : > { %v3927_v60 = vpop.eup %3926  ;;  %v3458_v56 = vpop.f32.mrb[43].mxu0 }
 0x163   : > { %v3929_v62 = vpop.eup %3928  ;;  %v1362_v40 = vmul.f32 %v3927_v60, %v4714_v28  ;;  %3938 = vpow2.f32 %v3250_v9  ;;  %v3459_v14 = vadd.f32 %v3458_v56, %v3457_v58  ;;  %v1006_v18 = vadd.f32 %v3456_v3, %v4587_v43 }
 0x164   : > { %v1281_v63 = vadd.f32 1.0, %v3929_v62 }
 0x165   : > { %v3931_v0 = vpop.eup %3930  ;;  %v4758_v1 = vadd.f32 %v4678_v44, %v1006_v18  ;;  %v1009_v2 = vadd.f32 %v3459_v14, %v4587_v43  ;;  %v1383_v6 = vpack.c.bf16 %v1362_v40, %v1361_v61 }
 0x166   : > { %3940 = vrcp.f32 %v1281_v63  ;;  %v1282_v48 = vadd.f32 1.0, %v3931_v0 }
 0x167   : > { %v3251_v27 = vmul.f32 -1.442695, %v4758_v1  ;;  %v4763_v7 = vadd.f32 %v4686_v55, %v1009_v2  ;;  %v3460_v28 = vpop.f32.mrb[44].mxu0  ;;  %3616 = vmatprep.mubr.bf16.mxu1 %v1383_v6 }
 0x168   : > { %v3933_v4 = vpop.eup %3932  ;;  %3942 = vrcp.f32 %v1282_v48  ;;  %v3461_v8 = vpop.f32.mrb[45].mxu0 }
 0x169   : > { %3944 = vpow2.f32 %v3251_v27  ;;  %v3252_v15 = vmul.f32 -1.442695, %v4763_v7  ;;  %v3462_v44 = vadd.f32 %v3461_v8, %v3460_v28  ;;  %v3463_v17 = vpop.f32.mrb[46].mxu0  ;;  %v1363_v21 = vmul.f32 %v3933_v4, %v4722_v23 }
 0x16a   : > { %v3935_v20 = vpop.eup %3934  ;;  %v3464_v16 = vpop.f32.mrb[47].mxu0 }
 0x16b   : > { %v3937_v32 = vpop.eup %3936  ;;  %3946 = vpow2.f32 %v3252_v15  ;;  %v1014_v26 = vadd.f32 %v3462_v44, %v4587_v43  ;;  %v3465_v55 = vadd.f32 %v3464_v16, %v3463_v17  ;;  %v1364_v22 = vmul.f32 %v3935_v20, %v4727_v50 }
 0x16c   : > { %v1283_v10 = vadd.f32 1.0, %v3937_v32 }
 0x16d   : > { %v3939_v12 = vpop.eup %3938  ;;  %v4770_v46 = vadd.f32 %v4674_v36, %v1014_v26  ;;  %v1017_v30 = vadd.f32 %v3465_v55, %v4587_v43  ;;  %v1384_v31 = vpack.c.bf16 %v1364_v22, %v1363_v21 }
 0x16e   : > { %3948 = vrcp.f32 %v1283_v10  ;;  %v1284_v33 = vadd.f32 1.0, %v3939_v12 }
 0x16f   : > { %v3253_v34 = vmul.f32 -1.442695, %v4770_v46  ;;  %v4775_v23 = vadd.f32 %v4680_v47, %v1017_v30  ;;  %v3466_v19 = vpop.f32.mrb[48].mxu0  ;;  %3617 = vmatmul.mubr.bf16.gmra.mrb[40].mxu1 %v1384_v31 }
 0x170   : > { %v3941_v35 = vpop.eup %3940  ;;  %3950 = vrcp.f32 %v1284_v33  ;;  %v3467_v50 = vpop.f32.mrb[49].mxu0 }
 0x171   : > { %3952 = vpow2.f32 %v3253_v34  ;;  %v3254_v37 = vmul.f32 -1.442695, %v4775_v23  ;;  %v3468_v36 = vadd.f32 %v3467_v50, %v3466_v19  ;;  %v3469_v29 = vpop.f32.mrb[50].mxu0  ;;  %v1365_v42 = vmul.f32 %v3941_v35, %v4734_v11 }
 0x172   : > { %v3943_v38 = vpop.eup %3942  ;;  %v3470_v45 = vpop.f32.mrb[51].mxu0 }
 0x173   : > { %v3945_v49 = vpop.eup %3944  ;;  %v1366_v51 = vmul.f32 %v3943_v38, %v4739_v57  ;;  %3954 = vpow2.f32 %v3254_v37  ;;  %v3471_v47 = vadd.f32 %v3470_v45, %v3469_v29  ;;  %v1022_v5 = vadd.f32 %v3468_v36, %v4587_v43 }
 0x174   : > { %v1285_v59 = vadd.f32 1.0, %v3945_v49 }
 0x175   : > { %v3947_v9 = vpop.eup %3946  ;;  %v4782_v3 = vadd.f32 %v4700_v13, %v1022_v5  ;;  %v1025_v58 = vadd.f32 %v3471_v47, %v4587_v43  ;;  %v1385_v60 = vpack.c.bf16 %v1366_v51, %v1365_v42  ;;  %v3864_v51 = vld [vmem:[%s5752_s5 + $0x20] sm:$0xff]   ;;  %v3865_v47 = vld [vmem:[%s5752_s5 + $0x28] sm:$0xff]   ;;  %v3866_v5 = vld [vmem:[%s5752_s5 + $0x30] sm:$0xff]  }
 0x176   : > { %3956 = vrcp.f32 %v1285_v59  ;;  %v1286_v61 = vadd.f32 1.0, %v3947_v9  ;;  %v3867_v59 = vld [vmem:[%s5752_s5 + $0x38] sm:$0xff]   ;;  %v1409_v9 = vsub.s32 1, %v4578_v39 }
 0x177   : > { %v3255_v11 = vmul.f32 -1.442695, %v4782_v3  ;;  %v1170_v56 = vadd.f32 %v4709_v24, %v1025_v58  ;;  %v3472_v62 = vpop.f32.mrb[52].mxu0  ;;  %3620 = vmatprep.mubr.bf16.mxu1 %v1385_v60 }
 0x178   : > { %v3949_v57 = vpop.eup %3948  ;;  %3958 = vrcp.f32 %v1286_v61  ;;  %v3473_v40 = vpop.f32.mrb[53].mxu0 }
 0x179   : > { %3960 = vpow2.f32 %v3255_v11  ;;  %v3256_v14 = vmul.f32 -1.442695, %v1170_v56  ;;  %v3474_v18 = vadd.f32 %v3473_v40, %v3472_v62  ;;  %v3475_v63 = vpop.f32.mrb[54].mxu0  ;;  %v1367_v2 = vmul.f32 %v3949_v57, %v4746_v52 }
 0x17a   : > { %v3951_v13 = vpop.eup %3950  ;;  %v3476_v0 = vpop.f32.mrb[55].mxu0 }
 0x17b   : > { %v3953_v6 = vpop.eup %3952  ;;  %3962 = vpow2.f32 %v3256_v14  ;;  %v1030_v48 = vadd.f32 %v3474_v18, %v4587_v43  ;;  %v3477_v27 = vadd.f32 %v3476_v0, %v3475_v63  ;;  %v1368_v24 = vmul.f32 %v3951_v13, %v4751_v54 }
 0x17c   : > { %v1287_v28 = vadd.f32 1.0, %v3953_v6 }
 0x17d   : > { %v3955_v4 = vpop.eup %3954  ;;  %v1175_v8 = vadd.f32 %v4696_v25, %v1030_v48  ;;  %v1033_v15 = vadd.f32 %v3477_v27, %v4587_v43  ;;  %v1386_v44 = vpack.c.bf16 %v1368_v24, %v1367_v2 }
 0x17e   : > { %3964 = vrcp.f32 %v1287_v28  ;;  %v1288_v17 = vadd.f32 1.0, %v3955_v4 }
 0x17f   : > { %v3257_v20 = vmul.f32 -1.442695, %v1175_v8  ;;  %v1178_v16 = vadd.f32 %v4702_v53, %v1033_v15  ;;  %3621 = vmatmul.mubr.bf16.gmra.mrb[44].mxu1 %v1386_v44 }
 0x180   : > { %v3957_v52 = vpop.eup %3956  ;;  %3966 = vrcp.f32 %v1288_v17 }
 0x181   : > { %3968 = vpow2.f32 %v3257_v20  ;;  %v3258_v21 = vmul.f32 -1.442695, %v1178_v16  ;;  %v1369_v54 = vmul.f32 %v3957_v52, %v4758_v1 }
 0x182   : > { %v3959_v32 = vpop.eup %3958 }
 0x183   : > { %v3961_v26 = vpop.eup %3960  ;;  %v1370_v55 = vmul.f32 %v3959_v32, %v4763_v7  ;;  %3970 = vpow2.f32 %v3258_v21 }
 0x184   : > { %v1289_v25 = vadd.f32 1.0, %v3961_v26 }
 0x185   : > { %v3963_v43 = vpop.eup %3962  ;;  %v1387_v22 = vpack.c.bf16 %v1370_v55, %v1369_v54 }
 0x186   : > { %3972 = vrcp.f32 %v1289_v25  ;;  %v1290_v10 = vadd.f32 1.0, %v3963_v43 }
 0x187   : > { %3624 = vmatprep.mubr.bf16.mxu1 %v1387_v22 }
 0x188   : > { %v3965_v12 = vpop.eup %3964  ;;  %3974 = vrcp.f32 %v1290_v10 }
 0x189   : > { %v1371_v31 = vmul.f32 %v3965_v12, %v4770_v46 }
 0x18a   : > { %v3967_v53 = vpop.eup %3966 }
 0x18b   : > { %v3969_v30 = vpop.eup %3968  ;;  %v1372_v33 = vmul.f32 %v3967_v53, %v4775_v23  ;;  %v3863_v23 = vld [vmem:[%s5752_s5 + $0x18] sm:$0xff]  }
 0x18c   : > { %v1291_v34 = vadd.f32 1.0, %v3969_v30  ;;  %3638 = vmatprep.subr.bf16.mxu0 %v3863_v23  ;;  %3679 = vmatprep.subr.bf16.mxu1 %v3863_v23 }
 0x18d   : > { %v3971_v19 = vpop.eup %3970  ;;  %v1388_v1 = vpack.c.bf16 %v1372_v33, %v1371_v31  ;;  %3639 = vmatpush3.bf16.msra.mxu0 %v3863_v23  ;;  %3687 = vmatpush3.bf16.msra.mxu1 %v3863_v23 }
 0x18e   : > { %3976 = vrcp.f32 %v1291_v34  ;;  %v1292_v7 = vadd.f32 1.0, %v3971_v19  ;;  %3640 = vmatprep.subr.bf16.mxu0 %v3864_v51  ;;  %3680 = vmatprep.subr.bf16.mxu1 %v3864_v51 }
 0x18f   : > { %3625 = vmatmul.mubr.bf16.gmra.mrb[48].mxu1 %v1388_v1 }
 0x190   : > { %v3973_v35 = vpop.eup %3972  ;;  %3978 = vrcp.f32 %v1292_v7 }
 0x191   : > { %v1373_v37 = vmul.f32 %v3973_v35, %v4782_v3  ;;  %3641 = vmatpush3.bf16.msra.mxu0 %v3864_v51  ;;  %3688 = vmatpush3.bf16.msra.mxu1 %v3864_v51  ;;  %v4815_v3 = vrot.slane %v4584_v41, %v1409_v9 }
 0x192   : > { %v3975_v50 = vpop.eup %3974  ;;  %3642 = vmatprep.subr.bf16.mxu0 %v3865_v47  ;;  %3681 = vmatprep.subr.bf16.mxu1 %v3865_v47 }
 0x193   : > { %v1374_v36 = vmul.f32 %v3975_v50, %v1170_v56 }
 0x195   : > { %v1389_v29 = vpack.c.bf16 %v1374_v36, %v1373_v37  ;;  %3643 = vmatpush3.bf16.msra.mxu0 %v3865_v47  ;;  %3689 = vmatpush3.bf16.msra.mxu1 %v3865_v47 }
 0x196   : > { %3644 = vmatprep.subr.bf16.mxu0 %v3866_v5  ;;  %3682 = vmatprep.subr.bf16.mxu1 %v3866_v5 }
 0x197   : > { %3628 = vmatprep.mubr.bf16.mxu1 %v1389_v29 }
 0x198   : > { %v3977_v38 = vpop.eup %3976 }
 0x199   : > { %v1375_v45 = vmul.f32 %v3977_v38, %v1175_v8  ;;  %3645 = vmatpush3.bf16.msra.mxu0 %v3866_v5  ;;  %3690 = vmatpush3.bf16.msra.mxu1 %v3866_v5 }
 0x19a   : > { %v3979_v42 = vpop.eup %3978  ;;  %3646 = vmatprep.subr.bf16.mxu0 %v3867_v59  ;;  %3683 = vmatprep.subr.bf16.mxu1 %v3867_v59 }
 0x19b   : > { %v1376_v46 = vmul.f32 %v3979_v42, %v1178_v16 }
 0x19d   : > { %v1390_v49 = vpack.c.bf16 %v1376_v46, %v1375_v45  ;;  %3647 = vmatpush3.bf16.msra.mxu0 %v3867_v59  ;;  %3691 = vmatpush3.bf16.msra.mxu1 %v3867_v59 }
 0x19f   : > { %3629 = vmatmul.mubr.bf16.gmra.mrb[52].mxu1 %v1390_v49 }
 0x212   : > { %v3606_v58 = vpop.f32.mrb[28].mxu1 }
 0x213   : > { %v1502_v60 = vadd.f32 %v3606_v58, %v4815_v3  ;;  %v1493_v61 = vpop.f32.mrb[29].mxu1 }
 0x214   : > { %v1494_v11 = vadd.f32 %v1493_v61, %v4815_v3  ;;  %v3607_v56 = vpop.f32.mrb[30].mxu1 }
 0x215   : > { %v3269_v62 = vmul.f32 -1.442695, %v1502_v60  ;;  %v1505_v57 = vadd.f32 %v3607_v56, %v4815_v3  ;;  %v1496_v40 = vpop.f32.mrb[31].mxu1 }
 0x216   : > { %v3267_v14 = vmul.f32 -1.442695, %v1494_v11  ;;  %v1497_v18 = vadd.f32 %v1496_v40, %v4815_v3 }
 0x217   : > { %3980 = vpow2.f32 %v3269_v62  ;;  %v3270_v63 = vmul.f32 -1.442695, %v1505_v57 }
 0x218   : > { %3982 = vpow2.f32 %v3267_v14  ;;  %v3268_v13 = vmul.f32 -1.442695, %v1497_v18 }
 0x219   : > { %3984 = vpow2.f32 %v3270_v63 }
 0x21a   : > { %3986 = vpow2.f32 %v3268_v13 }
 0x221   : > { %v3981_v41 = vpop.eup %3980 }
 0x222   : > { %v3983_v0 = vpop.eup %3982  ;;  %v1690_v2 = vadd.f32 1.0, %v3981_v41  ;;  %v3610_v6 = vpop.f32.mrb[32].mxu1 }
 0x223   : > { %v3985_v48 = vpop.eup %3984  ;;  %v1688_v27 = vadd.f32 1.0, %v3983_v0  ;;  %v4822_v24 = vadd.f32 %v3610_v6, %v4815_v3  ;;  %v1509_v28 = vpop.f32.mrb[33].mxu1 }
 0x224   : > { %v3987_v4 = vpop.eup %3986  ;;  %3988 = vrcp.f32 %v1690_v2  ;;  %v1691_v8 = vadd.f32 1.0, %v3985_v48  ;;  %v4825_v15 = vadd.f32 %v1509_v28, %v4815_v3  ;;  %v3611_v44 = vpop.f32.mrb[34].mxu1 }
 0x225   : > { %3990 = vrcp.f32 %v1688_v27  ;;  %v1689_v17 = vadd.f32 1.0, %v3987_v4  ;;  %v3273_v20 = vmul.f32 -1.442695, %v4822_v24  ;;  %v1521_v16 = vadd.f32 %v3611_v44, %v4815_v3  ;;  %v1512_v52 = vpop.f32.mrb[35].mxu1 }
 0x226   : > { %3992 = vrcp.f32 %v1691_v8  ;;  %v3271_v21 = vmul.f32 -1.442695, %v4825_v15  ;;  %v1513_v32 = vadd.f32 %v1512_v52, %v4815_v3 }
 0x227   : > { %3994 = vrcp.f32 %v1689_v17  ;;  %v3274_v26 = vmul.f32 -1.442695, %v1521_v16 }
 0x228   : > { %3996 = vpow2.f32 %v3273_v20  ;;  %v3272_v54 = vmul.f32 -1.442695, %v1513_v32 }
 0x229   : > { %3998 = vpow2.f32 %v3271_v21 }
 0x22a   : > { %4000 = vpow2.f32 %v3274_v26 }
 0x22b   : > { %4002 = vpow2.f32 %v3272_v54 }
 0x22e   : > { %v3989_v55 = vpop.eup %3988 }
 0x22f   : > { %v3991_v25 = vpop.eup %3990  ;;  %v1774_v10 = vmul.f32 %v3989_v55, %v1502_v60 }
 0x230   : > { %v3993_v43 = vpop.eup %3992  ;;  %v1772_v30 = vmul.f32 %v3991_v25, %v1494_v11 }
 0x231   : > { %v3995_v22 = vpop.eup %3994  ;;  %v1775_v12 = vmul.f32 %v3993_v43, %v1505_v57 }
 0x232   : > { %v3997_v53 = vpop.eup %3996  ;;  %v1773_v31 = vmul.f32 %v3995_v22, %v1497_v18  ;;  %v3614_v33 = vpop.f32.mrb[36].mxu1 }
 0x233   : > { %v3999_v34 = vpop.eup %3998  ;;  %v1801_v19 = vpack.c.bf16 %v1775_v12, %v1774_v10  ;;  %v1694_v1 = vadd.f32 1.0, %v3997_v53  ;;  %v4832_v7 = vadd.f32 %v3614_v33, %v4815_v3  ;;  %v1525_v35 = vpop.f32.mrb[37].mxu1 }
 0x234   : > { %v4001_v50 = vpop.eup %4000  ;;  %v1692_v37 = vadd.f32 1.0, %v3999_v34  ;;  %v4835_v36 = vadd.f32 %v1525_v35, %v4815_v3  ;;  %v3615_v29 = vpop.f32.mrb[38].mxu1  ;;  %v1800_v38 = vpack.c.bf16 %v1773_v31, %v1772_v30 }
 0x235   : > { %v4003_v42 = vpop.eup %4002  ;;  %4004 = vrcp.f32 %v1694_v1  ;;  %v1695_v45 = vadd.f32 1.0, %v4001_v50  ;;  %v3277_v46 = vmul.f32 -1.442695, %v4832_v7  ;;  %v1537_v49 = vadd.f32 %v3615_v29, %v4815_v3  ;;  %v1528_v23 = vpop.f32.mrb[39].mxu1 }
 0x236   : > { %4006 = vrcp.f32 %v1692_v37  ;;  %v1693_v51 = vadd.f32 1.0, %v4003_v42  ;;  %v3275_v47 = vmul.f32 -1.442695, %v4835_v36  ;;  %v1529_v5 = vadd.f32 %v1528_v23, %v4815_v3  ;;  %3648 = vmatprep.mubr.bf16.mxu0 %v1800_v38 }
 0x237   : > { %4008 = vrcp.f32 %v1695_v45  ;;  %v3278_v59 = vmul.f32 -1.442695, %v1537_v49  ;;  %3649 = vmatmul.mubr.bf16.vlgmr.msra.gmra.mrb[56].mxu0 %v1801_v19 }
 0x238   : > { %4010 = vrcp.f32 %v1693_v51  ;;  %v3276_v9 = vmul.f32 -1.442695, %v1529_v5 }
 0x239   : > { %4012 = vpow2.f32 %v3277_v46 }
 0x23a   : > { %4014 = vpow2.f32 %v3275_v47 }
 0x23b   : > { %4016 = vpow2.f32 %v3278_v59 }
 0x23c   : > { %4018 = vpow2.f32 %v3276_v9 }
 0x23f   : > { %v4005_v58 = vpop.eup %4004 }
 0x240   : > { %v4007_v60 = vpop.eup %4006  ;;  %v1778_v56 = vmul.f32 %v4005_v58, %v4822_v24 }
 0x241   : > { %v4009_v61 = vpop.eup %4008  ;;  %v1776_v14 = vmul.f32 %v4007_v60, %v4825_v15 }
 0x242   : > { %v4011_v11 = vpop.eup %4010  ;;  %v1779_v62 = vmul.f32 %v4009_v61, %v1521_v16  ;;  %v3618_v57 = vpop.f32.mrb[40].mxu1 }
 0x243   : > { %v4013_v40 = vpop.eup %4012  ;;  %v1777_v18 = vmul.f32 %v4011_v11, %v1513_v32  ;;  %v4844_v63 = vadd.f32 %v3618_v57, %v4815_v3  ;;  %v1541_v13 = vpop.f32.mrb[41].mxu1 }
 0x244   : > { %v4015_v41 = vpop.eup %4014  ;;  %v1698_v0 = vadd.f32 1.0, %v4013_v40  ;;  %v4847_v2 = vadd.f32 %v1541_v13, %v4815_v3  ;;  %v3619_v6 = vpop.f32.mrb[42].mxu1  ;;  %v1803_v48 = vpack.c.bf16 %v1779_v62, %v1778_v56 }
 0x245   : > { %v4017_v27 = vpop.eup %4016  ;;  %v1696_v28 = vadd.f32 1.0, %v4015_v41  ;;  %v4850_v24 = vadd.f32 %v3619_v6, %v4815_v3  ;;  %v1544_v4 = vpop.f32.mrb[43].mxu1  ;;  %v1802_v8 = vpack.c.bf16 %v1777_v18, %v1776_v14  ;;  %v3281_v17 = vmul.f32 -1.442695, %v4844_v63 }
 0x246   : > { %v4019_v15 = vpop.eup %4018  ;;  %4020 = vrcp.f32 %v1698_v0  ;;  %v1699_v44 = vadd.f32 1.0, %v4017_v27  ;;  %v4854_v20 = vadd.f32 %v1544_v4, %v4815_v3  ;;  %v3279_v52 = vmul.f32 -1.442695, %v4847_v2 }
 0x247   : > { %4022 = vrcp.f32 %v1696_v28  ;;  %v1697_v16 = vadd.f32 1.0, %v4019_v15  ;;  %3652 = vmatprep.mubr.bf16.mxu0 %v1802_v8  ;;  %v3282_v21 = vmul.f32 -1.442695, %v4850_v24 }
 0x248   : > { %4024 = vrcp.f32 %v1699_v44  ;;  %3653 = vmatmul.mubr.bf16.gmra.mrb[60].mxu0 %v1803_v48  ;;  %v3280_v32 = vmul.f32 -1.442695, %v4854_v20 }
 0x249   : > { %4026 = vrcp.f32 %v1697_v16 }
 0x24a   : > { %4028 = vpow2.f32 %v3281_v17 }
 0x24b   : > { %4030 = vpow2.f32 %v3279_v52 }
 0x24c   : > { %4032 = vpow2.f32 %v3282_v21 }
 0x24d   : > { %4034 = vpow2.f32 %v3280_v32 }
 0x250   : > { %v4021_v26 = vpop.eup %4020 }
 0x251   : > { %v4023_v54 = vpop.eup %4022  ;;  %v1782_v22 = vmul.f32 %v4021_v26, %v4832_v7 }
 0x252   : > { %v4025_v55 = vpop.eup %4024  ;;  %v3622_v25 = vpop.f32.mrb[44].mxu1  ;;  %v1780_v31 = vmul.f32 %v4023_v54, %v4835_v36 }
 0x253   : > { %v4027_v43 = vpop.eup %4026  ;;  %v1783_v10 = vmul.f32 %v4025_v55, %v1537_v49  ;;  %v4861_v12 = vadd.f32 %v3622_v25, %v4815_v3  ;;  %v1557_v53 = vpop.f32.mrb[45].mxu1 }
 0x254   : > { %v4029_v30 = vpop.eup %4028  ;;  %v1781_v33 = vmul.f32 %v4027_v43, %v1529_v5  ;;  %v4865_v34 = vadd.f32 %v1557_v53, %v4815_v3  ;;  %v3623_v19 = vpop.f32.mrb[46].mxu1 }
 0x255   : > { %v4031_v1 = vpop.eup %4030  ;;  %v1702_v35 = vadd.f32 1.0, %v4029_v30  ;;  %v4868_v50 = vadd.f32 %v3623_v19, %v4815_v3  ;;  %v1560_v37 = vpop.f32.mrb[47].mxu1  ;;  %v1805_v7 = vpack.c.bf16 %v1783_v10, %v1782_v22  ;;  %v3285_v49 = vmul.f32 -1.442695, %v4861_v12 }
 0x256   : > { %v4033_v29 = vpop.eup %4032  ;;  %v1700_v38 = vadd.f32 1.0, %v4031_v1  ;;  %v4871_v42 = vadd.f32 %v1560_v37, %v4815_v3  ;;  %v1804_v45 = vpack.c.bf16 %v1781_v33, %v1780_v31  ;;  %v3283_v51 = vmul.f32 -1.442695, %v4865_v34 }
 0x257   : > { %v4035_v46 = vpop.eup %4034  ;;  %4036 = vrcp.f32 %v1702_v35  ;;  %v1703_v36 = vadd.f32 1.0, %v4033_v29  ;;  %v3286_v47 = vmul.f32 -1.442695, %v4868_v50 }
 0x258   : > { %4038 = vrcp.f32 %v1700_v38  ;;  %v1701_v23 = vadd.f32 1.0, %v4035_v46  ;;  %3656 = vmatprep.mubr.bf16.mxu0 %v1804_v45  ;;  %v3284_v5 = vmul.f32 -1.442695, %v4871_v42 }
 0x259   : > { %4040 = vrcp.f32 %v1703_v36  ;;  %3657 = vmatmul.mubr.bf16.gmra.mrb[64].mxu0 %v1805_v7 }
 0x25a   : > { %4042 = vrcp.f32 %v1701_v23 }
 0x25b   : > { %4044 = vpow2.f32 %v3285_v49 }
 0x25c   : > { %4046 = vpow2.f32 %v3283_v51 }
 0x25d   : > { %4048 = vpow2.f32 %v3286_v47 }
 0x25e   : > { %4050 = vpow2.f32 %v3284_v5 }
 0x261   : > { %v4037_v59 = vpop.eup %4036 }
 0x262   : > { %v4039_v9 = vpop.eup %4038  ;;  %v3626_v58 = vpop.f32.mrb[48].mxu1  ;;  %v1786_v62 = vmul.f32 %v4037_v59, %v4844_v63 }
 0x263   : > { %v4041_v60 = vpop.eup %4040  ;;  %v4878_v61 = vadd.f32 %v3626_v58, %v4815_v3  ;;  %v1573_v11 = vpop.f32.mrb[49].mxu1  ;;  %v1784_v13 = vmul.f32 %v4039_v9, %v4847_v2 }
 0x264   : > { %v4043_v56 = vpop.eup %4042  ;;  %v1787_v57 = vmul.f32 %v4041_v60, %v4850_v24  ;;  %v4883_v40 = vadd.f32 %v1573_v11, %v4815_v3  ;;  %v3627_v14 = vpop.f32.mrb[50].mxu1 }
 0x265   : > { %v4045_v18 = vpop.eup %4044  ;;  %v1785_v41 = vmul.f32 %v4043_v56, %v4854_v20  ;;  %v3289_v0 = vmul.f32 -1.442695, %v4878_v61  ;;  %v4889_v6 = vadd.f32 %v3627_v14, %v4815_v3  ;;  %v1576_v48 = vpop.f32.mrb[51].mxu1 }
 0x266   : > { %v4047_v27 = vpop.eup %4046  ;;  %v1706_v28 = vadd.f32 1.0, %v4045_v18  ;;  %v4892_v63 = vadd.f32 %v1576_v48, %v4815_v3  ;;  %v1807_v24 = vpack.c.bf16 %v1787_v57, %v1786_v62  ;;  %v3287_v17 = vmul.f32 -1.442695, %v4883_v40 }
 0x267   : > { %v4049_v4 = vpop.eup %4048  ;;  %v1704_v8 = vadd.f32 1.0, %v4047_v27  ;;  %4052 = vpow2.f32 %v3289_v0  ;;  %v1806_v15 = vpack.c.bf16 %v1785_v41, %v1784_v13  ;;  %v3290_v16 = vmul.f32 -1.442695, %v4889_v6 }
 0x268   : > { %v4051_v44 = vpop.eup %4050  ;;  %4054 = vrcp.f32 %v1706_v28  ;;  %v1707_v2 = vadd.f32 1.0, %v4049_v4  ;;  %v3288_v52 = vmul.f32 -1.442695, %v4892_v63 }
 0x269   : > { %4056 = vrcp.f32 %v1704_v8  ;;  %v1705_v20 = vadd.f32 1.0, %v4051_v44  ;;  %3660 = vmatprep.mubr.bf16.mxu0 %v1806_v15 }
 0x26a   : > { %4058 = vrcp.f32 %v1707_v2  ;;  %3661 = vmatmul.mubr.bf16.gmra.mrb[68].mxu0 %v1807_v24  ;;  %v1832_v2 = vsub.s32 2, %v4578_v39 }
 0x26b   : > { %4060 = vrcp.f32 %v1705_v20 }
 0x26c   : > { %4062 = vpow2.f32 %v3287_v17  ;;  %v4917_v17 = vld [vmem:[%s5735_s6] sm:$0x1f] }
 0x26d   : > { %4064 = vpow2.f32 %v3290_v16  ;;  %v4920_v20 = vrot.slane %v4917_v17, %v1832_v2 }
 0x26e   : > { %4066 = vpow2.f32 %v3288_v52 }
 0x271   : > { %v4053_v21 = vpop.eup %4052 }
 0x272   : > { %v4055_v32 = vpop.eup %4054  ;;  %v1710_v26 = vadd.f32 1.0, %v4053_v21  ;;  %v3630_v54 = vpop.f32.mrb[52].mxu1 }
 0x273   : > { %v4057_v55 = vpop.eup %4056  ;;  %v4898_v25 = vadd.f32 %v3630_v54, %v4815_v3  ;;  %v1589_v43 = vpop.f32.mrb[53].mxu1  ;;  %v1790_v10 = vmul.f32 %v4055_v32, %v4861_v12 }
 0x274   : > { %v4059_v22 = vpop.eup %4058  ;;  %v1590_v53 = vadd.f32 %v1589_v43, %v4815_v3  ;;  %v3631_v30 = vpop.f32.mrb[54].mxu1  ;;  %v1788_v33 = vmul.f32 %v4057_v55, %v4865_v34  ;;  %4068 = vrcp.f32 %v1710_v26 }
 0x275   : > { %v4061_v31 = vpop.eup %4060  ;;  %v1791_v19 = vmul.f32 %v4059_v22, %v4868_v50  ;;  %v3293_v1 = vmul.f32 -1.442695, %v4898_v25  ;;  %v1601_v35 = vadd.f32 %v3631_v30, %v4815_v3  ;;  %v1592_v37 = vpop.f32.mrb[55].mxu1 }
 0x276   : > { %v4063_v7 = vpop.eup %4062  ;;  %v1789_v29 = vmul.f32 %v4061_v31, %v4871_v42  ;;  %v3291_v38 = vmul.f32 -1.442695, %v1590_v53  ;;  %v1593_v12 = vadd.f32 %v1592_v37, %v4815_v3 }
 0x277   : > { %v4065_v45 = vpop.eup %4064  ;;  %v1809_v46 = vpack.c.bf16 %v1791_v19, %v1790_v10  ;;  %v1708_v36 = vadd.f32 1.0, %v4063_v7  ;;  %4070 = vpow2.f32 %v3293_v1  ;;  %v3294_v50 = vmul.f32 -1.442695, %v1601_v35 }
 0x278   : > { %v4067_v49 = vpop.eup %4066  ;;  %v1711_v34 = vadd.f32 1.0, %v4065_v45  ;;  %4072 = vpow2.f32 %v3291_v38  ;;  %v1808_v23 = vpack.c.bf16 %v1789_v29, %v1788_v33  ;;  %v3292_v47 = vmul.f32 -1.442695, %v1593_v12 }
 0x279   : > { %4074 = vrcp.f32 %v1708_v36  ;;  %v1709_v51 = vadd.f32 1.0, %v4067_v49 }
 0x27a   : > { %4076 = vrcp.f32 %v1711_v34  ;;  %3664 = vmatprep.mubr.bf16.mxu1 %v1808_v23 }
 0x27b   : > { %4078 = vrcp.f32 %v1709_v51  ;;  %3665 = vmatmul.mubr.bf16.vlgmr.msra.gmra.mrb[56].mxu1 %v1809_v46 }
 0x27c   : > { %4080 = vpow2.f32 %v3294_v50 }
 0x27d   : > { %4082 = vpow2.f32 %v3292_v47 }
 0x27e   : > { %v4069_v42 = vpop.eup %4068 }
 0x27f   : > { %v1794_v56 = vmul.f32 %v4069_v42, %v4878_v61 }
 0x281   : > { %v4071_v3 = vpop.eup %4070 }
 0x282   : > { %v4073_v5 = vpop.eup %4072  ;;  %v1714_v9 = vadd.f32 1.0, %v4071_v3 }
 0x283   : > { %v4075_v59 = vpop.eup %4074  ;;  %v1712_v60 = vadd.f32 1.0, %v4073_v5 }
 0x284   : > { %v4077_v58 = vpop.eup %4076  ;;  %v1792_v14 = vmul.f32 %v4075_v59, %v4883_v40  ;;  %4084 = vrcp.f32 %v1714_v9 }
 0x285   : > { %v4079_v11 = vpop.eup %4078  ;;  %v1795_v62 = vmul.f32 %v4077_v58, %v4889_v6  ;;  %4086 = vrcp.f32 %v1712_v60 }
 0x286   : > { %v4081_v57 = vpop.eup %4080  ;;  %v1793_v18 = vmul.f32 %v4079_v11, %v4892_v63 }
 0x287   : > { %v4083_v13 = vpop.eup %4082  ;;  %v1715_v41 = vadd.f32 1.0, %v4081_v57  ;;  %v1811_v0 = vpack.c.bf16 %v1795_v62, %v1794_v56 }
 0x288   : > { %v1713_v48 = vadd.f32 1.0, %v4083_v13  ;;  %v1810_v27 = vpack.c.bf16 %v1793_v18, %v1792_v14 }
 0x289   : > { %4088 = vrcp.f32 %v1715_v41 }
 0x28a   : > { %4090 = vrcp.f32 %v1713_v48  ;;  %3668 = vmatprep.mubr.bf16.mxu1 %v1810_v27 }
 0x28b   : > { %3669 = vmatmul.mubr.bf16.gmra.mrb[60].mxu1 %v1811_v0 }
 0x28e   : > { %v4085_v28 = vpop.eup %4084 }
 0x28f   : > { %v4087_v61 = vpop.eup %4086  ;;  %v1798_v4 = vmul.f32 %v4085_v28, %v4898_v25 }
 0x290   : > { %v1796_v8 = vmul.f32 %v4087_v61, %v1590_v53 }
 0x293   : > { %v4089_v24 = vpop.eup %4088 }
 0x294   : > { %v4091_v6 = vpop.eup %4090  ;;  %v1799_v40 = vmul.f32 %v4089_v24, %v1601_v35 }
 0x295   : > { %v1797_v63 = vmul.f32 %v4091_v6, %v1593_v12 }
 0x296   : > { %v1813_v15 = vpack.c.bf16 %v1799_v40, %v1798_v4 }
 0x297   : > { %v1812_v44 = vpack.c.bf16 %v1797_v63, %v1796_v8 }
 0x299   : > { %3672 = vmatprep.mubr.bf16.mxu1 %v1812_v44 }
 0x29a   : > { %3673 = vmatmul.mubr.bf16.gmra.mrb[64].mxu1 %v1813_v15 }
 0x30a   : > { %v3650_v16 = vpop.f32.mrb[56].mxu0 }
 0x30b   : > { %v4923_v52 = vadd.f32 %v3650_v16, %v4920_v20  ;;  %v1916_v21 = vpop.f32.mrb[57].mxu0 }
 0x30c   : > { %v4926_v32 = vadd.f32 %v1916_v21, %v4920_v20  ;;  %v3651_v26 = vpop.f32.mrb[58].mxu0 }
 0x30d   : > { %2031 = vadd.xlane.f32.xlu1 %v4923_v52  ;;  %v1919_v54 = vpop.f32.mrb[59].mxu0  ;;  %v4931_v55 = vadd.f32 %v3651_v26, %v4920_v20 }
 0x30e   : > { %2027 = vadd.xlane.f32.xlu0 %v4926_v32  ;;  %v4934_v25 = vadd.f32 %v1919_v54, %v4920_v20 }
 0x311   : > { %2033 = vadd.xlane.f32.xlu1 %v4931_v55 }
 0x312   : > { %2029 = vadd.xlane.f32.xlu0 %v4934_v25 }
 0x31b   : > { %v3654_v43 = vpop.f32.mrb[60].mxu0 }
 0x31c   : > { %v4939_v22 = vadd.f32 %v3654_v43, %v4920_v20  ;;  %v1932_v10 = vpop.f32.mrb[61].mxu0 }
 0x31d   : > { %v3655_v53 = vpop.f32.mrb[62].mxu0  ;;  %v4946_v33 = vadd.f32 %v1932_v10, %v4920_v20 }
 0x31e   : > { %v4942_v30 = vadd.f32 %v3655_v53, %v4920_v20  ;;  %v1935_v31 = vpop.f32.mrb[63].mxu0  ;;  %2039 = vadd.xlane.f32.xlu0 %v4939_v22 }
 0x31f   : > { %v4950_v19 = vadd.f32 %v1935_v31, %v4920_v20 }
 0x320   : > { %2041 = vadd.xlane.f32.xlu1 %v4942_v30 }
 0x322   : > { %2035 = vadd.xlane.f32.xlu0 %v4946_v33 }
 0x324   : > { %2037 = vadd.xlane.f32.xlu1 %v4950_v19 }
 0x32c   : > { %v3658_v1 = vpop.f32.mrb[64].mxu0 }
 0x32d   : > { %v4955_v35 = vadd.f32 %v3658_v1, %v4920_v20  ;;  %v1948_v37 = vpop.f32.mrb[65].mxu0 }
 0x32e   : > { %v3659_v7 = vpop.f32.mrb[66].mxu0  ;;  %v4962_v12 = vadd.f32 %v1948_v37, %v4920_v20 }
 0x32f   : > { %v4958_v29 = vadd.f32 %v3659_v7, %v4920_v20  ;;  %v1951_v38 = vpop.f32.mrb[67].mxu0  ;;  %2047 = vadd.xlane.f32.xlu0 %v4955_v35 }
 0x330   : > { %v4966_v45 = vadd.f32 %v1951_v38, %v4920_v20 }
 0x331   : > { %2049 = vadd.xlane.f32.xlu1 %v4958_v29 }
 0x333   : > { %2043 = vadd.xlane.f32.xlu0 %v4962_v12 }
 0x335   : > { %2045 = vadd.xlane.f32.xlu1 %v4966_v45 }
 0x33d   : > { %v3662_v46 = vpop.f32.mrb[68].mxu0 }
 0x33e   : > { %v4971_v36 = vadd.f32 %v3662_v46, %v4920_v20  ;;  %v1964_v49 = vpop.f32.mrb[69].mxu0 }
 0x33f   : > { %v3663_v34 = vpop.f32.mrb[70].mxu0  ;;  %v4978_v51 = vadd.f32 %v1964_v49, %v4920_v20 }
 0x340   : > { %v4974_v50 = vadd.f32 %v3663_v34, %v4920_v20  ;;  %v1967_v23 = vpop.f32.mrb[71].mxu0  ;;  %2055 = vadd.xlane.f32.xlu0 %v4971_v36 }
 0x341   : > { %v4982_v47 = vadd.f32 %v1967_v23, %v4920_v20 }
 0x342   : > { %2057 = vadd.xlane.f32.xlu1 %v4974_v50 }
 0x344   : > { %2051 = vadd.xlane.f32.xlu0 %v4978_v51 }
 0x346   : > { %2053 = vadd.xlane.f32.xlu1 %v4982_v47 }
 0x34e   : > { %v3666_v42 = vpop.f32.mrb[56].mxu1 }
 0x34f   : > { %v4987_v3 = vadd.f32 %v3666_v42, %v4920_v20  ;;  %v1980_v5 = vpop.f32.mrb[57].mxu1 }
 0x350   : > { %v3667_v59 = vpop.f32.mrb[58].mxu1  ;;  %v4994_v60 = vadd.f32 %v1980_v5, %v4920_v20 }
 0x351   : > { %v4990_v9 = vadd.f32 %v3667_v59, %v4920_v20  ;;  %v1983_v58 = vpop.f32.mrb[59].mxu1  ;;  %2063 = vadd.xlane.f32.xlu0 %v4987_v3 }
 0x352   : > { %v4998_v11 = vadd.f32 %v1983_v58, %v4920_v20 }
 0x353   : > { %2065 = vadd.xlane.f32.xlu1 %v4990_v9 }
 0x355   : > { %2059 = vadd.xlane.f32.xlu0 %v4994_v60 }
 0x357   : > { %2061 = vadd.xlane.f32.xlu1 %v4998_v11 }
 0x35e   : > { %v3670_v56 = vpop.f32.mrb[60].mxu1 }
 0x35f   : > { %v5003_v62 = vadd.f32 %v3670_v56, %v4920_v20  ;;  %v1996_v57 = vpop.f32.mrb[61].mxu1 }
 0x360   : > { %v3671_v14 = vpop.f32.mrb[62].mxu1  ;;  %v5010_v41 = vadd.f32 %v1996_v57, %v4920_v20 }
 0x361   : > { %v5006_v18 = vadd.f32 %v3671_v14, %v4920_v20  ;;  %v1999_v13 = vpop.f32.mrb[63].mxu1  ;;  %2071 = vadd.xlane.f32.xlu0 %v5003_v62 }
 0x362   : > { %v5014_v0 = vadd.f32 %v1999_v13, %v4920_v20 }
 0x363   : > { %2073 = vadd.xlane.f32.xlu1 %v5006_v18 }
 0x365   : > { %2067 = vadd.xlane.f32.xlu0 %v5010_v41 }
 0x367   : > { %2069 = vadd.xlane.f32.xlu1 %v5014_v0 }
 0x36d   : > { %v3674_v48 = vpop.f32.mrb[64].mxu1 }
 0x36e   : > { %v2012_v27 = vpop.f32.mrb[65].mxu1  ;;  %v5026_v4 = vadd.f32 %v3674_v48, %v4920_v20 }
 0x36f   : > { %v5019_v28 = vadd.f32 %v2012_v27, %v4920_v20  ;;  %v3675_v61 = vpop.f32.mrb[66].mxu1 }
 0x370   : > { %v2015_v24 = vpop.f32.mrb[67].mxu1  ;;  %v5030_v40 = vadd.f32 %v3675_v61, %v4920_v20 }
 0x371   : > { %v5022_v6 = vadd.f32 %v2015_v24, %v4920_v20  ;;  %2075 = vadd.xlane.f32.xlu0 %v5019_v28 }
 0x373   : > { %2077 = vadd.xlane.f32.xlu1 %v5022_v6 }
 0x375   : > { %2079 = vadd.xlane.f32.xlu0 %v5026_v4 }
 0x377   : > { %2081 = vadd.xlane.f32.xlu1 %v5030_v40 }
 0x39a   : > { %v2032_v8 = vpop.xlane.xlu1 %2031 }
 0x39b   : > { %v2086_v63 = vmul.f32 0.0078125, %v2032_v8  ;;  %v2028_v15 = vpop.xlane.xlu0 %2027 }
 0x39c   : > { %v2084_v44 = vmul.f32 0.0078125, %v2028_v15 }
 0x39d   : > { %v5035_v2 = vsub.f32 %v4923_v52, %v2086_v63 }
 0x39e   : > { %v2034_v16 = vpop.xlane.xlu1 %2033  ;;  %v5038_v21 = vsub.f32 %v4926_v32, %v2084_v44 }
 0x39f   : > { %v2087_v26 = vmul.f32 0.0078125, %v2034_v16  ;;  %v2030_v54 = vpop.xlane.xlu0 %2029  ;;  %v2142_v20 = vmul.f32 %v5035_v2, %v5035_v2 }
 0x3a0   : > { %v2085_v43 = vmul.f32 0.0078125, %v2030_v54  ;;  %v2140_v32 = vmul.f32 %v5038_v21, %v5038_v21 }
 0x3a1   : > { %v5043_v10 = vsub.f32 %v4931_v55, %v2087_v26  ;;  %2172 = vadd.xlane.f32.xlu0 %v2142_v20 }
 0x3a2   : > { %v5046_v53 = vsub.f32 %v4934_v25, %v2085_v43 }
 0x3a3   : > { %v2143_v52 = vmul.f32 %v5043_v10, %v5043_v10 }
 0x3a4   : > { %v2141_v31 = vmul.f32 %v5046_v53, %v5046_v53 }
 0x3a5   : > { %2174 = vadd.xlane.f32.xlu1 %v2143_v52  ;;  %2168 = vadd.xlane.f32.xlu0 %v2140_v32 }
 0x3a9   : > { %2170 = vadd.xlane.f32.xlu1 %v2141_v31 }
 0x3ab   : > { %v2040_v1 = vpop.xlane.xlu0 %2039 }
 0x3ac   : > { %v2090_v37 = vmul.f32 0.0078125, %v2040_v1 }
 0x3ad   : > { %v2042_v55 = vpop.xlane.xlu1 %2041 }
 0x3ae   : > { %v5055_v7 = vsub.f32 %v4939_v22, %v2090_v37  ;;  %v2091_v25 = vmul.f32 0.0078125, %v2042_v55 }
 0x3af   : > { %v2036_v38 = vpop.xlane.xlu0 %2035 }
 0x3b0   : > { %v5058_v46 = vsub.f32 %v4942_v30, %v2091_v25  ;;  %v2088_v49 = vmul.f32 0.0078125, %v2036_v38  ;;  %v2146_v34 = vmul.f32 %v5055_v7, %v5055_v7 }
 0x3b1   : > { %v2038_v23 = vpop.xlane.xlu1 %2037 }
 0x3b2   : > { %v5063_v42 = vsub.f32 %v4946_v33, %v2088_v49  ;;  %v2089_v5 = vmul.f32 0.0078125, %v2038_v23  ;;  %2180 = vadd.xlane.f32.xlu0 %v2146_v34  ;;  %v2147_v59 = vmul.f32 %v5058_v46, %v5058_v46 }
 0x3b4   : > { %v5068_v22 = vsub.f32 %v4950_v19, %v2089_v5  ;;  %2182 = vadd.xlane.f32.xlu1 %v2147_v59  ;;  %v2144_v30 = vmul.f32 %v5063_v42, %v5063_v42 }
 0x3b6   : > { %2176 = vadd.xlane.f32.xlu0 %v2144_v30  ;;  %v2145_v58 = vmul.f32 %v5068_v22, %v5068_v22 }
 0x3b8   : > { %2178 = vadd.xlane.f32.xlu1 %v2145_v58 }
 0x3bc   : > { %v2048_v56 = vpop.xlane.xlu0 %2047 }
 0x3bd   : > { %v2094_v33 = vmul.f32 0.0078125, %v2048_v56 }
 0x3be   : > { %v2050_v57 = vpop.xlane.xlu1 %2049 }
 0x3bf   : > { %v5075_v14 = vsub.f32 %v4955_v35, %v2094_v33  ;;  %v2095_v13 = vmul.f32 0.0078125, %v2050_v57 }
 0x3c0   : > { %v2044_v48 = vpop.xlane.xlu0 %2043 }
 0x3c1   : > { %v5078_v19 = vsub.f32 %v4958_v29, %v2095_v13  ;;  %v2092_v27 = vmul.f32 0.0078125, %v2044_v48  ;;  %v2150_v61 = vmul.f32 %v5075_v14, %v5075_v14 }
 0x3c2   : > { %v2046_v24 = vpop.xlane.xlu1 %2045 }
 0x3c3   : > { %v5083_v8 = vsub.f32 %v4962_v12, %v2092_v27  ;;  %v2093_v63 = vmul.f32 0.0078125, %v2046_v24  ;;  %2188 = vadd.xlane.f32.xlu0 %v2150_v61  ;;  %v2151_v15 = vmul.f32 %v5078_v19, %v5078_v19 }
 0x3c5   : > { %v5088_v35 = vsub.f32 %v4966_v45, %v2093_v63  ;;  %2190 = vadd.xlane.f32.xlu1 %v2151_v15  ;;  %v2148_v29 = vmul.f32 %v5083_v8, %v5083_v8 }
 0x3c7   : > { %2184 = vadd.xlane.f32.xlu0 %v2148_v29  ;;  %v2149_v44 = vmul.f32 %v5088_v35, %v5088_v35 }
 0x3c9   : > { %2186 = vadd.xlane.f32.xlu1 %v2149_v44 }
 0x3cd   : > { %v2056_v16 = vpop.xlane.xlu0 %2055 }
 0x3ce   : > { %v2098_v12 = vmul.f32 0.0078125, %v2056_v16 }
 0x3cf   : > { %v2058_v26 = vpop.xlane.xlu1 %2057 }
 0x3d0   : > { %v5095_v54 = vsub.f32 %v4971_v36, %v2098_v12  ;;  %v2099_v20 = vmul.f32 0.0078125, %v2058_v26 }
 0x3d1   : > { %v2052_v43 = vpop.xlane.xlu0 %2051 }
 0x3d2   : > { %v5098_v45 = vsub.f32 %v4974_v50, %v2099_v20  ;;  %v2096_v52 = vmul.f32 0.0078125, %v2052_v43  ;;  %v2154_v32 = vmul.f32 %v5095_v54, %v5095_v54 }
 0x3d3   : > { %v2054_v31 = vpop.xlane.xlu1 %2053 }
 0x3d4   : > { %v5103_v1 = vsub.f32 %v4978_v51, %v2096_v52  ;;  %v2097_v37 = vmul.f32 0.0078125, %v2054_v31  ;;  %2196 = vadd.xlane.f32.xlu0 %v2154_v32  ;;  %v2155_v55 = vmul.f32 %v5098_v45, %v5098_v45 }
 0x3d6   : > { %v5108_v36 = vsub.f32 %v4982_v47, %v2097_v37  ;;  %2198 = vadd.xlane.f32.xlu1 %v2155_v55  ;;  %v2152_v50 = vmul.f32 %v5103_v1, %v5103_v1 }
 0x3d8   : > { %2192 = vadd.xlane.f32.xlu0 %v2152_v50  ;;  %v2153_v25 = vmul.f32 %v5108_v36, %v5108_v36 }
 0x3da   : > { %2194 = vadd.xlane.f32.xlu1 %v2153_v25 }
 0x3de   : > { %v2064_v38 = vpop.xlane.xlu0 %2063 }
 0x3df   : > { %v2102_v51 = vmul.f32 0.0078125, %v2064_v38 }
 0x3e0   : > { %v2066_v49 = vpop.xlane.xlu1 %2065 }
 0x3e1   : > { %v5115_v34 = vsub.f32 %v4987_v3, %v2102_v51  ;;  %v2103_v23 = vmul.f32 0.0078125, %v2066_v49 }
 0x3e2   : > { %v2060_v5 = vpop.xlane.xlu0 %2059 }
 0x3e3   : > { %v5118_v47 = vsub.f32 %v4990_v9, %v2103_v23  ;;  %v2100_v59 = vmul.f32 0.0078125, %v2060_v5  ;;  %v2158_v30 = vmul.f32 %v5115_v34, %v5115_v34 }
 0x3e4   : > { %v2062_v58 = vpop.xlane.xlu1 %2061 }
 0x3e5   : > { %v5123_v56 = vsub.f32 %v4994_v60, %v2100_v59  ;;  %v2101_v33 = vmul.f32 0.0078125, %v2062_v58  ;;  %2204 = vadd.xlane.f32.xlu0 %v2158_v30  ;;  %v2159_v57 = vmul.f32 %v5118_v47, %v5118_v47 }
 0x3e7   : > { %v5128_v3 = vsub.f32 %v4998_v11, %v2101_v33  ;;  %2206 = vadd.xlane.f32.xlu1 %v2159_v57  ;;  %v2156_v9 = vmul.f32 %v5123_v56, %v5123_v56 }
 0x3e9   : > { %2200 = vadd.xlane.f32.xlu0 %v2156_v9  ;;  %v2157_v13 = vmul.f32 %v5128_v3, %v5128_v3 }
 0x3eb   : > { %2202 = vadd.xlane.f32.xlu1 %v2157_v13 }
 0x3ee   : > { %v2072_v48 = vpop.xlane.xlu0 %2071 }
 0x3ef   : > { %v2106_v60 = vmul.f32 0.0078125, %v2072_v48 }
 0x3f0   : > { %v2074_v27 = vpop.xlane.xlu1 %2073 }
 0x3f1   : > { %v5135_v61 = vsub.f32 %v5003_v62, %v2106_v60  ;;  %v2107_v24 = vmul.f32 0.0078125, %v2074_v27  ;;  %v2338_v60 = vsub.s32 3, %v4578_v39 }
 0x3f2   : > { %v2068_v63 = vpop.xlane.xlu0 %2067 }
 0x3f3   : > { %v5138_v11 = vsub.f32 %v5006_v18, %v2107_v24  ;;  %v2104_v15 = vmul.f32 0.0078125, %v2068_v63  ;;  %v2162_v29 = vmul.f32 %v5135_v61, %v5135_v61  ;;  %v2370_v24 = vsub.s32 4, %v4578_v39 }
 0x3f4   : > { %v2070_v44 = vpop.xlane.xlu1 %2069  ;;  %v5177_v63 = vrot.slane %v4917_v17, %v2338_v60 }
 0x3f5   : > { %v5143_v16 = vsub.f32 %v5010_v41, %v2104_v15  ;;  %v2105_v12 = vmul.f32 0.0078125, %v2070_v44  ;;  %2212 = vadd.xlane.f32.xlu0 %v2162_v29  ;;  %v2163_v26 = vmul.f32 %v5138_v11, %v5138_v11  ;;  %v5184_v44 = vrot.slane %v4917_v17, %v2370_v24 }
 0x3f7   : > { %v5148_v62 = vsub.f32 %v5014_v0, %v2105_v12  ;;  %2214 = vadd.xlane.f32.xlu1 %v2163_v26  ;;  %v2160_v18 = vmul.f32 %v5143_v16, %v5143_v16 }
 0x3f9   : > { %2208 = vadd.xlane.f32.xlu0 %v2160_v18  ;;  %v2161_v20 = vmul.f32 %v5148_v62, %v5148_v62 }
 0x3fb   : > { %2210 = vadd.xlane.f32.xlu1 %v2161_v20 }
 0x3fe   : > { %v2076_v43 = vpop.xlane.xlu0 %2075 }
 0x3ff   : > { %v2108_v41 = vmul.f32 0.0078125, %v2076_v43 }
 0x400   : > { %v2078_v52 = vpop.xlane.xlu1 %2077 }
 0x401   : > { %v5155_v32 = vsub.f32 %v5019_v28, %v2108_v41  ;;  %v2109_v31 = vmul.f32 0.0078125, %v2078_v52 }
 0x402   : > { %v2080_v37 = vpop.xlane.xlu0 %2079 }
 0x403   : > { %v5158_v0 = vsub.f32 %v5022_v6, %v2109_v31  ;;  %v2110_v55 = vmul.f32 0.0078125, %v2080_v37  ;;  %v2164_v50 = vmul.f32 %v5155_v32, %v5155_v32 }
 0x404   : > { %v2082_v25 = vpop.xlane.xlu1 %2081 }
 0x405   : > { %v5163_v38 = vsub.f32 %v5026_v4, %v2110_v55  ;;  %v2111_v51 = vmul.f32 0.0078125, %v2082_v25  ;;  %2216 = vadd.xlane.f32.xlu0 %v2164_v50  ;;  %v2165_v49 = vmul.f32 %v5158_v0, %v5158_v0  ;;  %v4149_v25 = vld [vmem:[%s4488_s23 + $0x10] sm:$0xff] }
 0x407   : > { %v5168_v28 = vsub.f32 %v5030_v40, %v2111_v51  ;;  %2218 = vadd.xlane.f32.xlu1 %v2165_v49  ;;  %v2166_v6 = vmul.f32 %v5163_v38, %v5163_v38 }
 0x409   : > { %2220 = vadd.xlane.f32.xlu0 %v2166_v6  ;;  %v2167_v23 = vmul.f32 %v5168_v28, %v5168_v28 }
 0x40b   : > { %2222 = vadd.xlane.f32.xlu1 %v2167_v23 }
 0x42e   : > { %v2173_v5 = vpop.xlane.xlu0 %2172 }
 0x42f   : > { %v2226_v4 = vmul.f32 0.0078125, %v2173_v5 }
 0x431   : > { %v2254_v59 = vadd.f32 1e-05, %v2226_v4 }
 0x432   : > { %v2175_v30 = vpop.xlane.xlu1 %2174  ;;  %v2169_v58 = vpop.xlane.xlu0 %2168 }
 0x433   : > { %4092 = vrsqrt.f32 %v2254_v59  ;;  %v2227_v33 = vmul.f32 0.0078125, %v2175_v30  ;;  %v2224_v57 = vmul.f32 0.0078125, %v2169_v58 }
 0x435   : > { %v2255_v40 = vadd.f32 1e-05, %v2227_v33  ;;  %v2252_v9 = vadd.f32 1e-05, %v2224_v57  ;;  %v4150_v57 = vld [vmem:[%s4488_s23 + $0x18] sm:$0xff] }
 0x436   : > { %v2171_v13 = vpop.xlane.xlu1 %2170 }
 0x437   : > { %4094 = vrsqrt.f32 %v2255_v40  ;;  %v2225_v48 = vmul.f32 0.0078125, %v2171_v13 }
 0x438   : > { %4096 = vrsqrt.f32 %v2252_v9 }
 0x439   : > { %v2253_v27 = vadd.f32 1e-05, %v2225_v48  ;;  %v4152_v48 = vld [vmem:[%s4488_s23 + $0x8] sm:$0xff] }
 0x43b   : > { %4098 = vrsqrt.f32 %v2253_v27 }
 0x43d   : > { %v4093_v15 = vpop.eup %4092 }
 0x43e   : > { %v2310_v29 = vmul.f32 %v4093_v15, %v5035_v2 }
 0x43f   : > { %v2181_v12 = vpop.xlane.xlu0 %2180 }
 0x440   : > { %v2230_v26 = vmul.f32 0.0078125, %v2181_v12  ;;  %v2342_v18 = vmul.f32 %v5177_v63, %v2310_v29 }
 0x441   : > { %v4095_v39 = vpop.eup %4094  ;;  %v2183_v20 = vpop.xlane.xlu1 %2182 }
 0x442   : > { %v4097_v43 = vpop.eup %4096  ;;  %v2258_v41 = vadd.f32 1e-05, %v2230_v26  ;;  %v2231_v52 = vmul.f32 0.0078125, %v2183_v20  ;;  %v5189_v31 = vadd.f32 %v5184_v44, %v2342_v18  ;;  %v2311_v37 = vmul.f32 %v4095_v39, %v5043_v10 }
 0x443   : > { %v2177_v2 = vpop.xlane.xlu0 %2176  ;;  %v2308_v17 = vmul.f32 %v4097_v43, %v5038_v21 }
 0x444   : > { %4100 = vrsqrt.f32 %v2258_v41  ;;  %v2259_v55 = vadd.f32 1e-05, %v2231_v52  ;;  %v2228_v50 = vmul.f32 0.0078125, %v2177_v2  ;;  %2460 = vrot.lane.b32.xlu1 %v5189_v31, %s4309_s22  ;;  %v2402_v51 = vadd.f32 %v4149_v25, %v5189_v31 }
 0x445   : > { %v4099_v49 = vpop.eup %4098  ;;  %v2179_v6 = vpop.xlane.xlu1 %2178  ;;  %v2343_v23 = vmul.f32 %v5177_v63, %v2311_v37  ;;  %v2340_v10 = vmul.f32 %v5177_v63, %v2308_v17 }
 0x446   : > { %4102 = vrsqrt.f32 %v2259_v55  ;;  %v2256_v21 = vadd.f32 1e-05, %v2228_v50  ;;  %v2229_v5 = vmul.f32 0.0078125, %v2179_v6  ;;  %2739 = vst [vmem:[%s5199_s19 + $0x10] sm:$0xff] %v2402_v51  ;;  %v2309_v4 = vmul.f32 %v4099_v49, %v5046_v53  ;;  %v4151_v53 = vld [vmem:[%s4488_s23] sm:$0xff] }
 0x447   : > { %v5204_v59 = vadd.f32 %v5184_v44, %v2343_v23  ;;  %v5207_v30 = vadd.f32 %v5184_v44, %v2340_v10 }
 0x448   : > { %4104 = vrsqrt.f32 %v2256_v21  ;;  %v2257_v58 = vadd.f32 1e-05, %v2229_v5  ;;  %v2341_v33 = vmul.f32 %v5177_v63, %v2309_v4  ;;  %v4154_v21 = vld [vmem:[%s4488_s23 + $0x38] sm:$0xff] }
 0x449   : > { %v2403_v40 = vadd.f32 %v4150_v57, %v5204_v59  ;;  %2462 = vrot.lane.b32.xlu1 %v5204_v59, %s4309_s22  ;;  %2456 = vrot.lane.b32.xlu0 %v5207_v30, %s4309_s22  ;;  %v2400_v9 = vadd.f32 %v4151_v53, %v5207_v30  ;;  %v4156_v53 = vld [vmem:[%s4488_s23 + $0x28] sm:$0xff] }
 0x44a   : > { %4106 = vrsqrt.f32 %v2257_v58  ;;  %v5219_v13 = vadd.f32 %v5184_v44, %v2341_v33  ;;  %v4155_v33 = vld [vmem:[%s4488_s23 + $0x20] sm:$0xff] }
 0x44b   : > { %2740 = vst [vmem:[%s5199_s19 + $0x18] sm:$0xff] %v2403_v40  ;;  %2737 = vst [vmem:[%s5199_s19] sm:$0xff] %v2400_v9 }
 0x44c   : > { %v2401_v60 = vadd.f32 %v4152_v48, %v5219_v13 }
 0x44d   : > { %2458 = vrot.lane.b32.xlu1 %v5219_v13, %s4309_s22 }
 0x44e   : > { %v4101_v27 = vpop.eup %4100  ;;  %2738 = vst [vmem:[%s5199_s19 + $0x8] sm:$0xff] %v2401_v60 }
 0x44f   : > { %v2314_v24 = vmul.f32 %v4101_v27, %v5055_v7 }
 0x450   : > { %v4103_v15 = vpop.eup %4102  ;;  %v2189_v29 = vpop.xlane.xlu0 %2188 }
 0x451   : > { %v2234_v12 = vmul.f32 0.0078125, %v2189_v29  ;;  %v2346_v26 = vmul.f32 %v5177_v63, %v2314_v24  ;;  %v2315_v18 = vmul.f32 %v4103_v15, %v5058_v46  ;;  %v4153_v46 = vld [vmem:[%s4488_s23 + $0x30] sm:$0xff] }
 0x452   : > { %v4105_v39 = vpop.eup %4104  ;;  %v2191_v20 = vpop.xlane.xlu1 %2190 }
 0x453   : > { %v2262_v43 = vadd.f32 1e-05, %v2234_v12  ;;  %v2235_v41 = vmul.f32 0.0078125, %v2191_v20  ;;  %v5232_v52 = vadd.f32 %v5184_v44, %v2346_v26  ;;  %v2347_v37 = vmul.f32 %v5177_v63, %v2315_v18 }
 0x454   : > { %v4107_v2 = vpop.eup %4106  ;;  %v2185_v7 = vpop.xlane.xlu0 %2184  ;;  %v2312_v17 = vmul.f32 %v4105_v39, %v5063_v42 }
 0x455   : > { %4108 = vrsqrt.f32 %v2262_v43  ;;  %v2263_v55 = vadd.f32 1e-05, %v2235_v41  ;;  %v2232_v50 = vmul.f32 0.0078125, %v2185_v7  ;;  %2468 = vrot.lane.b32.xlu0 %v5232_v52, %s4309_s22  ;;  %v2406_v25 = vadd.f32 %v4153_v46, %v5232_v52 }
 0x456   : > { %v2187_v51 = vpop.xlane.xlu1 %2186  ;;  %v5241_v49 = vadd.f32 %v5184_v44, %v2347_v37  ;;  %v2344_v6 = vmul.f32 %v5177_v63, %v2312_v17  ;;  %v2313_v23 = vmul.f32 %v4107_v2, %v5068_v22 }
 0x457   : > { %4110 = vrsqrt.f32 %v2263_v55  ;;  %v2260_v42 = vadd.f32 1e-05, %v2232_v50  ;;  %v2233_v10 = vmul.f32 0.0078125, %v2187_v51  ;;  %2743 = vst [vmem:[%s5199_s19 + $0x30] sm:$0xff] %v2406_v25 }
 0x458   : > { %v2407_v5 = vadd.f32 %v4154_v21, %v5241_v49  ;;  %2470 = vrot.lane.b32.xlu1 %v5241_v49, %s4309_s22  ;;  %v5251_v4 = vadd.f32 %v5184_v44, %v2344_v6  ;;  %v2345_v58 = vmul.f32 %v5177_v63, %v2313_v23  ;;  %v4158_v23 = vld [vmem:[%s4488_s23 + $0x58] sm:$0xff] }
 0x459   : > { %4112 = vrsqrt.f32 %v2260_v42  ;;  %v2261_v22 = vadd.f32 1e-05, %v2233_v10 }
 0x45a   : > { %2744 = vst [vmem:[%s5199_s19 + $0x38] sm:$0xff] %v2407_v5  ;;  %2464 = vrot.lane.b32.xlu0 %v5251_v4, %s4309_s22  ;;  %v2404_v57 = vadd.f32 %v4155_v33, %v5251_v4  ;;  %v5260_v40 = vadd.f32 %v5184_v44, %v2345_v58  ;;  %v4159_v5 = vld [vmem:[%s4488_s23 + $0x40] sm:$0xff]  ;;  %v4160_v33 = vld [vmem:[%s4488_s23 + $0x48] sm:$0xff] }
 0x45b   : > { %4114 = vrsqrt.f32 %v2261_v22 }
 0x45c   : > { %2741 = vst [vmem:[%s5199_s19 + $0x20] sm:$0xff] %v2404_v57  ;;  %v2405_v9 = vadd.f32 %v4156_v53, %v5260_v40  ;;  %2466 = vrot.lane.b32.xlu1 %v5260_v40, %s4309_s22 }
 0x45e   : > { %2742 = vst [vmem:[%s5199_s19 + $0x28] sm:$0xff] %v2405_v9 }
 0x45f   : > { %v4109_v48 = vpop.eup %4108 }
 0x460   : > { %v2318_v60 = vmul.f32 %v4109_v48, %v5075_v14 }
 0x461   : > { %v4111_v27 = vpop.eup %4110  ;;  %v2197_v24 = vpop.xlane.xlu0 %2196 }
 0x462   : > { %v2238_v15 = vmul.f32 0.0078125, %v2197_v24  ;;  %v2350_v29 = vmul.f32 %v5177_v63, %v2318_v60  ;;  %v2319_v12 = vmul.f32 %v4111_v27, %v5078_v19  ;;  %v4157_v19 = vld [vmem:[%s4488_s23 + $0x50] sm:$0xff] }
 0x463   : > { %v4113_v26 = vpop.eup %4112  ;;  %v2199_v18 = vpop.xlane.xlu1 %2198 }
 0x464   : > { %v2266_v39 = vadd.f32 1e-05, %v2238_v15  ;;  %v2239_v20 = vmul.f32 0.0078125, %v2199_v18  ;;  %v5272_v43 = vadd.f32 %v5184_v44, %v2350_v29  ;;  %v2351_v41 = vmul.f32 %v5177_v63, %v2319_v12 }
 0x465   : > { %v4115_v37 = vpop.eup %4114  ;;  %v2193_v14 = vpop.xlane.xlu0 %2192  ;;  %v2316_v2 = vmul.f32 %v4113_v26, %v5083_v8 }
 0x466   : > { %4116 = vrsqrt.f32 %v2266_v39  ;;  %v2267_v7 = vadd.f32 1e-05, %v2239_v20  ;;  %v2236_v17 = vmul.f32 0.0078125, %v2193_v14  ;;  %2476 = vrot.lane.b32.xlu0 %v5272_v43, %s4309_s22  ;;  %v2410_v55 = vadd.f32 %v4157_v19, %v5272_v43 }
 0x467   : > { %v2195_v50 = vpop.xlane.xlu1 %2194  ;;  %v5281_v46 = vadd.f32 %v5184_v44, %v2351_v41  ;;  %v2348_v25 = vmul.f32 %v5177_v63, %v2316_v2  ;;  %v2317_v51 = vmul.f32 %v4115_v37, %v5088_v35 }
 0x468   : > { %4118 = vrsqrt.f32 %v2267_v7  ;;  %v2264_v8 = vadd.f32 1e-05, %v2236_v17  ;;  %v2237_v6 = vmul.f32 0.0078125, %v2195_v50  ;;  %2747 = vst [vmem:[%s5199_s19 + $0x50] sm:$0xff] %v2410_v55 }
 0x469   : > { %v2411_v42 = vadd.f32 %v4158_v23, %v5281_v46  ;;  %2478 = vrot.lane.b32.xlu1 %v5281_v46, %s4309_s22  ;;  %v5291_v10 = vadd.f32 %v5184_v44, %v2348_v25  ;;  %v2349_v21 = vmul.f32 %v5177_v63, %v2317_v51  ;;  %v4162_v51 = vld [vmem:[%s4488_s23 + $0x78] sm:$0xff] }
 0x46a   : > { %4120 = vrsqrt.f32 %v2264_v8  ;;  %v2265_v35 = vadd.f32 1e-05, %v2237_v6 }
 0x46b   : > { %2748 = vst [vmem:[%s5199_s19 + $0x58] sm:$0xff] %v2411_v42  ;;  %2472 = vrot.lane.b32.xlu0 %v5291_v10, %s4309_s22  ;;  %v2408_v58 = vadd.f32 %v4159_v5, %v5291_v10  ;;  %v5300_v22 = vadd.f32 %v5184_v44, %v2349_v21  ;;  %v4163_v42 = vld [vmem:[%s4488_s23 + $0x60] sm:$0xff]  ;;  %v4164_v5 = vld [vmem:[%s4488_s23 + $0x68] sm:$0xff] }
 0x46c   : > { %4122 = vrsqrt.f32 %v2265_v35 }
 0x46d   : > { %2745 = vst [vmem:[%s5199_s19 + $0x40] sm:$0xff] %v2408_v58  ;;  %v2409_v57 = vadd.f32 %v4160_v33, %v5300_v22  ;;  %2474 = vrot.lane.b32.xlu1 %v5300_v22, %s4309_s22 }
 0x46f   : > { %2746 = vst [vmem:[%s5199_s19 + $0x48] sm:$0xff] %v2409_v57 }
 0x470   : > { %v4117_v53 = vpop.eup %4116 }
 0x471   : > { %v2322_v9 = vmul.f32 %v4117_v53, %v5095_v54 }
 0x472   : > { %v4119_v48 = vpop.eup %4118  ;;  %v2205_v60 = vpop.xlane.xlu0 %2204 }
 0x473   : > { %v2242_v27 = vmul.f32 0.0078125, %v2205_v60  ;;  %v2354_v24 = vmul.f32 %v5177_v63, %v2322_v9  ;;  %v2323_v15 = vmul.f32 %v4119_v48, %v5098_v45  ;;  %v4161_v45 = vld [vmem:[%s4488_s23 + $0x70] sm:$0xff] }
 0x474   : > { %v4121_v29 = vpop.eup %4120  ;;  %v2207_v12 = vpop.xlane.xlu1 %2206 }
 0x475   : > { %v2270_v26 = vadd.f32 1e-05, %v2242_v27  ;;  %v2243_v18 = vmul.f32 0.0078125, %v2207_v12  ;;  %v5312_v39 = vadd.f32 %v5184_v44, %v2354_v24  ;;  %v2355_v20 = vmul.f32 %v5177_v63, %v2323_v15 }
 0x476   : > { %v4123_v41 = vpop.eup %4122  ;;  %v2201_v54 = vpop.xlane.xlu0 %2200  ;;  %v2320_v37 = vmul.f32 %v4121_v29, %v5103_v1 }
 0x477   : > { %4124 = vrsqrt.f32 %v2270_v26  ;;  %v2271_v14 = vadd.f32 1e-05, %v2243_v18  ;;  %v2240_v2 = vmul.f32 0.0078125, %v2201_v54  ;;  %2484 = vrot.lane.b32.xlu0 %v5312_v39, %s4309_s22  ;;  %v2414_v7 = vadd.f32 %v4161_v45, %v5312_v39 }
 0x478   : > { %v2203_v17 = vpop.xlane.xlu1 %2202  ;;  %v5321_v19 = vadd.f32 %v5184_v44, %v2355_v20  ;;  %v2352_v55 = vmul.f32 %v5177_v63, %v2320_v37  ;;  %v2321_v50 = vmul.f32 %v4123_v41, %v5108_v36 }
 0x479   : > { %4126 = vrsqrt.f32 %v2271_v14  ;;  %v2268_v1 = vadd.f32 1e-05, %v2240_v2  ;;  %v2241_v25 = vmul.f32 0.0078125, %v2203_v17  ;;  %2751 = vst [vmem:[%s5199_s19 + $0x70] sm:$0xff] %v2414_v7 }
 0x47a   : > { %v2415_v8 = vadd.f32 %v4162_v51, %v5321_v19  ;;  %2486 = vrot.lane.b32.xlu1 %v5321_v19, %s4309_s22  ;;  %v5331_v6 = vadd.f32 %v5184_v44, %v2352_v55  ;;  %v2353_v23 = vmul.f32 %v5177_v63, %v2321_v50  ;;  %v4166_v50 = vld [vmem:[%s4488_s23 + $0x98] sm:$0xff] }
 0x47b   : > { %4128 = vrsqrt.f32 %v2268_v1  ;;  %v2269_v36 = vadd.f32 1e-05, %v2241_v25 }
 0x47c   : > { %2752 = vst [vmem:[%s5199_s19 + $0x78] sm:$0xff] %v2415_v8  ;;  %2480 = vrot.lane.b32.xlu0 %v5331_v6, %s4309_s22  ;;  %v2412_v21 = vadd.f32 %v4163_v42, %v5331_v6  ;;  %v5340_v35 = vadd.f32 %v5184_v44, %v2353_v23  ;;  %v4167_v8 = vld [vmem:[%s4488_s23 + $0x80] sm:$0xff]  ;;  %v4168_v42 = vld [vmem:[%s4488_s23 + $0x88] sm:$0xff] }
 0x47d   : > { %4130 = vrsqrt.f32 %v2269_v36 }
 0x47e   : > { %2749 = vst [vmem:[%s5199_s19 + $0x60] sm:$0xff] %v2412_v21  ;;  %v2413_v58 = vadd.f32 %v4164_v5, %v5340_v35  ;;  %2482 = vrot.lane.b32.xlu1 %v5340_v35, %s4309_s22 }
 0x480   : > { %2750 = vst [vmem:[%s5199_s19 + $0x68] sm:$0xff] %v2413_v58 }
 0x481   : > { %v4125_v33 = vpop.eup %4124 }
 0x482   : > { %v2213_v57 = vpop.xlane.xlu0 %2212  ;;  %v2326_v53 = vmul.f32 %v4125_v33, %v5115_v34 }
 0x483   : > { %v4127_v9 = vpop.eup %4126  ;;  %v2246_v48 = vmul.f32 0.0078125, %v2213_v57 }
 0x484   : > { %v2215_v60 = vpop.xlane.xlu1 %2214  ;;  %v2358_v27 = vmul.f32 %v5177_v63, %v2326_v53  ;;  %v2327_v24 = vmul.f32 %v4127_v9, %v5118_v47  ;;  %v4165_v47 = vld [vmem:[%s4488_s23 + $0x90] sm:$0xff] }
 0x485   : > { %v4129_v15 = vpop.eup %4128  ;;  %v2274_v29 = vadd.f32 1e-05, %v2246_v48  ;;  %v2247_v12 = vmul.f32 0.0078125, %v2215_v60 }
 0x486   : > { %v2209_v26 = vpop.xlane.xlu0 %2208  ;;  %v5352_v18 = vadd.f32 %v5184_v44, %v2358_v27  ;;  %v2359_v20 = vmul.f32 %v5177_v63, %v2327_v24  ;;  %v2324_v34 = vmul.f32 %v4129_v15, %v5123_v56 }
 0x487   : > { %v4131_v41 = vpop.eup %4130  ;;  %4132 = vrsqrt.f32 %v2274_v29  ;;  %v2275_v54 = vadd.f32 1e-05, %v2247_v12  ;;  %v2244_v37 = vmul.f32 0.0078125, %v2209_v26 }
 0x488   : > { %v2211_v14 = vpop.xlane.xlu1 %2210  ;;  %2492 = vrot.lane.b32.xlu0 %v5352_v18, %s4309_s22  ;;  %v2418_v2 = vadd.f32 %v4165_v47, %v5352_v18  ;;  %v5361_v45 = vadd.f32 %v5184_v44, %v2359_v20  ;;  %v2356_v7 = vmul.f32 %v5177_v63, %v2324_v34  ;;  %v2325_v56 = vmul.f32 %v4131_v41, %v5128_v3 }
 0x489   : > { %4134 = vrsqrt.f32 %v2275_v54  ;;  %v2272_v17 = vadd.f32 1e-05, %v2244_v37  ;;  %v2245_v55 = vmul.f32 0.0078125, %v2211_v14 }
 0x48a   : > { %2755 = vst [vmem:[%s5199_s19 + $0x90] sm:$0xff] %v2418_v2  ;;  %v2419_v1 = vadd.f32 %v4166_v50, %v5361_v45  ;;  %2494 = vrot.lane.b32.xlu1 %v5361_v45, %s4309_s22  ;;  %v5371_v25 = vadd.f32 %v5184_v44, %v2356_v7  ;;  %v2357_v51 = vmul.f32 %v5177_v63, %v2325_v56  ;;  %v4170_v56 = vld [vmem:[%s4488_s23 + $0xb8] sm:$0xff] }
 0x48b   : > { %4136 = vrsqrt.f32 %v2272_v17  ;;  %v2273_v3 = vadd.f32 1e-05, %v2245_v55 }
 0x48c   : > { %2756 = vst [vmem:[%s5199_s19 + $0x98] sm:$0xff] %v2419_v1  ;;  %2488 = vrot.lane.b32.xlu0 %v5371_v25, %s4309_s22  ;;  %v2416_v23 = vadd.f32 %v4167_v8, %v5371_v25  ;;  %v5380_v36 = vadd.f32 %v5184_v44, %v2357_v51  ;;  %v4171_v1 = vld [vmem:[%s4488_s23 + $0xa0] sm:$0xff]  ;;  %v4172_v8 = vld [vmem:[%s4488_s23 + $0xa8] sm:$0xff] }
 0x48d   : > { %4138 = vrsqrt.f32 %v2273_v3 }
 0x48e   : > { %2753 = vst [vmem:[%s5199_s19 + $0x80] sm:$0xff] %v2416_v23  ;;  %v2417_v21 = vadd.f32 %v4168_v42, %v5380_v36  ;;  %2490 = vrot.lane.b32.xlu1 %v5380_v36, %s4309_s22 }
 0x490   : > { %2754 = vst [vmem:[%s5199_s19 + $0x88] sm:$0xff] %v2417_v21 }
 0x491   : > { %v4133_v5 = vpop.eup %4132 }
 0x492   : > { %v2217_v58 = vpop.xlane.xlu0 %2216  ;;  %v2330_v33 = vmul.f32 %v4133_v5, %v5135_v61 }
 0x493   : > { %v4135_v57 = vpop.eup %4134  ;;  %v2248_v53 = vmul.f32 0.0078125, %v2217_v58 }
 0x494   : > { %v2219_v9 = vpop.xlane.xlu1 %2218  ;;  %v2362_v48 = vmul.f32 %v5177_v63, %v2330_v33  ;;  %v2331_v60 = vmul.f32 %v4135_v57, %v5138_v11  ;;  %v4169_v11 = vld [vmem:[%s4488_s23 + $0xb0] sm:$0xff] }
 0x495   : > { %v4137_v27 = vpop.eup %4136  ;;  %v2276_v24 = vadd.f32 1e-05, %v2248_v53  ;;  %v2249_v15 = vmul.f32 0.0078125, %v2219_v9 }
 0x496   : > { %v2221_v29 = vpop.xlane.xlu0 %2220  ;;  %v5392_v12 = vadd.f32 %v5184_v44, %v2362_v48  ;;  %v2363_v26 = vmul.f32 %v5177_v63, %v2331_v60  ;;  %v2328_v61 = vmul.f32 %v4137_v27, %v5143_v16 }
 0x497   : > { %v4139_v20 = vpop.eup %4138  ;;  %4140 = vrsqrt.f32 %v2276_v24  ;;  %v2277_v34 = vadd.f32 1e-05, %v2249_v15  ;;  %v2250_v41 = vmul.f32 0.0078125, %v2221_v29 }
 0x498   : > { %2500 = vrot.lane.b32.xlu0 %v5392_v12, %s4309_s22  ;;  %v2422_v54 = vadd.f32 %v4169_v11, %v5392_v12  ;;  %v2223_v37 = vpop.xlane.xlu1 %2222  ;;  %v5401_v14 = vadd.f32 %v5184_v44, %v2363_v26  ;;  %v2360_v47 = vmul.f32 %v5177_v63, %v2328_v61  ;;  %v2329_v16 = vmul.f32 %v4139_v20, %v5148_v62  ;;  %v4175_v20 = vld [vmem:[%s4488_s23 + $0xd0] sm:$0xff] }
 0x499   : > { %4142 = vrsqrt.f32 %v2277_v34  ;;  %v2278_v2 = vadd.f32 1e-05, %v2250_v41  ;;  %v2251_v7 = vmul.f32 0.0078125, %v2223_v37  ;;  %v4176_v41 = vld [vmem:[%s4488_s23 + $0xd8] sm:$0xff] }
 0x49a   : > { %2759 = vst [vmem:[%s5199_s19 + $0xb0] sm:$0xff] %v2422_v54  ;;  %v2423_v17 = vadd.f32 %v4170_v56, %v5401_v14  ;;  %2502 = vrot.lane.b32.xlu1 %v5401_v14, %s4309_s22  ;;  %v5411_v55 = vadd.f32 %v5184_v44, %v2360_v47  ;;  %v2361_v50 = vmul.f32 %v5177_v63, %v2329_v16 }
 0x49b   : > { %4144 = vrsqrt.f32 %v2278_v2  ;;  %v2279_v62 = vadd.f32 1e-05, %v2251_v7 }
 0x49c   : > { %2760 = vst [vmem:[%s5199_s19 + $0xb8] sm:$0xff] %v2423_v17  ;;  %2496 = vrot.lane.b32.xlu0 %v5411_v55, %s4309_s22  ;;  %v2420_v51 = vadd.f32 %v4171_v1, %v5411_v55  ;;  %v5420_v3 = vadd.f32 %v5184_v44, %v2361_v50 }
 0x49d   : > { %4146 = vrsqrt.f32 %v2279_v62 }
 0x49e   : > { %2757 = vst [vmem:[%s5199_s19 + $0xa0] sm:$0xff] %v2420_v51  ;;  %v2421_v23 = vadd.f32 %v4172_v8, %v5420_v3  ;;  %2498 = vrot.lane.b32.xlu1 %v5420_v3, %s4309_s22 }
 0x4a0   : > { %2758 = vst [vmem:[%s5199_s19 + $0xa8] sm:$0xff] %v2421_v23 }
 0x4a1   : > { %v4141_v42 = vpop.eup %4140 }
 0x4a2   : > { %v2332_v21 = vmul.f32 %v4141_v42, %v5155_v32  ;;  %v4173_v32 = vld [vmem:[%s4488_s23 + $0xc0] sm:$0xff] }
 0x4a3   : > { %v4143_v5 = vpop.eup %4142 }
 0x4a4   : > { %v2364_v58 = vmul.f32 %v5177_v63, %v2332_v21  ;;  %v2333_v33 = vmul.f32 %v4143_v5, %v5158_v0 }
 0x4a5   : > { %v4145_v57 = vpop.eup %4144 }
 0x4a6   : > { %v5432_v53 = vadd.f32 %v5184_v44, %v2364_v58  ;;  %v2365_v9 = vmul.f32 %v5177_v63, %v2333_v33  ;;  %v2334_v48 = vmul.f32 %v4145_v57, %v5163_v38  ;;  %v4174_v38 = vld [vmem:[%s4488_s23 + $0xc8] sm:$0xff]  ;;  %s5472_s23 = scalar_lea.vmem [#allocation2], %s3692_s14  }
 0x4a7   : > { %v4147_v60 = vpop.eup %4146 }
 0x4a8   : > { %2504 = vrot.lane.b32.xlu0 %v5432_v53, %s4309_s22  ;;  %v2424_v27 = vadd.f32 %v4173_v32, %v5432_v53  ;;  %v5441_v0 = vadd.f32 %v5184_v44, %v2365_v9  ;;  %v2366_v24 = vmul.f32 %v5177_v63, %v2334_v48  ;;  %v2335_v15 = vmul.f32 %v4147_v60, %v5168_v28 }
 0x4aa   : > { %2761 = vst [vmem:[%s5199_s19 + $0xc0] sm:$0xff] %v2424_v27  ;;  %v2425_v29 = vadd.f32 %v4174_v38, %v5441_v0  ;;  %2506 = vrot.lane.b32.xlu1 %v5441_v0, %s4309_s22  ;;  %v5451_v26 = vadd.f32 %v5184_v44, %v2366_v24  ;;  %v2367_v61 = vmul.f32 %v5177_v63, %v2335_v15 }
 0x4ac   : > { %2762 = vst [vmem:[%s5199_s19 + $0xc8] sm:$0xff] %v2425_v29  ;;  %2508 = vrot.lane.b32.xlu0 %v5451_v26, %s4309_s22  ;;  %v2426_v28 = vadd.f32 %v4175_v20, %v5451_v26  ;;  %v5460_v34 = vadd.f32 %v5184_v44, %v2367_v61 }
 0x4ae   : > { %2763 = vst [vmem:[%s5199_s19 + $0xd0] sm:$0xff] %v2426_v28  ;;  %v2427_v11 = vadd.f32 %v4176_v41, %v5460_v34  ;;  %2510 = vrot.lane.b32.xlu1 %v5460_v34, %s4309_s22 }
 0x4b0   : > { %2764 = vst [vmem:[%s5199_s19 + $0xd8] sm:$0xff] %v2427_v11 }
 0x4b6   : > { %v2461_v54 = vpop.permute.xlu1 %2460 }
 0x4b7   : > { %v2542_v63 = vadd.f32 %v2461_v54, %v5189_v31 }
 0x4b9   : > { %v2570_v37 = vmul.f32 0.5, %v2542_v63 }
 0x4bb   : > { %v3350_v47 = vpack.c.bf16 %v2570_v37, %v2570_v37  ;;  %v2463_v16 = vpop.permute.xlu1 %2462  ;;  %v2457_v2 = vpop.permute.xlu0 %2456 }
 0x4bc   : > { %v2543_v44 = vadd.f32 %v2463_v16, %v5204_v59  ;;  %v2540_v7 = vadd.f32 %v2457_v2, %v5207_v30 }
 0x4bd   : > { %2711 = vst.msk [vmem:[%s5472_s23 + $0x8] sm:$0xf] %vm2708_vm0, %v3350_v47 }
 0x4be   : > { %v2571_v56 = vmul.f32 0.5, %v2543_v44  ;;  %v2568_v17 = vmul.f32 0.5, %v2540_v7 }
 0x4bf   : > { %v2459_v31 = vpop.permute.xlu1 %2458 }
 0x4c0   : > { %v3351_v50 = vpack.c.bf16 %v2571_v56, %v2571_v56  ;;  %v3348_v62 = vpack.c.bf16 %v2568_v17, %v2568_v17  ;;  %v2541_v1 = vadd.f32 %v2459_v31, %v5219_v13 }
 0x4c2   : > { %2712 = vst.msk [vmem:[%s5472_s23 + $0xc] sm:$0xf] %vm2708_vm0, %v3351_v50  ;;  %2709 = vst.msk [vmem:[%s5472_s23] sm:$0xf] %vm2708_vm0, %v3348_v62  ;;  %v2569_v59 = vmul.f32 0.5, %v2541_v1 }
 0x4c4   : > { %v3349_v30 = vpack.c.bf16 %v2569_v59, %v2569_v59 }
 0x4c6   : > { %2710 = vst.msk [vmem:[%s5472_s23 + $0x4] sm:$0xf] %vm2708_vm0, %v3349_v30 }
 0x4c7   : > { %v2469_v51 = vpop.permute.xlu0 %2468 }
 0x4c8   : > { %v2546_v8 = vadd.f32 %v2469_v51, %v5232_v52 }
 0x4ca   : > { %v2574_v23 = vmul.f32 0.5, %v2546_v8  ;;  %v2471_v42 = vpop.permute.xlu1 %2470 }
 0x4cb   : > { %v2547_v21 = vadd.f32 %v2471_v42, %v5241_v49 }
 0x4cc   : > { %v3354_v5 = vpack.c.bf16 %v2574_v23, %v2574_v23  ;;  %v2465_v13 = vpop.permute.xlu0 %2464 }
 0x4cd   : > { %v2575_v58 = vmul.f32 0.5, %v2547_v21  ;;  %v2544_v33 = vadd.f32 %v2465_v13, %v5251_v4 }
 0x4ce   : > { %2715 = vst.msk [vmem:[%s5472_s23 + $0x18] sm:$0xf] %vm2708_vm0, %v3354_v5  ;;  %v2467_v57 = vpop.permute.xlu1 %2466 }
 0x4cf   : > { %v3355_v9 = vpack.c.bf16 %v2575_v58, %v2575_v58  ;;  %v2572_v48 = vmul.f32 0.5, %v2544_v33  ;;  %v2545_v60 = vadd.f32 %v2467_v57, %v5260_v40 }
 0x4d1   : > { %2716 = vst.msk [vmem:[%s5472_s23 + $0x1c] sm:$0xf] %vm2708_vm0, %v3355_v9  ;;  %v3352_v52 = vpack.c.bf16 %v2572_v48, %v2572_v48  ;;  %v2573_v32 = vmul.f32 0.5, %v2545_v60 }
 0x4d3   : > { %2713 = vst.msk [vmem:[%s5472_s23 + $0x10] sm:$0xf] %vm2708_vm0, %v3352_v52  ;;  %v3353_v49 = vpack.c.bf16 %v2573_v32, %v2573_v32 }
 0x4d5   : > { %2714 = vst.msk [vmem:[%s5472_s23 + $0x14] sm:$0xf] %vm2708_vm0, %v3353_v49 }
 0x4d8   : > { %v2477_v27 = vpop.permute.xlu0 %2476 }
 0x4d9   : > { %v2550_v4 = vadd.f32 %v2477_v27, %v5272_v43 }
 0x4db   : > { %v2578_v24 = vmul.f32 0.5, %v2550_v4  ;;  %v2479_v15 = vpop.permute.xlu1 %2478 }
 0x4dc   : > { %v2551_v40 = vadd.f32 %v2479_v15, %v5281_v46 }
 0x4dd   : > { %v3358_v38 = vpack.c.bf16 %v2578_v24, %v2578_v24  ;;  %v2473_v29 = vpop.permute.xlu0 %2472 }
 0x4de   : > { %v2579_v61 = vmul.f32 0.5, %v2551_v40  ;;  %v2548_v20 = vadd.f32 %v2473_v29, %v5291_v10 }
 0x4df   : > { %2719 = vst.msk [vmem:[%s5472_s23 + $0x28] sm:$0xf] %vm2708_vm0, %v3358_v38  ;;  %v2475_v28 = vpop.permute.xlu1 %2474 }
 0x4e0   : > { %v3359_v41 = vpack.c.bf16 %v2579_v61, %v2579_v61  ;;  %v2576_v11 = vmul.f32 0.5, %v2548_v20  ;;  %v2549_v54 = vadd.f32 %v2475_v28, %v5300_v22 }
 0x4e2   : > { %2720 = vst.msk [vmem:[%s5472_s23 + $0x2c] sm:$0xf] %vm2708_vm0, %v3359_v41  ;;  %v3356_v43 = vpack.c.bf16 %v2576_v11, %v2576_v11  ;;  %v2577_v63 = vmul.f32 0.5, %v2549_v54 }
 0x4e4   : > { %2717 = vst.msk [vmem:[%s5472_s23 + $0x20] sm:$0xf] %vm2708_vm0, %v3356_v43  ;;  %v3357_v46 = vpack.c.bf16 %v2577_v63, %v2577_v63 }
 0x4e6   : > { %2718 = vst.msk [vmem:[%s5472_s23 + $0x24] sm:$0xf] %vm2708_vm0, %v3357_v46 }
 0x4e9   : > { %v2485_v37 = vpop.permute.xlu0 %2484 }
 0x4ea   : > { %v2554_v10 = vadd.f32 %v2485_v37, %v5312_v39 }
 0x4ec   : > { %v2582_v47 = vmul.f32 0.5, %v2554_v10  ;;  %v2487_v16 = vpop.permute.xlu1 %2486 }
 0x4ed   : > { %v2555_v22 = vadd.f32 %v2487_v16, %v5321_v19 }
 0x4ee   : > { %v3362_v2 = vpack.c.bf16 %v2582_v47, %v2582_v47  ;;  %v2481_v44 = vpop.permute.xlu0 %2480 }
 0x4ef   : > { %v2583_v7 = vmul.f32 0.5, %v2555_v22  ;;  %v2552_v56 = vadd.f32 %v2481_v44, %v5331_v6 }
 0x4f0   : > { %2723 = vst.msk [vmem:[%s5472_s23 + $0x38] sm:$0xf] %vm2708_vm0, %v3362_v2  ;;  %v2483_v17 = vpop.permute.xlu1 %2482 }
 0x4f1   : > { %v3363_v31 = vpack.c.bf16 %v2583_v7, %v2583_v7  ;;  %v2580_v50 = vmul.f32 0.5, %v2552_v56  ;;  %v2553_v62 = vadd.f32 %v2483_v17, %v5340_v35 }
 0x4f3   : > { %2724 = vst.msk [vmem:[%s5472_s23 + $0x3c] sm:$0xf] %vm2708_vm0, %v3363_v31  ;;  %v3360_v39 = vpack.c.bf16 %v2580_v50, %v2580_v50  ;;  %v2581_v1 = vmul.f32 0.5, %v2553_v62 }
 0x4f5   : > { %2721 = vst.msk [vmem:[%s5472_s23 + $0x30] sm:$0xf] %vm2708_vm0, %v3360_v39  ;;  %v3361_v19 = vpack.c.bf16 %v2581_v1, %v2581_v1 }
 0x4f7   : > { %2722 = vst.msk [vmem:[%s5472_s23 + $0x34] sm:$0xf] %vm2708_vm0, %v3361_v19 }
 0x4fa   : > { %v2493_v59 = vpop.permute.xlu0 %2492 }
 0x4fb   : > { %v2558_v6 = vadd.f32 %v2493_v59, %v5352_v18 }
 0x4fc   : > { %v2495_v30 = vpop.permute.xlu1 %2494 }
 0x4fd   : > { %v2586_v51 = vmul.f32 0.5, %v2558_v6  ;;  %v2559_v35 = vadd.f32 %v2495_v30, %v5361_v45 }
 0x4fe   : > { %v2489_v8 = vpop.permute.xlu0 %2488 }
 0x4ff   : > { %v3366_v23 = vpack.c.bf16 %v2586_v51, %v2586_v51  ;;  %v2587_v42 = vmul.f32 0.5, %v2559_v35  ;;  %v2556_v21 = vadd.f32 %v2489_v8, %v5371_v25 }
 0x500   : > { %v2491_v5 = vpop.permute.xlu1 %2490 }
 0x501   : > { %2727 = vst.msk [vmem:[%s5472_s23 + $0x48] sm:$0xf] %vm2708_vm0, %v3366_v23  ;;  %v3367_v13 = vpack.c.bf16 %v2587_v42, %v2587_v42  ;;  %v2584_v58 = vmul.f32 0.5, %v2556_v21  ;;  %v2557_v33 = vadd.f32 %v2491_v5, %v5380_v36 }
 0x503   : > { %2728 = vst.msk [vmem:[%s5472_s23 + $0x4c] sm:$0xf] %vm2708_vm0, %v3367_v13  ;;  %v3364_v18 = vpack.c.bf16 %v2584_v58, %v2584_v58  ;;  %v2585_v57 = vmul.f32 0.5, %v2557_v33 }
 0x505   : > { %2725 = vst.msk [vmem:[%s5472_s23 + $0x40] sm:$0xf] %vm2708_vm0, %v3364_v18  ;;  %v3365_v45 = vpack.c.bf16 %v2585_v57, %v2585_v57 }
 0x507   : > { %2726 = vst.msk [vmem:[%s5472_s23 + $0x44] sm:$0xf] %vm2708_vm0, %v3365_v45 }
 0x50a   : > { %v2501_v9 = vpop.permute.xlu0 %2500 }
 0x50b   : > { %v2562_v25 = vadd.f32 %v2501_v9, %v5392_v12 }
 0x50c   : > { %v2503_v48 = vpop.permute.xlu1 %2502 }
 0x50d   : > { %v2590_v60 = vmul.f32 0.5, %v2562_v25  ;;  %v2563_v36 = vadd.f32 %v2503_v48, %v5401_v14 }
 0x50e   : > { %v2497_v52 = vpop.permute.xlu0 %2496 }
 0x50f   : > { %v3370_v32 = vpack.c.bf16 %v2590_v60, %v2590_v60  ;;  %v2591_v49 = vmul.f32 0.5, %v2563_v36  ;;  %v2560_v27 = vadd.f32 %v2497_v52, %v5411_v55 }
 0x510   : > { %v2499_v4 = vpop.permute.xlu1 %2498 }
 0x511   : > { %2731 = vst.msk [vmem:[%s5472_s23 + $0x58] sm:$0xf] %vm2708_vm0, %v3370_v32  ;;  %v3371_v24 = vpack.c.bf16 %v2591_v49, %v2591_v49  ;;  %v2588_v15 = vmul.f32 0.5, %v2560_v27  ;;  %v2561_v40 = vadd.f32 %v2499_v4, %v5420_v3 }
 0x513   : > { %2732 = vst.msk [vmem:[%s5472_s23 + $0x5c] sm:$0xf] %vm2708_vm0, %v3371_v24  ;;  %v3368_v12 = vpack.c.bf16 %v2588_v15, %v2588_v15  ;;  %v2589_v38 = vmul.f32 0.5, %v2561_v40 }
 0x515   : > { %2729 = vst.msk [vmem:[%s5472_s23 + $0x50] sm:$0xf] %vm2708_vm0, %v3368_v12  ;;  %v3369_v14 = vpack.c.bf16 %v2589_v38, %v2589_v38 }
 0x517   : > { %2730 = vst.msk [vmem:[%s5472_s23 + $0x54] sm:$0xf] %vm2708_vm0, %v3369_v14 }
 0x51a   : > { %v2505_v29 = vpop.permute.xlu0 %2504 }
 0x51b   : > { %v2564_v55 = vadd.f32 %v2505_v29, %v5432_v53 }
 0x51c   : > { %v2507_v61 = vpop.permute.xlu1 %2506 }
 0x51d   : > { %v2592_v20 = vmul.f32 0.5, %v2564_v55  ;;  %v2565_v3 = vadd.f32 %v2507_v61, %v5441_v0 }
 0x51e   : > { %v2509_v28 = vpop.permute.xlu0 %2508 }
 0x51f   : > { %v3372_v41 = vpack.c.bf16 %v2592_v20, %v2592_v20  ;;  %v2593_v11 = vmul.f32 0.5, %v2565_v3  ;;  %v2566_v54 = vadd.f32 %v2509_v28, %v5451_v26 }
 0x520   : > { %v2511_v43 = vpop.permute.xlu1 %2510 }
 0x521   : > { %2733 = vst.msk [vmem:[%s5472_s23 + $0x60] sm:$0xf] %vm2708_vm0, %v3372_v41  ;;  %v3373_v63 = vpack.c.bf16 %v2593_v11, %v2593_v11  ;;  %v2594_v46 = vmul.f32 0.5, %v2566_v54  ;;  %v2567_v37 = vadd.f32 %v2511_v43, %v5460_v34  ;;  %2776 = sbr.rel (!%p4396_p5) target bundleno = 1400 (0x578), region = 52 }
 0x523   : > { %2734 = vst.msk [vmem:[%s5472_s23 + $0x64] sm:$0xf] %vm2708_vm0, %v3373_v63  ;;  %v3374_v53 = vpack.c.bf16 %v2594_v46, %v2594_v46  ;;  %v2595_v10 = vmul.f32 0.5, %v2567_v37 }
 0x525   : > { %2735 = vst.msk [vmem:[%s5472_s23 + $0x68] sm:$0xf] %vm2708_vm0, %v3374_v53  ;;  %v3375_v0 = vpack.c.bf16 %v2595_v10, %v2595_v10 }
 0x527   : > { %2736 = vst.msk [vmem:[%s5472_s23 + $0x6c] sm:$0xf] %vm2708_vm0, %v3375_v0 }
 0x528   : > { %s5764_s24 = smov (!%p2779_p11, %s2778_s24), 28 }
 0x529   : > { %s3331_s17 = sshll.u32 %s5764_s24, 6 }
 0x52a   : > { %p3334_p12 = scmp.eq.s32.totalorder %s3331_s17, 0 }
 0x52b   : > { %4177 = sdivrem.u32 (!%p3334_p12), %s5764_s24, 28 }
 0x52c   : > { %2787 = sbr.rel (%p3334_p12) target bundleno = 1400 (0x578), region = 56 }
 0x534   : > { %s5569_s20 = spop.drf %4177 }
 0x535   : > { %p3335_p13 = scmp.le.s32.totalorder %s5569_s20, 0 }
 0x536   : > { %s5753_s22 = smov (!%p3335_p13), %s5563_s25  ;;  %s5754_s14 = smov (!%p3335_p13), %s5472_s23 }
 0x537   : > { %3107 = sbr.rel (%p3335_p13) target bundleno = 1371 (0x55b), region = 151  ;;  %s5578_s26 = smov (!%p3335_p13), 0  }
 0x538   : > { %s5580_s21 = smov (!%p3335_p13), 0  }
 0x53e LB: >> { %v2804_v26 = vld [vmem:[%s4283_s14] sm:$0xf]  ;;  %v2806_v34 = vld [vmem:[%s4283_s14 + $0x4] sm:$0xf]  ;;  %v2808_v47 = vld [vmem:[%s4283_s14 + $0x8] sm:$0xf]  ;;  %s4291_s21 = sphi %s5580_s21, %s2798_s21   ;;  %s4287_s26 = sphi %s5578_s26, %s5755_s26   ;;  %s4283_s14 = sphi %s5754_s14, %s2865_s14   ;;  %s4279_s22 = sphi %s5753_s22, %s2866_s22  }
 0x53f   : >> { %2805 = vst [vmem:[%s4279_s22] sm:$0xf] %v2804_v26  ;;  %2807 = vst [vmem:[%s4279_s22 + $0x4] sm:$0xf] %v2806_v34  ;;  %v2810_v16 = vld [vmem:[%s4283_s14 + $0xc] sm:$0xf]  ;;  %s2860_s12 = sadd.s32 1, %s4287_s26 }
 0x540   : >> { %2809 = vst [vmem:[%s4279_s22 + $0x8] sm:$0xf] %v2808_v47  ;;  %v2812_v22 = vld [vmem:[%s4283_s14 + $0x10] sm:$0xf]  ;;  %v2814_v2 = vld [vmem:[%s4283_s14 + $0x14] sm:$0xf]  ;;  %p2861_p0 = scmp.ge.s32.totalorder %s2860_s12, %s5569_s20 }
 0x541   : >> { %2811 = vst [vmem:[%s4279_s22 + $0xc] sm:$0xf] %v2810_v16  ;;  %2813 = vst [vmem:[%s4279_s22 + $0x10] sm:$0xf] %v2812_v22  ;;  %v2816_v44 = vld [vmem:[%s4283_s14 + $0x18] sm:$0xf] }
 0x542   : >> { %2815 = vst [vmem:[%s4279_s22 + $0x14] sm:$0xf] %v2814_v2  ;;  %v2818_v7 = vld [vmem:[%s4283_s14 + $0x1c] sm:$0xf]  ;;  %v2820_v56 = vld [vmem:[%s4283_s14 + $0x20] sm:$0xf] }
 0x543   : >> { %2817 = vst [vmem:[%s4279_s22 + $0x18] sm:$0xf] %v2816_v44  ;;  %2819 = vst [vmem:[%s4279_s22 + $0x1c] sm:$0xf] %v2818_v7  ;;  %v2822_v17 = vld [vmem:[%s4283_s14 + $0x24] sm:$0xf] }
 0x544   : >> { %2821 = vst [vmem:[%s4279_s22 + $0x20] sm:$0xf] %v2820_v56  ;;  %v2824_v31 = vld [vmem:[%s4283_s14 + $0x28] sm:$0xf]  ;;  %v2826_v50 = vld [vmem:[%s4283_s14 + $0x2c] sm:$0xf] }
 0x545   : >> { %2823 = vst [vmem:[%s4279_s22 + $0x24] sm:$0xf] %v2822_v17  ;;  %2825 = vst [vmem:[%s4279_s22 + $0x28] sm:$0xf] %v2824_v31  ;;  %v2828_v62 = vld [vmem:[%s4283_s14 + $0x30] sm:$0xf] }
 0x546   : >> { %2827 = vst [vmem:[%s4279_s22 + $0x2c] sm:$0xf] %v2826_v50  ;;  %v2830_v39 = vld [vmem:[%s4283_s14 + $0x34] sm:$0xf]  ;;  %v2832_v1 = vld [vmem:[%s4283_s14 + $0x38] sm:$0xf] }
 0x547   : >> { %2829 = vst [vmem:[%s4279_s22 + $0x30] sm:$0xf] %v2828_v62  ;;  %2831 = vst [vmem:[%s4279_s22 + $0x34] sm:$0xf] %v2830_v39  ;;  %v2834_v19 = vld [vmem:[%s4283_s14 + $0x3c] sm:$0xf] }
 0x548   : >> { %2833 = vst [vmem:[%s4279_s22 + $0x38] sm:$0xf] %v2832_v1  ;;  %v2836_v59 = vld [vmem:[%s4283_s14 + $0x40] sm:$0xf]  ;;  %v2838_v6 = vld [vmem:[%s4283_s14 + $0x44] sm:$0xf] }
 0x549   : >> { %2835 = vst [vmem:[%s4279_s22 + $0x3c] sm:$0xf] %v2834_v19  ;;  %2837 = vst [vmem:[%s4279_s22 + $0x40] sm:$0xf] %v2836_v59  ;;  %v2840_v30 = vld [vmem:[%s4283_s14 + $0x48] sm:$0xf] }
 0x54a   : >> { %2839 = vst [vmem:[%s4279_s22 + $0x44] sm:$0xf] %v2838_v6  ;;  %v2842_v51 = vld [vmem:[%s4283_s14 + $0x4c] sm:$0xf]  ;;  %v2844_v35 = vld [vmem:[%s4283_s14 + $0x50] sm:$0xf] }
 0x54b   : >> { %2841 = vst [vmem:[%s4279_s22 + $0x48] sm:$0xf] %v2840_v30  ;;  %2843 = vst [vmem:[%s4279_s22 + $0x4c] sm:$0xf] %v2842_v51  ;;  %v2846_v8 = vld [vmem:[%s4283_s14 + $0x54] sm:$0xf] }
 0x54c   : >> { %2845 = vst [vmem:[%s4279_s22 + $0x50] sm:$0xf] %v2844_v35  ;;  %v2848_v23 = vld [vmem:[%s4283_s14 + $0x58] sm:$0xf]  ;;  %v2850_v42 = vld [vmem:[%s4283_s14 + $0x5c] sm:$0xf] }
 0x54d   : >> { %2847 = vst [vmem:[%s4279_s22 + $0x54] sm:$0xf] %v2846_v8  ;;  %2849 = vst [vmem:[%s4279_s22 + $0x58] sm:$0xf] %v2848_v23  ;;  %v2852_v21 = vld [vmem:[%s4283_s14 + $0x60] sm:$0xf] }
 0x54e   : >> { %2851 = vst [vmem:[%s4279_s22 + $0x5c] sm:$0xf] %v2850_v42  ;;  %v2854_v5 = vld [vmem:[%s4283_s14 + $0x64] sm:$0xf]  ;;  %v2856_v13 = vld [vmem:[%s4283_s14 + $0x68] sm:$0xf] }
 0x54f   : >> { %2853 = vst [vmem:[%s4279_s22 + $0x60] sm:$0xf] %v2852_v21  ;;  %2855 = vst [vmem:[%s4279_s22 + $0x64] sm:$0xf] %v2854_v5  ;;  %v2858_v58 = vld [vmem:[%s4283_s14 + $0x6c] sm:$0xf] }
 0x550   : >> { %2857 = vst [vmem:[%s4279_s22 + $0x68] sm:$0xf] %v2856_v13  ;;  %2859 = vst [vmem:[%s4279_s22 + $0x6c] sm:$0xf] %v2858_v58  ;;  %s5766_s12 = smov (%p2861_p0, %s2860_s12), 0  ;;  %s2798_s21 = sadd.s32 1, %s4291_s21  }
 0x551   : >> { %s2863_s17 = smul.u32 112, %s5766_s12  ;;  %p2797_p1 = scmp.ge.s32.totalorder %s2798_s21, %s5569_s20 }
 0x552   : >> { %s5755_s26 = smov %s5766_s12 }
 0x553   : >> { %s2865_s14 = scalar_lea.vmem %s5472_s23, %s2863_s17 [#allocation2]   ;;  %s2866_s22 = scalar_lea.vmem %s5563_s25, %s2863_s17  }
 0x554   : > { %2800 = sbr.rel (!%p2797_p1) target bundleno = 1342 (0x53e), region = 157 }
 0x55b PF: > { %4179 = sdivrem.u32 %s5764_s24, 28 }
 0x55c   : > { %s3336_s17 = smul.u32 112, %s5569_s20 }
 0x55e   : > { %s2871_s10 = scalar_lea.vmem %s5472_s23, %s3336_s17 [#allocation2]   ;;  %s2873_s0 = scalar_lea.vmem %s5563_s25, %s3336_s17  }
 0x564   : > { %s4180_s1 = spop.drf %4179 }
 0x565   : > { %p3338_p2 = scmp.le.s32.totalorder %s4180_s1, 0 }
 0x566   : > { %s4293_s2 = smov (!%p3338_p2), %s2873_s0   ;;  %s4297_s3 = smov (!%p3338_p2), %s2871_s10  }
 0x567   : > { %3121 = sbr.rel (%p3338_p2) target bundleno = 1400 (0x578), region = 162  ;;  %s4301_s4 = smov (!%p3338_p2), 0  }
 0x568   : > { %s4305_s5 = smov (!%p3338_p2), 0  }
 0x56e LB: >> { %v2883_v33 = vld [vmem:[%s4299_s3] sm:$0xf]  ;;  %s2885_s22 = sadd.s32 1, %s4303_s4  ;;  %s2877_s5 = sadd.s32 1, %s4307_s5   ;;  %s4307_s5 = sphi %s4305_s5, %s2877_s5   ;;  %s4303_s4 = sphi %s4301_s4, %s4302_s4   ;;  %s4299_s3 = sphi %s4297_s3, %s2890_s3   ;;  %s4295_s2 = sphi %s4293_s2, %s2891_s2  }
 0x56f   : >> { %2884 = vst [vmem:[%s4295_s2] sm:$0xf] %v2883_v33  ;;  %p2886_p3 = scmp.ge.s32.totalorder %s2885_s22, %s4180_s1  ;;  %p2876_p4 = scmp.ge.s32.totalorder %s2877_s5, %s4180_s1 }
 0x571   : >> { %s5768_s22 = smov (%p2886_p3, %s2885_s22), 0  ;;  %2879 = sbr.rel (!%p2876_p4) target bundleno = 1390 (0x56e), region = 168 }
 0x572   : >> { %s3339_s23 = sshll.u32 %s5768_s22, 2  ;;  %s4302_s4 = smov %s5768_s22  }
 0x573   : >> { %s2890_s3 = scalar_lea.vmem %s2871_s10, %s3339_s23 [#allocation2]   ;;  %s2891_s2 = scalar_lea.vmem %s2873_s0, %s3339_s23  }
 0x578 PF: > { %2997 = sbr.rel (!%p4396_p5) target bundleno = 1436 (0x59c), region = 100  ;;  %s2999_s4 = ssub.s32 (%p4396_p5), 55, %s4425_s13 }
 0x579   : > { %p3000_p7 = scmp.lt.s32.totalorder (%p4396_p5), %s2999_s4, 28  ;;  %s5756_s2 = scalar_lea.sflag (%p4396_p5), [#allocation4], %s5180_s18 }
 0x57f   : > { %s5770_s4 = smov (!%p3000_p7, %s2999_s4), 28 }
 0x580   : > { %s5671_s24 = sshll.u32 %s5770_s4, 7 }
 0x581   : > { %s3004_s25 = ssub.s32 3584, %s5671_s24 }
 0x582   : > { %3005 = vsyncadd %s5756_s2, %s3004_s25  ;;  %p3342_p8 = scmp.ne.s32.totalorder %s5671_s24, 0  ;;  %s3377_s0 = smul.u32 3584, %s4379_s9 }
 0x583   : > { %s3010_s1 = sshll.u32 %s5199_s19, 4  ;;  %s4310_s10 = smov [#allocation3]   ;;  %s5684_s1 = int_to_ptr.vmem [resolvable:$true] %s3010_s1 }
 0x584   : > { %s5682_s15 = scalar_lea.hbm %s5737_s8, %s3377_s0  ;;  %s4181_s13 = scalar_lea.vmem %s5684_s1, %s5671_s24 }
 0x585   : > { %p4182_p5 = scmp.ne.s32.totalorder %s5684_s1, %s4181_s13  ;;  %s4185_s20 = sshll.u32 %s4310_s10, 4  ;;  %s4186_s20 = int_to_ptr.vmem [resolvable:$false] %s4185_s20 }
 0x586   : > { %s4187_s9 = scalar_lea.vmem %s4186_s20, 7168  ;;  %p4188_p11 = scmp.lt.s32.totalorder %s5684_s1, %s4186_s20 }
 0x587   : > { %p4183_p9 = pnand %p4182_p5, %p3342_p8  ;;  %p4189_p12 = scmp.lt.s32.totalorder %s4187_s9, %s4181_s13 }
 0x589   : > { %p4184_p10 = pneg %p4183_p9  ;;  %p4190_p13 = por %p4189_p12, %p4188_p11 }
 0x58b   : > { %p4191_p0 = pnand %p4190_p13, %p4184_p10 }
 0x58d   : > { %4194 = shalt.err (!%p4191_p0)
}
 0x58e   : > { %s4195_s19 = scalar_lea.hbm %s5682_s15, %s5671_s24  ;;  %s4199_s21 = scalar_lea.hbm %s5737_s8, 7040 }
 0x58f   : > { %p4196_p1 = scmp.ne.s32.totalorder %s5682_s15, %s4195_s19  ;;  %p4200_p4 = scmp.lt.u32.totalorder %s5682_s15, %s5737_s8 }
 0x590   : > { %p4201_p7 = scmp.lt.u32.totalorder %s4199_s21, %s4195_s19  ;;  %p4203_p9 = scmp.lt.u32.totalorder %s4195_s19, %s5682_s15 }
 0x591   : > { %p4197_p2 = pnand %p4196_p1, %p3342_p8 }
 0x592   : > { %p4202_p5 = por %p4201_p7, %p4200_p4 }
 0x593   : > { %p4198_p3 = pneg %p4197_p2 }
 0x594   : > { %p4204_p10 = por %p4203_p9, %p4202_p5 }
 0x596   : > { %p4205_p11 = pnand %p4204_p10, %p4198_p3 }
 0x598   : > { %4208 = shalt.err (!%p4205_p11)
}
 0x599   : > { %s4311_s22 = smov 128   ;;  %s4312_s23 = smov 8  }
 0x59a   : > { %s5757_s4 = smov %s5756_s2 }
 0x59b   : > { %3016 = dma.vmem_to_hbm [thread:$0]  (%p3342_p8), %s5684_s1, %s5671_s24, %s5682_s15, %s5757_s4, %s4311_s22, %s4311_s22, %s4312_s23  }
 0x59c PF: > { %p3699_p12 = scmp.ge.s32.totalorder %s4275_s30, 2  ;;  %s3032_s25 = sand.u32 1, %s4263_s27  }
 0x59d   : > { %s3033_s2 = scalar_lea.sflag [#allocation4], %s3032_s25 }
 0x59e   : > { %p3696_p13 = pnand %p3699_p12, %p4400_p6 }
 0x5a0   : > { %4258 = dma.done.wait (!%p3696_p13), %s3033_s2, 3584  }
 0x5a1   : > { %4260 = vsyncadd (!%p3696_p13), %s3033_s2, 4294963712  ;;  %s5758_s0 = sld [smem:[#allocation6_spill]]  ;;  %p19_p0 = scmp.ge.s32.totalorder %s4383_s11, 4  }
 0x5a2   : > { %s5759_s27 = smov %s4267_s28  ;;  %s5760_s28 = smov %s4271_s29 }
 0x5a3   : > { %s5762_s30 = smov %s4383_s11  ;;  %21 = sbr.rel (!%p19_p0) target bundleno = 10 (0xa), region = 179 }
 0x5a7   : > { %s5761_s29 = smov %s5758_s0 }
 0x5aa   :  { %3038 = vsyncpa [#allocation4], 1 }
 0x5ab   :  { %3040 = vsyncpa [#allocation4 + $0x1], 1 }

</bundles_post_ra>
